<compile_context>
chip_gen: v5e
topology: v5e:2x2
jax: 0.10.0
libtpu: 0.0.40
codegen_flags: <defaults>
</compile_context>

<pallas_src>
from functools import partial

import jax
import jax.numpy as jnp
from jax.experimental import pallas as pl
from jax.experimental.pallas import tpu as pltpu


# ----------------------------------------------------------------------------
# Fused kernel: encoder GRU -> decoder GRU -> linear head, all in VMEM/vregs.
# ----------------------------------------------------------------------------
def seq2seq_fused_kernel(x_ref, h0_ref,
                         wih_cat_ref, gib_cat_ref,
                         ewhh_ref, ebhn_ref,
                         dwhh_ref, dbhn_ref,
                         fcw_ref, fcb_ref,
                         y_ref, ench_ref):
    BP, H = h0_ref.shape                    # BP = batch padded to 8 sublanes
    TB = x_ref.shape[0]
    T = TB // BP
    H3 = 3 * H

    # ---- Fused input projection for encoder+decoder (bf16 at the MXU) ----
    # One pass over x, one MXU ramp; biases (with b_hh_r/b_hh_z folded in)
    # added once on the slab, outside the recurrence.
    x_bf = x_ref[...].astype(jnp.bfloat16)                      # (T*BP, D_in)
    gi_all = (jnp.dot(x_bf, wih_cat_ref[...],
                      preferred_element_type=jnp.float32)
              + gib_cat_ref[...])                               # (T*BP, 6H) f32
    enc_gi = gi_all[:, :H3]                                     # lane-aligned split
    dec_gi = gi_all[:, H3:]

    def gru_scan(gi, whh_ref, bhn_ref, h_init, collect):
        """Serial recurrence; gi = x @ W_ih + (b_ih + [b_hr, b_hz, 0]) for all t."""
        whh = whh_ref[...]                                      # (H, 3H) f32, load once
        bhn = jnp.broadcast_to(bhn_ref[...], (BP, H))           # hoisted broadcast
        h = h_init                                              # (BP, H) f32
        outs = []
        for t in range(T):                                      # static unroll
            gi_t = gi[t * BP:(t + 1) * BP, :]                   # 8-sublane aligned
            gh = jnp.dot(h, whh, preferred_element_type=jnp.float32)
            r = jax.nn.sigmoid(gi_t[:, 0:H] + gh[:, 0:H])
            z = jax.nn.sigmoid(gi_t[:, H:2 * H] + gh[:, H:2 * H])
            # b_hn stays inside the r-multiply (PyTorch semantics).
            n = jnp.tanh(gi_t[:, 2 * H:H3] + r * (gh[:, 2 * H:H3] + bhn))
            h = n + z * (h - n)                                 # == (1-z)*n + z*h
            if collect:
                outs.append(h)
        return h, outs

    # ---- Encoder (only the final hidden is needed by the model) ----
    h_enc, _ = gru_scan(enc_gi, ewhh_ref, ebhn_ref,
                        h0_ref[...].astype(jnp.float32), collect=False)
    ench_ref[...] = h_enc.astype(ench_ref.dtype)

    # ---- Decoder (initial hidden = encoder final hidden), outputs in vregs ----
    _, dec_hs = gru_scan(dec_gi, dwhh_ref, dbhn_ref, h_enc, collect=True)
    dec_out = jnp.concatenate(dec_hs, axis=0)                   # (T*BP, H)

    # ---- Linear head; lane-dense padded output (bf16 at the MXU) ----
    y = (jnp.dot(dec_out.astype(jnp.bfloat16), fcw_ref[...],
                 preferred_element_type=jnp.float32) + fcb_ref[...])
    y_ref[...] = y.astype(y_ref.dtype)


def seq2seq_fused(x_flat, h0, p):
    """x_flat: (T*BP, D_in) time-major. Returns (y (T*BP, P), enc_hidden (BP, H))."""
    TB, _ = x_flat.shape
    BP, H = h0.shape
    P = p["fc_w_pad"].shape[1]
    return pl.pallas_call(
        seq2seq_fused_kernel,
        out_shape=(jax.ShapeDtypeStruct((TB, P), jnp.float32),
                   jax.ShapeDtypeStruct((BP, H), jnp.float32)),
        compiler_params=pltpu.CompilerParams(vmem_limit_bytes=32 * 1024 * 1024),
    )(x_flat, h0,
      p["wih_cat"], p["gib_cat"],
      p["enc_whh"], p["enc_bhn"],
      p["dec_whh"], p["dec_bhn"],
      p["fc_w_pad"], p["fc_b_pad"])


# ----------------------------------------------------------------------------
# Pure functional forward (jit-able; state passed explicitly).
# ----------------------------------------------------------------------------
@partial(jax.jit, static_argnames=("d_out",))
def seq2seq_forward(params, prev_hidden, input_seq, *, d_out):
    B, T, D = input_seq.shape
    BP = ((B + 7) // 8) * 8                                   # pad batch to 8 sublanes
    # time-major so each timestep's rows are contiguous & sublane-aligned
    x = jnp.transpose(input_seq, (1, 0, 2))                   # (T, B, D)
    x = jnp.pad(x, ((0, 0), (0, BP - B), (0, 0)))             # (T, BP, D)
    x_flat = x.reshape(T * BP, D)
    h0 = jnp.pad(prev_hidden, ((0, BP - B), (0, 0)))          # (BP, H)
    y_flat, enc_h = seq2seq_fused(x_flat, h0, params)
    y = (y_flat[:, :d_out].reshape(T, BP, d_out)[:, :B, :]
         .transpose(1, 0, 2))                                 # (B, T, d_out)
    return y, enc_h[:B, :]


# ----------------------------------------------------------------------------
# Seq2Seq module: encoder GRU -> (stateful prev_hidden) -> decoder GRU -> fc
# ----------------------------------------------------------------------------
class Seq2SeqPallas:
    def __init__(self, params, batch, hidden_size, lane=128):
        H = hidden_size
        d_out = params["fc_w"].shape[1]
        pad = (-d_out) % lane

        def fold_bias(bih, bhh):
            # b_hh_r and b_hh_z commute with the gi add; only b_hn must stay
            # under the r-multiply inside the recurrence.
            zeros_n = jnp.zeros_like(bhh[:, 2 * H:3 * H])
            return bih + jnp.concatenate(
                [bhh[:, 0:H], bhh[:, H:2 * H], zeros_n], axis=1)

        enc_gib = fold_bias(params["enc_bih"], params["enc_bhh"])
        dec_gib = fold_bias(params["dec_bih"], params["dec_bhh"])

        self.params = {
            # fused (D_in, 6H) input-projection weight, bf16 at the MXU
            "wih_cat": jnp.concatenate(
                [params["enc_wih"], params["dec_wih"]], axis=1
            ).astype(jnp.bfloat16),
            "gib_cat": jnp.concatenate([enc_gib, dec_gib], axis=1),   # (1, 6H) f32
            "enc_whh": params["enc_whh"],                              # f32 (latency path)
            "enc_bhn": params["enc_bhh"][:, 2 * H:3 * H],
            "dec_whh": params["dec_whh"],
            "dec_bhn": params["dec_bhh"][:, 2 * H:3 * H],
            "fc_w_pad": jnp.pad(params["fc_w"], ((0, 0), (0, pad))
                                ).astype(jnp.bfloat16),
            "fc_b_pad": jnp.pad(params["fc_b"], ((0, 0), (0, pad))),
        }
        self.d_out = d_out
        # PyTorch: self.prev_hidden = torch.zeros(1, batch, hidden_size)
        # NOTE: Python-level state; do not wrap __call__ itself in jax.jit.
        self.prev_hidden = jnp.zeros((batch, hidden_size), jnp.float32)

    def __call__(self, input_seq):                       # (B, T, D_in), batch_first
        y, enc_h = seq2seq_forward(self.params, self.prev_hidden, input_seq,
                                   d_out=self.d_out)
        self.prev_hidden = enc_h                         # stateful carry
        return y


# ----------------------------------------------------------------------------
# Pure-JAX f32 reference (lax.scan GRU, PyTorch semantics) for correctness.
# ----------------------------------------------------------------------------
def gru_ref(x_tbd, h0, wih, whh, bih, bhh):
    def step(h, x_t):
        gi = x_t @ wih + bih
        gh = h @ whh + bhh
        i_r, i_z, i_n = jnp.split(gi, 3, axis=-1)
        h_r, h_z, h_n = jnp.split(gh, 3, axis=-1)
        r = jax.nn.sigmoid(i_r + h_r)
        z = jax.nn.sigmoid(i_z + h_z)
        n = jnp.tanh(i_n + r * h_n)
        h_new = (1.0 - z) * n + z * h
        return h_new, h_new
    h_last, ys = jax.lax.scan(step, h0, x_tbd)
    return ys, h_last


def seq2seq_ref(params, prev_hidden, input_seq):
    x_tbd = jnp.transpose(input_seq, (1, 0, 2))
    _, enc_h = gru_ref(x_tbd, prev_hidden,
                       params["enc_wih"], params["enc_whh"],
                       params["enc_bih"], params["enc_bhh"])
    dec_out, _ = gru_ref(x_tbd, enc_h,
                         params["dec_wih"], params["dec_whh"],
                         params["dec_bih"], params["dec_bhh"])
    y = dec_out @ params["fc_w"] + params["fc_b"]
    return jnp.transpose(y, (1, 0, 2)), enc_h


# ----------------------------------------------------------------------------
# Deterministic parameter init (PyTorch-style uniform(-1/sqrt(H), 1/sqrt(H)))
# ----------------------------------------------------------------------------
def init_params(key, d_in, hidden, d_out):
    scale = 1.0 / jnp.sqrt(hidden)

    def u(k, shape):
        return jax.random.uniform(k, shape, jnp.float32, -scale, scale)

    keys = jax.random.split(key, 11)
    return {
        "enc_wih": u(keys[0], (d_in, 3 * hidden)),
        "enc_whh": u(keys[1], (hidden, 3 * hidden)),
        "enc_bih": u(keys[2], (1, 3 * hidden)),
        "enc_bhh": u(keys[3], (1, 3 * hidden)),
        "dec_wih": u(keys[4], (d_in, 3 * hidden)),
        "dec_whh": u(keys[5], (hidden, 3 * hidden)),
        "dec_bih": u(keys[6], (1, 3 * hidden)),
        "dec_bhh": u(keys[7], (1, 3 * hidden)),
        "fc_w":    u(keys[8], (hidden, d_out)),
        "fc_b":    u(keys[9], (1, d_out)),
    }


if __name__ == "__main__":
    B, T, D_IN, HIDDEN, D_OUT = 2, 8, 16, 128, 16

    key = jax.random.PRNGKey(0)
    kp, kx1, kx2 = jax.random.split(key, 3)
    params = init_params(kp, D_IN, HIDDEN, D_OUT)
    x1 = jax.random.normal(kx1, (B, T, D_IN), jnp.float32)
    x2 = jax.random.normal(kx2, (B, T, D_IN), jnp.float32)

    model = Seq2SeqPallas(params, batch=B, hidden_size=HIDDEN)

    # Tolerance budget: the slab matmuls (input projection, fc head) run with
    # bf16 operands (f32 accumulate); the f32 recurrence propagates that ~1e-3
    # per-element rounding through T steps and across the stateful hidden
    # carry, so 2e-2 is a comfortable bound while still catching real bugs.
    RTOL = ATOL = 2e-2

    # First call (prev_hidden = zeros)
    out1 = jax.block_until_ready(model(x1))
    ref1, ref_h1 = seq2seq_ref(params, jnp.zeros((B, HIDDEN), jnp.float32), x1)
    assert out1.shape == (B, T, D_OUT)
    assert jnp.allclose(out1, ref1, rtol=RTOL, atol=ATOL), "call1 output mismatch"
    assert jnp.allclose(model.prev_hidden, ref_h1, rtol=RTOL, atol=ATOL), \
        "call1 hidden mismatch"

    # Second call exercises the stateful prev_hidden carry
    out2 = jax.block_until_ready(model(x2))
    ref2, ref_h2 = seq2seq_ref(params, ref_h1, x2)
    assert jnp.allclose(out2, ref2, rtol=RTOL, atol=ATOL), "call2 output mismatch"
    assert jnp.allclose(model.prev_hidden, ref_h2, rtol=RTOL, atol=ATOL), \
        "call2 hidden mismatch"

    print("KERNEL_OK")
</pallas_src>

<mosaic_0001>
module attributes {stable_mosaic.version = 11 : i64} {
  func.func @seq2seq_fused_kernel(%arg0: memref<64x16xf32, #tpu.memory_space<vmem>>, %arg1: memref<8x128xf32, #tpu.memory_space<vmem>>, %arg2: memref<16x768xbf16, #tpu.memory_space<vmem>>, %arg3: memref<1x768xf32, #tpu.memory_space<vmem>>, %arg4: memref<128x384xf32, #tpu.memory_space<vmem>>, %arg5: memref<1x128xf32, #tpu.memory_space<vmem>>, %arg6: memref<128x384xf32, #tpu.memory_space<vmem>>, %arg7: memref<1x128xf32, #tpu.memory_space<vmem>>, %arg8: memref<128x128xbf16, #tpu.memory_space<vmem>>, %arg9: memref<1x128xf32, #tpu.memory_space<vmem>>, %arg10: memref<64x128xf32, #tpu.memory_space<vmem>>, %arg11: memref<8x128xf32, #tpu.memory_space<vmem>>) attributes {dimension_semantics = [], scalar_prefetch = 0 : i64, scratch_operands = 0 : i64, tpu.core_type = #tpu.core_type<tc>} {
    %c0 = arith.constant 0 : index
    %c0_0 = arith.constant 0 : index
    %0 = vector.load %arg0[%c0, %c0_0] : memref<64x16xf32, #tpu.memory_space<vmem>>, vector<64x16xf32>
    %1 = arith.truncf %0 : vector<64x16xf32> to vector<64x16xbf16>
    %c0_1 = arith.constant 0 : index
    %c0_2 = arith.constant 0 : index
    %2 = vector.load %arg2[%c0_1, %c0_2] : memref<16x768xbf16, #tpu.memory_space<vmem>>, vector<16x768xbf16>
    %cst = arith.constant dense<0.000000e+00> : vector<64x768xf32>
    %3 = tpu.matmul %1, %2, %cst {dimension_numbers = #tpu.dot_dimension_numbers<[1], [0], [0], [1], [0, 0, 1, 1], [], []>} : vector<64x16xbf16>, vector<16x768xbf16>, vector<64x768xf32> -> vector<64x768xf32>
    %c0_3 = arith.constant 0 : index
    %c0_4 = arith.constant 0 : index
    %4 = vector.load %arg3[%c0_3, %c0_4] : memref<1x768xf32, #tpu.memory_space<vmem>>, vector<1x768xf32>
    %5 = vector.broadcast %4 : vector<1x768xf32> to vector<64x768xf32>
    %6 = arith.addf %3, %5 : vector<64x768xf32>
    %7 = vector.extract_strided_slice %6 {offsets = [0, 0], sizes = [64, 384], strides = [1, 1]} : vector<64x768xf32> to vector<64x384xf32>
    %8 = vector.extract_strided_slice %6 {offsets = [0, 384], sizes = [64, 384], strides = [1, 1]} : vector<64x768xf32> to vector<64x384xf32>
    %c0_5 = arith.constant 0 : index
    %c0_6 = arith.constant 0 : index
    %9 = vector.load %arg1[%c0_5, %c0_6] : memref<8x128xf32, #tpu.memory_space<vmem>>, vector<8x128xf32>
    %c0_7 = arith.constant 0 : index
    %c0_8 = arith.constant 0 : index
    %10 = vector.load %arg4[%c0_7, %c0_8] : memref<128x384xf32, #tpu.memory_space<vmem>>, vector<128x384xf32>
    %c0_9 = arith.constant 0 : index
    %c0_10 = arith.constant 0 : index
    %11 = vector.load %arg5[%c0_9, %c0_10] : memref<1x128xf32, #tpu.memory_space<vmem>>, vector<1x128xf32>
    %12 = vector.shape_cast %11 : vector<1x128xf32> to vector<1x128xf32>
    %13 = vector.broadcast %12 : vector<1x128xf32> to vector<8x128xf32>
    %14 = vector.extract_strided_slice %7 {offsets = [0, 0], sizes = [8, 384], strides = [1, 1]} : vector<64x384xf32> to vector<8x384xf32>
    %cst_11 = arith.constant dense<0.000000e+00> : vector<8x384xf32>
    %15 = tpu.matmul %9, %10, %cst_11 {dimension_numbers = #tpu.dot_dimension_numbers<[1], [0], [0], [1], [0, 0, 1, 1], [], []>} : vector<8x128xf32>, vector<128x384xf32>, vector<8x384xf32> -> vector<8x384xf32>
    %16 = vector.extract_strided_slice %14 {offsets = [0, 0], sizes = [8, 128], strides = [1, 1]} : vector<8x384xf32> to vector<8x128xf32>
    %17 = vector.extract_strided_slice %15 {offsets = [0, 0], sizes = [8, 128], strides = [1, 1]} : vector<8x384xf32> to vector<8x128xf32>
    %18 = arith.addf %16, %17 : vector<8x128xf32>
    %19 = arith.negf %18 : vector<8x128xf32>
    %20 = math.exp %19 : vector<8x128xf32>
    %cst_12 = arith.constant 1.000000e+00 : f32
    %21 = vector.broadcast %cst_12 : f32 to vector<8x128xf32>
    %22 = arith.addf %21, %20 : vector<8x128xf32>
    %23 = arith.divf %21, %22 : vector<8x128xf32>
    %24 = vector.extract_strided_slice %14 {offsets = [0, 128], sizes = [8, 128], strides = [1, 1]} : vector<8x384xf32> to vector<8x128xf32>
    %25 = vector.extract_strided_slice %15 {offsets = [0, 128], sizes = [8, 128], strides = [1, 1]} : vector<8x384xf32> to vector<8x128xf32>
    %26 = arith.addf %24, %25 : vector<8x128xf32>
    %27 = arith.negf %26 : vector<8x128xf32>
    %28 = math.exp %27 : vector<8x128xf32>
    %cst_13 = arith.constant 1.000000e+00 : f32
    %29 = vector.broadcast %cst_13 : f32 to vector<8x128xf32>
    %30 = arith.addf %29, %28 : vector<8x128xf32>
    %31 = arith.divf %29, %30 : vector<8x128xf32>
    %32 = vector.extract_strided_slice %14 {offsets = [0, 256], sizes = [8, 128], strides = [1, 1]} : vector<8x384xf32> to vector<8x128xf32>
    %33 = vector.extract_strided_slice %15 {offsets = [0, 256], sizes = [8, 128], strides = [1, 1]} : vector<8x384xf32> to vector<8x128xf32>
    %34 = arith.addf %33, %13 : vector<8x128xf32>
    %35 = arith.mulf %23, %34 : vector<8x128xf32>
    %36 = arith.addf %32, %35 : vector<8x128xf32>
    %37 = math.tanh %36 : vector<8x128xf32>
    %38 = arith.subf %9, %37 : vector<8x128xf32>
    %39 = arith.mulf %31, %38 : vector<8x128xf32>
    %40 = arith.addf %37, %39 : vector<8x128xf32>
    %41 = vector.extract_strided_slice %7 {offsets = [8, 0], sizes = [8, 384], strides = [1, 1]} : vector<64x384xf32> to vector<8x384xf32>
    %cst_14 = arith.constant dense<0.000000e+00> : vector<8x384xf32>
    %42 = tpu.matmul %40, %10, %cst_14 {dimension_numbers = #tpu.dot_dimension_numbers<[1], [0], [0], [1], [0, 0, 1, 1], [], []>} : vector<8x128xf32>, vector<128x384xf32>, vector<8x384xf32> -> vector<8x384xf32>
    %43 = vector.extract_strided_slice %41 {offsets = [0, 0], sizes = [8, 128], strides = [1, 1]} : vector<8x384xf32> to vector<8x128xf32>
    %44 = vector.extract_strided_slice %42 {offsets = [0, 0], sizes = [8, 128], strides = [1, 1]} : vector<8x384xf32> to vector<8x128xf32>
    %45 = arith.addf %43, %44 : vector<8x128xf32>
    %46 = arith.negf %45 : vector<8x128xf32>
    %47 = math.exp %46 : vector<8x128xf32>
    %cst_15 = arith.constant 1.000000e+00 : f32
    %48 = vector.broadcast %cst_15 : f32 to vector<8x128xf32>
    %49 = arith.addf %48, %47 : vector<8x128xf32>
    %50 = arith.divf %48, %49 : vector<8x128xf32>
    %51 = vector.extract_strided_slice %41 {offsets = [0, 128], sizes = [8, 128], strides = [1, 1]} : vector<8x384xf32> to vector<8x128xf32>
    %52 = vector.extract_strided_slice %42 {offsets = [0, 128], sizes = [8, 128], strides = [1, 1]} : vector<8x384xf32> to vector<8x128xf32>
    %53 = arith.addf %51, %52 : vector<8x128xf32>
    %54 = arith.negf %53 : vector<8x128xf32>
    %55 = math.exp %54 : vector<8x128xf32>
    %cst_16 = arith.constant 1.000000e+00 : f32
    %56 = vector.broadcast %cst_16 : f32 to vector<8x128xf32>
    %57 = arith.addf %56, %55 : vector<8x128xf32>
    %58 = arith.divf %56, %57 : vector<8x128xf32>
    %59 = vector.extract_strided_slice %41 {offsets = [0, 256], sizes = [8, 128], strides = [1, 1]} : vector<8x384xf32> to vector<8x128xf32>
    %60 = vector.extract_strided_slice %42 {offsets = [0, 256], sizes = [8, 128], strides = [1, 1]} : vector<8x384xf32> to vector<8x128xf32>
    %61 = arith.addf %60, %13 : vector<8x128xf32>
    %62 = arith.mulf %50, %61 : vector<8x128xf32>
    %63 = arith.addf %59, %62 : vector<8x128xf32>
    %64 = math.tanh %63 : vector<8x128xf32>
    %65 = arith.subf %40, %64 : vector<8x128xf32>
    %66 = arith.mulf %58, %65 : vector<8x128xf32>
    %67 = arith.addf %64, %66 : vector<8x128xf32>
    %68 = vector.extract_strided_slice %7 {offsets = [16, 0], sizes = [8, 384], strides = [1, 1]} : vector<64x384xf32> to vector<8x384xf32>
    %cst_17 = arith.constant dense<0.000000e+00> : vector<8x384xf32>
    %69 = tpu.matmul %67, %10, %cst_17 {dimension_numbers = #tpu.dot_dimension_numbers<[1], [0], [0], [1], [0, 0, 1, 1], [], []>} : vector<8x128xf32>, vector<128x384xf32>, vector<8x384xf32> -> vector<8x384xf32>
    %70 = vector.extract_strided_slice %68 {offsets = [0, 0], sizes = [8, 128], strides = [1, 1]} : vector<8x384xf32> to vector<8x128xf32>
    %71 = vector.extract_strided_slice %69 {offsets = [0, 0], sizes = [8, 128], strides = [1, 1]} : vector<8x384xf32> to vector<8x128xf32>
    %72 = arith.addf %70, %71 : vector<8x128xf32>
    %73 = arith.negf %72 : vector<8x128xf32>
    %74 = math.exp %73 : vector<8x128xf32>
    %cst_18 = arith.constant 1.000000e+00 : f32
    %75 = vector.broadcast %cst_18 : f32 to vector<8x128xf32>
    %76 = arith.addf %75, %74 : vector<8x128xf32>
    %77 = arith.divf %75, %76 : vector<8x128xf32>
    %78 = vector.extract_strided_slice %68 {offsets = [0, 128], sizes = [8, 128], strides = [1, 1]} : vector<8x384xf32> to vector<8x128xf32>
    %79 = vector.extract_strided_slice %69 {offsets = [0, 128], sizes = [8, 128], strides = [1, 1]} : vector<8x384xf32> to vector<8x128xf32>
    %80 = arith.addf %78, %79 : vector<8x128xf32>
    %81 = arith.negf %80 : vector<8x128xf32>
    %82 = math.exp %81 : vector<8x128xf32>
    %cst_19 = arith.constant 1.000000e+00 : f32
    %83 = vector.broadcast %cst_19 : f32 to vector<8x128xf32>
    %84 = arith.addf %83, %82 : vector<8x128xf32>
    %85 = arith.divf %83, %84 : vector<8x128xf32>
    %86 = vector.extract_strided_slice %68 {offsets = [0, 256], sizes = [8, 128], strides = [1, 1]} : vector<8x384xf32> to vector<8x128xf32>
    %87 = vector.extract_strided_slice %69 {offsets = [0, 256], sizes = [8, 128], strides = [1, 1]} : vector<8x384xf32> to vector<8x128xf32>
    %88 = arith.addf %87, %13 : vector<8x128xf32>
    %89 = arith.mulf %77, %88 : vector<8x128xf32>
    %90 = arith.addf %86, %89 : vector<8x128xf32>
    %91 = math.tanh %90 : vector<8x128xf32>
    %92 = arith.subf %67, %91 : vector<8x128xf32>
    %93 = arith.mulf %85, %92 : vector<8x128xf32>
    %94 = arith.addf %91, %93 : vector<8x128xf32>
    %95 = vector.extract_strided_slice %7 {offsets = [24, 0], sizes = [8, 384], strides = [1, 1]} : vector<64x384xf32> to vector<8x384xf32>
    %cst_20 = arith.constant dense<0.000000e+00> : vector<8x384xf32>
    %96 = tpu.matmul %94, %10, %cst_20 {dimension_numbers = #tpu.dot_dimension_numbers<[1], [0], [0], [1], [0, 0, 1, 1], [], []>} : vector<8x128xf32>, vector<128x384xf32>, vector<8x384xf32> -> vector<8x384xf32>
    %97 = vector.extract_strided_slice %95 {offsets = [0, 0], sizes = [8, 128], strides = [1, 1]} : vector<8x384xf32> to vector<8x128xf32>
    %98 = vector.extract_strided_slice %96 {offsets = [0, 0], sizes = [8, 128], strides = [1, 1]} : vector<8x384xf32> to vector<8x128xf32>
    %99 = arith.addf %97, %98 : vector<8x128xf32>
    %100 = arith.negf %99 : vector<8x128xf32>
    %101 = math.exp %100 : vector<8x128xf32>
    %cst_21 = arith.constant 1.000000e+00 : f32
    %102 = vector.broadcast %cst_21 : f32 to vector<8x128xf32>
    %103 = arith.addf %102, %101 : vector<8x128xf32>
    %104 = arith.divf %102, %103 : vector<8x128xf32>
    %105 = vector.extract_strided_slice %95 {offsets = [0, 128], sizes = [8, 128], strides = [1, 1]} : vector<8x384xf32> to vector<8x128xf32>
    %106 = vector.extract_strided_slice %96 {offsets = [0, 128], sizes = [8, 128], strides = [1, 1]} : vector<8x384xf32> to vector<8x128xf32>
    %107 = arith.addf %105, %106 : vector<8x128xf32>
    %108 = arith.negf %107 : vector<8x128xf32>
    %109 = math.exp %108 : vector<8x128xf32>
    %cst_22 = arith.constant 1.000000e+00 : f32
    %110 = vector.broadcast %cst_22 : f32 to vector<8x128xf32>
    %111 = arith.addf %110, %109 : vector<8x128xf32>
    %112 = arith.divf %110, %111 : vector<8x128xf32>
    %113 = vector.extract_strided_slice %95 {offsets = [0, 256], sizes = [8, 128], strides = [1, 1]} : vector<8x384xf32> to vector<8x128xf32>
    %114 = vector.extract_strided_slice %96 {offsets = [0, 256], sizes = [8, 128], strides = [1, 1]} : vector<8x384xf32> to vector<8x128xf32>
    %115 = arith.addf %114, %13 : vector<8x128xf32>
    %116 = arith.mulf %104, %115 : vector<8x128xf32>
    %117 = arith.addf %113, %116 : vector<8x128xf32>
    %118 = math.tanh %117 : vector<8x128xf32>
    %119 = arith.subf %94, %118 : vector<8x128xf32>
    %120 = arith.mulf %112, %119 : vector<8x128xf32>
    %121 = arith.addf %118, %120 : vector<8x128xf32>
    %122 = vector.extract_strided_slice %7 {offsets = [32, 0], sizes = [8, 384], strides = [1, 1]} : vector<64x384xf32> to vector<8x384xf32>
    %cst_23 = arith.constant dense<0.000000e+00> : vector<8x384xf32>
    %123 = tpu.matmul %121, %10, %cst_23 {dimension_numbers = #tpu.dot_dimension_numbers<[1], [0], [0], [1], [0, 0, 1, 1], [], []>} : vector<8x128xf32>, vector<128x384xf32>, vector<8x384xf32> -> vector<8x384xf32>
    %124 = vector.extract_strided_slice %122 {offsets = [0, 0], sizes = [8, 128], strides = [1, 1]} : vector<8x384xf32> to vector<8x128xf32>
    %125 = vector.extract_strided_slice %123 {offsets = [0, 0], sizes = [8, 128], strides = [1, 1]} : vector<8x384xf32> to vector<8x128xf32>
    %126 = arith.addf %124, %125 : vector<8x128xf32>
    %127 = arith.negf %126 : vector<8x128xf32>
    %128 = math.exp %127 : vector<8x128xf32>
    %cst_24 = arith.constant 1.000000e+00 : f32
    %129 = vector.broadcast %cst_24 : f32 to vector<8x128xf32>
    %130 = arith.addf %129, %128 : vector<8x128xf32>
    %131 = arith.divf %129, %130 : vector<8x128xf32>
    %132 = vector.extract_strided_slice %122 {offsets = [0, 128], sizes = [8, 128], strides = [1, 1]} : vector<8x384xf32> to vector<8x128xf32>
    %133 = vector.extract_strided_slice %123 {offsets = [0, 128], sizes = [8, 128], strides = [1, 1]} : vector<8x384xf32> to vector<8x128xf32>
    %134 = arith.addf %132, %133 : vector<8x128xf32>
    %135 = arith.negf %134 : vector<8x128xf32>
    %136 = math.exp %135 : vector<8x128xf32>
    %cst_25 = arith.constant 1.000000e+00 : f32
    %137 = vector.broadcast %cst_25 : f32 to vector<8x128xf32>
    %138 = arith.addf %137, %136 : vector<8x128xf32>
    %139 = arith.divf %137, %138 : vector<8x128xf32>
    %140 = vector.extract_strided_slice %122 {offsets = [0, 256], sizes = [8, 128], strides = [1, 1]} : vector<8x384xf32> to vector<8x128xf32>
    %141 = vector.extract_strided_slice %123 {offsets = [0, 256], sizes = [8, 128], strides = [1, 1]} : vector<8x384xf32> to vector<8x128xf32>
    %142 = arith.addf %141, %13 : vector<8x128xf32>
    %143 = arith.mulf %131, %142 : vector<8x128xf32>
    %144 = arith.addf %140, %143 : vector<8x128xf32>
    %145 = math.tanh %144 : vector<8x128xf32>
    %146 = arith.subf %121, %145 : vector<8x128xf32>
    %147 = arith.mulf %139, %146 : vector<8x128xf32>
    %148 = arith.addf %145, %147 : vector<8x128xf32>
    %149 = vector.extract_strided_slice %7 {offsets = [40, 0], sizes = [8, 384], strides = [1, 1]} : vector<64x384xf32> to vector<8x384xf32>
    %cst_26 = arith.constant dense<0.000000e+00> : vector<8x384xf32>
    %150 = tpu.matmul %148, %10, %cst_26 {dimension_numbers = #tpu.dot_dimension_numbers<[1], [0], [0], [1], [0, 0, 1, 1], [], []>} : vector<8x128xf32>, vector<128x384xf32>, vector<8x384xf32> -> vector<8x384xf32>
    %151 = vector.extract_strided_slice %149 {offsets = [0, 0], sizes = [8, 128], strides = [1, 1]} : vector<8x384xf32> to vector<8x128xf32>
    %152 = vector.extract_strided_slice %150 {offsets = [0, 0], sizes = [8, 128], strides = [1, 1]} : vector<8x384xf32> to vector<8x128xf32>
    %153 = arith.addf %151, %152 : vector<8x128xf32>
    %154 = arith.negf %153 : vector<8x128xf32>
    %155 = math.exp %154 : vector<8x128xf32>
    %cst_27 = arith.constant 1.000000e+00 : f32
    %156 = vector.broadcast %cst_27 : f32 to vector<8x128xf32>
    %157 = arith.addf %156, %155 : vector<8x128xf32>
    %158 = arith.divf %156, %157 : vector<8x128xf32>
    %159 = vector.extract_strided_slice %149 {offsets = [0, 128], sizes = [8, 128], strides = [1, 1]} : vector<8x384xf32> to vector<8x128xf32>
    %160 = vector.extract_strided_slice %150 {offsets = [0, 128], sizes = [8, 128], strides = [1, 1]} : vector<8x384xf32> to vector<8x128xf32>
    %161 = arith.addf %159, %160 : vector<8x128xf32>
    %162 = arith.negf %161 : vector<8x128xf32>
    %163 = math.exp %162 : vector<8x128xf32>
    %cst_28 = arith.constant 1.000000e+00 : f32
    %164 = vector.broadcast %cst_28 : f32 to vector<8x128xf32>
    %165 = arith.addf %164, %163 : vector<8x128xf32>
    %166 = arith.divf %164, %165 : vector<8x128xf32>
    %167 = vector.extract_strided_slice %149 {offsets = [0, 256], sizes = [8, 128], strides = [1, 1]} : vector<8x384xf32> to vector<8x128xf32>
    %168 = vector.extract_strided_slice %150 {offsets = [0, 256], sizes = [8, 128], strides = [1, 1]} : vector<8x384xf32> to vector<8x128xf32>
    %169 = arith.addf %168, %13 : vector<8x128xf32>
    %170 = arith.mulf %158, %169 : vector<8x128xf32>
    %171 = arith.addf %167, %170 : vector<8x128xf32>
    %172 = math.tanh %171 : vector<8x128xf32>
    %173 = arith.subf %148, %172 : vector<8x128xf32>
    %174 = arith.mulf %166, %173 : vector<8x128xf32>
    %175 = arith.addf %172, %174 : vector<8x128xf32>
    %176 = vector.extract_strided_slice %7 {offsets = [48, 0], sizes = [8, 384], strides = [1, 1]} : vector<64x384xf32> to vector<8x384xf32>
    %cst_29 = arith.constant dense<0.000000e+00> : vector<8x384xf32>
    %177 = tpu.matmul %175, %10, %cst_29 {dimension_numbers = #tpu.dot_dimension_numbers<[1], [0], [0], [1], [0, 0, 1, 1], [], []>} : vector<8x128xf32>, vector<128x384xf32>, vector<8x384xf32> -> vector<8x384xf32>
    %178 = vector.extract_strided_slice %176 {offsets = [0, 0], sizes = [8, 128], strides = [1, 1]} : vector<8x384xf32> to vector<8x128xf32>
    %179 = vector.extract_strided_slice %177 {offsets = [0, 0], sizes = [8, 128], strides = [1, 1]} : vector<8x384xf32> to vector<8x128xf32>
    %180 = arith.addf %178, %179 : vector<8x128xf32>
    %181 = arith.negf %180 : vector<8x128xf32>
    %182 = math.exp %181 : vector<8x128xf32>
    %cst_30 = arith.constant 1.000000e+00 : f32
    %183 = vector.broadcast %cst_30 : f32 to vector<8x128xf32>
    %184 = arith.addf %183, %182 : vector<8x128xf32>
    %185 = arith.divf %183, %184 : vector<8x128xf32>
    %186 = vector.extract_strided_slice %176 {offsets = [0, 128], sizes = [8, 128], strides = [1, 1]} : vector<8x384xf32> to vector<8x128xf32>
    %187 = vector.extract_strided_slice %177 {offsets = [0, 128], sizes = [8, 128], strides = [1, 1]} : vector<8x384xf32> to vector<8x128xf32>
    %188 = arith.addf %186, %187 : vector<8x128xf32>
    %189 = arith.negf %188 : vector<8x128xf32>
    %190 = math.exp %189 : vector<8x128xf32>
    %cst_31 = arith.constant 1.000000e+00 : f32
    %191 = vector.broadcast %cst_31 : f32 to vector<8x128xf32>
    %192 = arith.addf %191, %190 : vector<8x128xf32>
    %193 = arith.divf %191, %192 : vector<8x128xf32>
    %194 = vector.extract_strided_slice %176 {offsets = [0, 256], sizes = [8, 128], strides = [1, 1]} : vector<8x384xf32> to vector<8x128xf32>
    %195 = vector.extract_strided_slice %177 {offsets = [0, 256], sizes = [8, 128], strides = [1, 1]} : vector<8x384xf32> to vector<8x128xf32>
    %196 = arith.addf %195, %13 : vector<8x128xf32>
    %197 = arith.mulf %185, %196 : vector<8x128xf32>
    %198 = arith.addf %194, %197 : vector<8x128xf32>
    %199 = math.tanh %198 : vector<8x128xf32>
    %200 = arith.subf %175, %199 : vector<8x128xf32>
    %201 = arith.mulf %193, %200 : vector<8x128xf32>
    %202 = arith.addf %199, %201 : vector<8x128xf32>
    %203 = vector.extract_strided_slice %7 {offsets = [56, 0], sizes = [8, 384], strides = [1, 1]} : vector<64x384xf32> to vector<8x384xf32>
    %cst_32 = arith.constant dense<0.000000e+00> : vector<8x384xf32>
    %204 = tpu.matmul %202, %10, %cst_32 {dimension_numbers = #tpu.dot_dimension_numbers<[1], [0], [0], [1], [0, 0, 1, 1], [], []>} : vector<8x128xf32>, vector<128x384xf32>, vector<8x384xf32> -> vector<8x384xf32>
    %205 = vector.extract_strided_slice %203 {offsets = [0, 0], sizes = [8, 128], strides = [1, 1]} : vector<8x384xf32> to vector<8x128xf32>
    %206 = vector.extract_strided_slice %204 {offsets = [0, 0], sizes = [8, 128], strides = [1, 1]} : vector<8x384xf32> to vector<8x128xf32>
    %207 = arith.addf %205, %206 : vector<8x128xf32>
    %208 = arith.negf %207 : vector<8x128xf32>
    %209 = math.exp %208 : vector<8x128xf32>
    %cst_33 = arith.constant 1.000000e+00 : f32
    %210 = vector.broadcast %cst_33 : f32 to vector<8x128xf32>
    %211 = arith.addf %210, %209 : vector<8x128xf32>
    %212 = arith.divf %210, %211 : vector<8x128xf32>
    %213 = vector.extract_strided_slice %203 {offsets = [0, 128], sizes = [8, 128], strides = [1, 1]} : vector<8x384xf32> to vector<8x128xf32>
    %214 = vector.extract_strided_slice %204 {offsets = [0, 128], sizes = [8, 128], strides = [1, 1]} : vector<8x384xf32> to vector<8x128xf32>
    %215 = arith.addf %213, %214 : vector<8x128xf32>
    %216 = arith.negf %215 : vector<8x128xf32>
    %217 = math.exp %216 : vector<8x128xf32>
    %cst_34 = arith.constant 1.000000e+00 : f32
    %218 = vector.broadcast %cst_34 : f32 to vector<8x128xf32>
    %219 = arith.addf %218, %217 : vector<8x128xf32>
    %220 = arith.divf %218, %219 : vector<8x128xf32>
    %221 = vector.extract_strided_slice %203 {offsets = [0, 256], sizes = [8, 128], strides = [1, 1]} : vector<8x384xf32> to vector<8x128xf32>
    %222 = vector.extract_strided_slice %204 {offsets = [0, 256], sizes = [8, 128], strides = [1, 1]} : vector<8x384xf32> to vector<8x128xf32>
    %223 = arith.addf %222, %13 : vector<8x128xf32>
    %224 = arith.mulf %212, %223 : vector<8x128xf32>
    %225 = arith.addf %221, %224 : vector<8x128xf32>
    %226 = math.tanh %225 : vector<8x128xf32>
    %227 = arith.subf %202, %226 : vector<8x128xf32>
    %228 = arith.mulf %220, %227 : vector<8x128xf32>
    %229 = arith.addf %226, %228 : vector<8x128xf32>
    %c0_35 = arith.constant 0 : index
    %c0_36 = arith.constant 0 : index
    %230 = vector.load %arg11[%c0_35, %c0_36] : memref<8x128xf32, #tpu.memory_space<vmem>>, vector<8x128xf32>
    tpu.vector_store %arg11[%c0_35, %c0_36], %229 {strides = array<i32>} : memref<8x128xf32, #tpu.memory_space<vmem>>, vector<8x128xf32>,
    %c0_37 = arith.constant 0 : index
    %c0_38 = arith.constant 0 : index
    %231 = vector.load %arg6[%c0_37, %c0_38] : memref<128x384xf32, #tpu.memory_space<vmem>>, vector<128x384xf32>
    %c0_39 = arith.constant 0 : index
    %c0_40 = arith.constant 0 : index
    %232 = vector.load %arg7[%c0_39, %c0_40] : memref<1x128xf32, #tpu.memory_space<vmem>>, vector<1x128xf32>
    %233 = vector.shape_cast %232 : vector<1x128xf32> to vector<1x128xf32>
    %234 = vector.broadcast %233 : vector<1x128xf32> to vector<8x128xf32>
    %235 = vector.extract_strided_slice %8 {offsets = [0, 0], sizes = [8, 384], strides = [1, 1]} : vector<64x384xf32> to vector<8x384xf32>
    %cst_41 = arith.constant dense<0.000000e+00> : vector<8x384xf32>
    %236 = tpu.matmul %229, %231, %cst_41 {dimension_numbers = #tpu.dot_dimension_numbers<[1], [0], [0], [1], [0, 0, 1, 1], [], []>} : vector<8x128xf32>, vector<128x384xf32>, vector<8x384xf32> -> vector<8x384xf32>
    %237 = vector.extract_strided_slice %235 {offsets = [0, 0], sizes = [8, 128], strides = [1, 1]} : vector<8x384xf32> to vector<8x128xf32>
    %238 = vector.extract_strided_slice %236 {offsets = [0, 0], sizes = [8, 128], strides = [1, 1]} : vector<8x384xf32> to vector<8x128xf32>
    %239 = arith.addf %237, %238 : vector<8x128xf32>
    %240 = arith.negf %239 : vector<8x128xf32>
    %241 = math.exp %240 : vector<8x128xf32>
    %cst_42 = arith.constant 1.000000e+00 : f32
    %242 = vector.broadcast %cst_42 : f32 to vector<8x128xf32>
    %243 = arith.addf %242, %241 : vector<8x128xf32>
    %244 = arith.divf %242, %243 : vector<8x128xf32>
    %245 = vector.extract_strided_slice %235 {offsets = [0, 128], sizes = [8, 128], strides = [1, 1]} : vector<8x384xf32> to vector<8x128xf32>
    %246 = vector.extract_strided_slice %236 {offsets = [0, 128], sizes = [8, 128], strides = [1, 1]} : vector<8x384xf32> to vector<8x128xf32>
    %247 = arith.addf %245, %246 : vector<8x128xf32>
    %248 = arith.negf %247 : vector<8x128xf32>
    %249 = math.exp %248 : vector<8x128xf32>
    %cst_43 = arith.constant 1.000000e+00 : f32
    %250 = vector.broadcast %cst_43 : f32 to vector<8x128xf32>
    %251 = arith.addf %250, %249 : vector<8x128xf32>
    %252 = arith.divf %250, %251 : vector<8x128xf32>
    %253 = vector.extract_strided_slice %235 {offsets = [0, 256], sizes = [8, 128], strides = [1, 1]} : vector<8x384xf32> to vector<8x128xf32>
    %254 = vector.extract_strided_slice %236 {offsets = [0, 256], sizes = [8, 128], strides = [1, 1]} : vector<8x384xf32> to vector<8x128xf32>
    %255 = arith.addf %254, %234 : vector<8x128xf32>
    %256 = arith.mulf %244, %255 : vector<8x128xf32>
    %257 = arith.addf %253, %256 : vector<8x128xf32>
    %258 = math.tanh %257 : vector<8x128xf32>
    %259 = arith.subf %229, %258 : vector<8x128xf32>
    %260 = arith.mulf %252, %259 : vector<8x128xf32>
    %261 = arith.addf %258, %260 : vector<8x128xf32>
    %262 = vector.extract_strided_slice %8 {offsets = [8, 0], sizes = [8, 384], strides = [1, 1]} : vector<64x384xf32> to vector<8x384xf32>
    %cst_44 = arith.constant dense<0.000000e+00> : vector<8x384xf32>
    %263 = tpu.matmul %261, %231, %cst_44 {dimension_numbers = #tpu.dot_dimension_numbers<[1], [0], [0], [1], [0, 0, 1, 1], [], []>} : vector<8x128xf32>, vector<128x384xf32>, vector<8x384xf32> -> vector<8x384xf32>
    %264 = vector.extract_strided_slice %262 {offsets = [0, 0], sizes = [8, 128], strides = [1, 1]} : vector<8x384xf32> to vector<8x128xf32>
    %265 = vector.extract_strided_slice %263 {offsets = [0, 0], sizes = [8, 128], strides = [1, 1]} : vector<8x384xf32> to vector<8x128xf32>
    %266 = arith.addf %264, %265 : vector<8x128xf32>
    %267 = arith.negf %266 : vector<8x128xf32>
    %268 = math.exp %267 : vector<8x128xf32>
    %cst_45 = arith.constant 1.000000e+00 : f32
    %269 = vector.broadcast %cst_45 : f32 to vector<8x128xf32>
    %270 = arith.addf %269, %268 : vector<8x128xf32>
    %271 = arith.divf %269, %270 : vector<8x128xf32>
    %272 = vector.extract_strided_slice %262 {offsets = [0, 128], sizes = [8, 128], strides = [1, 1]} : vector<8x384xf32> to vector<8x128xf32>
    %273 = vector.extract_strided_slice %263 {offsets = [0, 128], sizes = [8, 128], strides = [1, 1]} : vector<8x384xf32> to vector<8x128xf32>
    %274 = arith.addf %272, %273 : vector<8x128xf32>
    %275 = arith.negf %274 : vector<8x128xf32>
    %276 = math.exp %275 : vector<8x128xf32>
    %cst_46 = arith.constant 1.000000e+00 : f32
    %277 = vector.broadcast %cst_46 : f32 to vector<8x128xf32>
    %278 = arith.addf %277, %276 : vector<8x128xf32>
    %279 = arith.divf %277, %278 : vector<8x128xf32>
    %280 = vector.extract_strided_slice %262 {offsets = [0, 256], sizes = [8, 128], strides = [1, 1]} : vector<8x384xf32> to vector<8x128xf32>
    %281 = vector.extract_strided_slice %263 {offsets = [0, 256], sizes = [8, 128], strides = [1, 1]} : vector<8x384xf32> to vector<8x128xf32>
    %282 = arith.addf %281, %234 : vector<8x128xf32>
    %283 = arith.mulf %271, %282 : vector<8x128xf32>
    %284 = arith.addf %280, %283 : vector<8x128xf32>
    %285 = math.tanh %284 : vector<8x128xf32>
    %286 = arith.subf %261, %285 : vector<8x128xf32>
    %287 = arith.mulf %279, %286 : vector<8x128xf32>
    %288 = arith.addf %285, %287 : vector<8x128xf32>
    %289 = vector.extract_strided_slice %8 {offsets = [16, 0], sizes = [8, 384], strides = [1, 1]} : vector<64x384xf32> to vector<8x384xf32>
    %cst_47 = arith.constant dense<0.000000e+00> : vector<8x384xf32>
    %290 = tpu.matmul %288, %231, %cst_47 {dimension_numbers = #tpu.dot_dimension_numbers<[1], [0], [0], [1], [0, 0, 1, 1], [], []>} : vector<8x128xf32>, vector<128x384xf32>, vector<8x384xf32> -> vector<8x384xf32>
    %291 = vector.extract_strided_slice %289 {offsets = [0, 0], sizes = [8, 128], strides = [1, 1]} : vector<8x384xf32> to vector<8x128xf32>
    %292 = vector.extract_strided_slice %290 {offsets = [0, 0], sizes = [8, 128], strides = [1, 1]} : vector<8x384xf32> to vector<8x128xf32>
    %293 = arith.addf %291, %292 : vector<8x128xf32>
    %294 = arith.negf %293 : vector<8x128xf32>
    %295 = math.exp %294 : vector<8x128xf32>
    %cst_48 = arith.constant 1.000000e+00 : f32
    %296 = vector.broadcast %cst_48 : f32 to vector<8x128xf32>
    %297 = arith.addf %296, %295 : vector<8x128xf32>
    %298 = arith.divf %296, %297 : vector<8x128xf32>
    %299 = vector.extract_strided_slice %289 {offsets = [0, 128], sizes = [8, 128], strides = [1, 1]} : vector<8x384xf32> to vector<8x128xf32>
    %300 = vector.extract_strided_slice %290 {offsets = [0, 128], sizes = [8, 128], strides = [1, 1]} : vector<8x384xf32> to vector<8x128xf32>
    %301 = arith.addf %299, %300 : vector<8x128xf32>
    %302 = arith.negf %301 : vector<8x128xf32>
    %303 = math.exp %302 : vector<8x128xf32>
    %cst_49 = arith.constant 1.000000e+00 : f32
    %304 = vector.broadcast %cst_49 : f32 to vector<8x128xf32>
    %305 = arith.addf %304, %303 : vector<8x128xf32>
    %306 = arith.divf %304, %305 : vector<8x128xf32>
    %307 = vector.extract_strided_slice %289 {offsets = [0, 256], sizes = [8, 128], strides = [1, 1]} : vector<8x384xf32> to vector<8x128xf32>
    %308 = vector.extract_strided_slice %290 {offsets = [0, 256], sizes = [8, 128], strides = [1, 1]} : vector<8x384xf32> to vector<8x128xf32>
    %309 = arith.addf %308, %234 : vector<8x128xf32>
    %310 = arith.mulf %298, %309 : vector<8x128xf32>
    %311 = arith.addf %307, %310 : vector<8x128xf32>
    %312 = math.tanh %311 : vector<8x128xf32>
    %313 = arith.subf %288, %312 : vector<8x128xf32>
    %314 = arith.mulf %306, %313 : vector<8x128xf32>
    %315 = arith.addf %312, %314 : vector<8x128xf32>
    %316 = vector.extract_strided_slice %8 {offsets = [24, 0], sizes = [8, 384], strides = [1, 1]} : vector<64x384xf32> to vector<8x384xf32>
    %cst_50 = arith.constant dense<0.000000e+00> : vector<8x384xf32>
    %317 = tpu.matmul %315, %231, %cst_50 {dimension_numbers = #tpu.dot_dimension_numbers<[1], [0], [0], [1], [0, 0, 1, 1], [], []>} : vector<8x128xf32>, vector<128x384xf32>, vector<8x384xf32> -> vector<8x384xf32>
    %318 = vector.extract_strided_slice %316 {offsets = [0, 0], sizes = [8, 128], strides = [1, 1]} : vector<8x384xf32> to vector<8x128xf32>
    %319 = vector.extract_strided_slice %317 {offsets = [0, 0], sizes = [8, 128], strides = [1, 1]} : vector<8x384xf32> to vector<8x128xf32>
    %320 = arith.addf %318, %319 : vector<8x128xf32>
    %321 = arith.negf %320 : vector<8x128xf32>
    %322 = math.exp %321 : vector<8x128xf32>
    %cst_51 = arith.constant 1.000000e+00 : f32
    %323 = vector.broadcast %cst_51 : f32 to vector<8x128xf32>
    %324 = arith.addf %323, %322 : vector<8x128xf32>
    %325 = arith.divf %323, %324 : vector<8x128xf32>
    %326 = vector.extract_strided_slice %316 {offsets = [0, 128], sizes = [8, 128], strides = [1, 1]} : vector<8x384xf32> to vector<8x128xf32>
    %327 = vector.extract_strided_slice %317 {offsets = [0, 128], sizes = [8, 128], strides = [1, 1]} : vector<8x384xf32> to vector<8x128xf32>
    %328 = arith.addf %326, %327 : vector<8x128xf32>
    %329 = arith.negf %328 : vector<8x128xf32>
    %330 = math.exp %329 : vector<8x128xf32>
    %cst_52 = arith.constant 1.000000e+00 : f32
    %331 = vector.broadcast %cst_52 : f32 to vector<8x128xf32>
    %332 = arith.addf %331, %330 : vector<8x128xf32>
    %333 = arith.divf %331, %332 : vector<8x128xf32>
    %334 = vector.extract_strided_slice %316 {offsets = [0, 256], sizes = [8, 128], strides = [1, 1]} : vector<8x384xf32> to vector<8x128xf32>
    %335 = vector.extract_strided_slice %317 {offsets = [0, 256], sizes = [8, 128], strides = [1, 1]} : vector<8x384xf32> to vector<8x128xf32>
    %336 = arith.addf %335, %234 : vector<8x128xf32>
    %337 = arith.mulf %325, %336 : vector<8x128xf32>
    %338 = arith.addf %334, %337 : vector<8x128xf32>
    %339 = math.tanh %338 : vector<8x128xf32>
    %340 = arith.subf %315, %339 : vector<8x128xf32>
    %341 = arith.mulf %333, %340 : vector<8x128xf32>
    %342 = arith.addf %339, %341 : vector<8x128xf32>
    %343 = vector.extract_strided_slice %8 {offsets = [32, 0], sizes = [8, 384], strides = [1, 1]} : vector<64x384xf32> to vector<8x384xf32>
    %cst_53 = arith.constant dense<0.000000e+00> : vector<8x384xf32>
    %344 = tpu.matmul %342, %231, %cst_53 {dimension_numbers = #tpu.dot_dimension_numbers<[1], [0], [0], [1], [0, 0, 1, 1], [], []>} : vector<8x128xf32>, vector<128x384xf32>, vector<8x384xf32> -> vector<8x384xf32>
    %345 = vector.extract_strided_slice %343 {offsets = [0, 0], sizes = [8, 128], strides = [1, 1]} : vector<8x384xf32> to vector<8x128xf32>
    %346 = vector.extract_strided_slice %344 {offsets = [0, 0], sizes = [8, 128], strides = [1, 1]} : vector<8x384xf32> to vector<8x128xf32>
    %347 = arith.addf %345, %346 : vector<8x128xf32>
    %348 = arith.negf %347 : vector<8x128xf32>
    %349 = math.exp %348 : vector<8x128xf32>
    %cst_54 = arith.constant 1.000000e+00 : f32
    %350 = vector.broadcast %cst_54 : f32 to vector<8x128xf32>
    %351 = arith.addf %350, %349 : vector<8x128xf32>
    %352 = arith.divf %350, %351 : vector<8x128xf32>
    %353 = vector.extract_strided_slice %343 {offsets = [0, 128], sizes = [8, 128], strides = [1, 1]} : vector<8x384xf32> to vector<8x128xf32>
    %354 = vector.extract_strided_slice %344 {offsets = [0, 128], sizes = [8, 128], strides = [1, 1]} : vector<8x384xf32> to vector<8x128xf32>
    %355 = arith.addf %353, %354 : vector<8x128xf32>
    %356 = arith.negf %355 : vector<8x128xf32>
    %357 = math.exp %356 : vector<8x128xf32>
    %cst_55 = arith.constant 1.000000e+00 : f32
    %358 = vector.broadcast %cst_55 : f32 to vector<8x128xf32>
    %359 = arith.addf %358, %357 : vector<8x128xf32>
    %360 = arith.divf %358, %359 : vector<8x128xf32>
    %361 = vector.extract_strided_slice %343 {offsets = [0, 256], sizes = [8, 128], strides = [1, 1]} : vector<8x384xf32> to vector<8x128xf32>
    %362 = vector.extract_strided_slice %344 {offsets = [0, 256], sizes = [8, 128], strides = [1, 1]} : vector<8x384xf32> to vector<8x128xf32>
    %363 = arith.addf %362, %234 : vector<8x128xf32>
    %364 = arith.mulf %352, %363 : vector<8x128xf32>
    %365 = arith.addf %361, %364 : vector<8x128xf32>
    %366 = math.tanh %365 : vector<8x128xf32>
    %367 = arith.subf %342, %366 : vector<8x128xf32>
    %368 = arith.mulf %360, %367 : vector<8x128xf32>
    %369 = arith.addf %366, %368 : vector<8x128xf32>
    %370 = vector.extract_strided_slice %8 {offsets = [40, 0], sizes = [8, 384], strides = [1, 1]} : vector<64x384xf32> to vector<8x384xf32>
    %cst_56 = arith.constant dense<0.000000e+00> : vector<8x384xf32>
    %371 = tpu.matmul %369, %231, %cst_56 {dimension_numbers = #tpu.dot_dimension_numbers<[1], [0], [0], [1], [0, 0, 1, 1], [], []>} : vector<8x128xf32>, vector<128x384xf32>, vector<8x384xf32> -> vector<8x384xf32>
    %372 = vector.extract_strided_slice %370 {offsets = [0, 0], sizes = [8, 128], strides = [1, 1]} : vector<8x384xf32> to vector<8x128xf32>
    %373 = vector.extract_strided_slice %371 {offsets = [0, 0], sizes = [8, 128], strides = [1, 1]} : vector<8x384xf32> to vector<8x128xf32>
    %374 = arith.addf %372, %373 : vector<8x128xf32>
    %375 = arith.negf %374 : vector<8x128xf32>
    %376 = math.exp %375 : vector<8x128xf32>
    %cst_57 = arith.constant 1.000000e+00 : f32
    %377 = vector.broadcast %cst_57 : f32 to vector<8x128xf32>
    %378 = arith.addf %377, %376 : vector<8x128xf32>
    %379 = arith.divf %377, %378 : vector<8x128xf32>
    %380 = vector.extract_strided_slice %370 {offsets = [0, 128], sizes = [8, 128], strides = [1, 1]} : vector<8x384xf32> to vector<8x128xf32>
    %381 = vector.extract_strided_slice %371 {offsets = [0, 128], sizes = [8, 128], strides = [1, 1]} : vector<8x384xf32> to vector<8x128xf32>
    %382 = arith.addf %380, %381 : vector<8x128xf32>
    %383 = arith.negf %382 : vector<8x128xf32>
    %384 = math.exp %383 : vector<8x128xf32>
    %cst_58 = arith.constant 1.000000e+00 : f32
    %385 = vector.broadcast %cst_58 : f32 to vector<8x128xf32>
    %386 = arith.addf %385, %384 : vector<8x128xf32>
    %387 = arith.divf %385, %386 : vector<8x128xf32>
    %388 = vector.extract_strided_slice %370 {offsets = [0, 256], sizes = [8, 128], strides = [1, 1]} : vector<8x384xf32> to vector<8x128xf32>
    %389 = vector.extract_strided_slice %371 {offsets = [0, 256], sizes = [8, 128], strides = [1, 1]} : vector<8x384xf32> to vector<8x128xf32>
    %390 = arith.addf %389, %234 : vector<8x128xf32>
    %391 = arith.mulf %379, %390 : vector<8x128xf32>
    %392 = arith.addf %388, %391 : vector<8x128xf32>
    %393 = math.tanh %392 : vector<8x128xf32>
    %394 = arith.subf %369, %393 : vector<8x128xf32>
    %395 = arith.mulf %387, %394 : vector<8x128xf32>
    %396 = arith.addf %393, %395 : vector<8x128xf32>
    %397 = vector.extract_strided_slice %8 {offsets = [48, 0], sizes = [8, 384], strides = [1, 1]} : vector<64x384xf32> to vector<8x384xf32>
    %cst_59 = arith.constant dense<0.000000e+00> : vector<8x384xf32>
    %398 = tpu.matmul %396, %231, %cst_59 {dimension_numbers = #tpu.dot_dimension_numbers<[1], [0], [0], [1], [0, 0, 1, 1], [], []>} : vector<8x128xf32>, vector<128x384xf32>, vector<8x384xf32> -> vector<8x384xf32>
    %399 = vector.extract_strided_slice %397 {offsets = [0, 0], sizes = [8, 128], strides = [1, 1]} : vector<8x384xf32> to vector<8x128xf32>
    %400 = vector.extract_strided_slice %398 {offsets = [0, 0], sizes = [8, 128], strides = [1, 1]} : vector<8x384xf32> to vector<8x128xf32>
    %401 = arith.addf %399, %400 : vector<8x128xf32>
    %402 = arith.negf %401 : vector<8x128xf32>
    %403 = math.exp %402 : vector<8x128xf32>
    %cst_60 = arith.constant 1.000000e+00 : f32
    %404 = vector.broadcast %cst_60 : f32 to vector<8x128xf32>
    %405 = arith.addf %404, %403 : vector<8x128xf32>
    %406 = arith.divf %404, %405 : vector<8x128xf32>
    %407 = vector.extract_strided_slice %397 {offsets = [0, 128], sizes = [8, 128], strides = [1, 1]} : vector<8x384xf32> to vector<8x128xf32>
    %408 = vector.extract_strided_slice %398 {offsets = [0, 128], sizes = [8, 128], strides = [1, 1]} : vector<8x384xf32> to vector<8x128xf32>
    %409 = arith.addf %407, %408 : vector<8x128xf32>
    %410 = arith.negf %409 : vector<8x128xf32>
    %411 = math.exp %410 : vector<8x128xf32>
    %cst_61 = arith.constant 1.000000e+00 : f32
    %412 = vector.broadcast %cst_61 : f32 to vector<8x128xf32>
    %413 = arith.addf %412, %411 : vector<8x128xf32>
    %414 = arith.divf %412, %413 : vector<8x128xf32>
    %415 = vector.extract_strided_slice %397 {offsets = [0, 256], sizes = [8, 128], strides = [1, 1]} : vector<8x384xf32> to vector<8x128xf32>
    %416 = vector.extract_strided_slice %398 {offsets = [0, 256], sizes = [8, 128], strides = [1, 1]} : vector<8x384xf32> to vector<8x128xf32>
    %417 = arith.addf %416, %234 : vector<8x128xf32>
    %418 = arith.mulf %406, %417 : vector<8x128xf32>
    %419 = arith.addf %415, %418 : vector<8x128xf32>
    %420 = math.tanh %419 : vector<8x128xf32>
    %421 = arith.subf %396, %420 : vector<8x128xf32>
    %422 = arith.mulf %414, %421 : vector<8x128xf32>
    %423 = arith.addf %420, %422 : vector<8x128xf32>
    %424 = vector.extract_strided_slice %8 {offsets = [56, 0], sizes = [8, 384], strides = [1, 1]} : vector<64x384xf32> to vector<8x384xf32>
    %cst_62 = arith.constant dense<0.000000e+00> : vector<8x384xf32>
    %425 = tpu.matmul %423, %231, %cst_62 {dimension_numbers = #tpu.dot_dimension_numbers<[1], [0], [0], [1], [0, 0, 1, 1], [], []>} : vector<8x128xf32>, vector<128x384xf32>, vector<8x384xf32> -> vector<8x384xf32>
    %426 = vector.extract_strided_slice %424 {offsets = [0, 0], sizes = [8, 128], strides = [1, 1]} : vector<8x384xf32> to vector<8x128xf32>
    %427 = vector.extract_strided_slice %425 {offsets = [0, 0], sizes = [8, 128], strides = [1, 1]} : vector<8x384xf32> to vector<8x128xf32>
    %428 = arith.addf %426, %427 : vector<8x128xf32>
    %429 = arith.negf %428 : vector<8x128xf32>
    %430 = math.exp %429 : vector<8x128xf32>
    %cst_63 = arith.constant 1.000000e+00 : f32
    %431 = vector.broadcast %cst_63 : f32 to vector<8x128xf32>
    %432 = arith.addf %431, %430 : vector<8x128xf32>
    %433 = arith.divf %431, %432 : vector<8x128xf32>
    %434 = vector.extract_strided_slice %424 {offsets = [0, 128], sizes = [8, 128], strides = [1, 1]} : vector<8x384xf32> to vector<8x128xf32>
    %435 = vector.extract_strided_slice %425 {offsets = [0, 128], sizes = [8, 128], strides = [1, 1]} : vector<8x384xf32> to vector<8x128xf32>
    %436 = arith.addf %434, %435 : vector<8x128xf32>
    %437 = arith.negf %436 : vector<8x128xf32>
    %438 = math.exp %437 : vector<8x128xf32>
    %cst_64 = arith.constant 1.000000e+00 : f32
    %439 = vector.broadcast %cst_64 : f32 to vector<8x128xf32>
    %440 = arith.addf %439, %438 : vector<8x128xf32>
    %441 = arith.divf %439, %440 : vector<8x128xf32>
    %442 = vector.extract_strided_slice %424 {offsets = [0, 256], sizes = [8, 128], strides = [1, 1]} : vector<8x384xf32> to vector<8x128xf32>
    %443 = vector.extract_strided_slice %425 {offsets = [0, 256], sizes = [8, 128], strides = [1, 1]} : vector<8x384xf32> to vector<8x128xf32>
    %444 = arith.addf %443, %234 : vector<8x128xf32>
    %445 = arith.mulf %433, %444 : vector<8x128xf32>
    %446 = arith.addf %442, %445 : vector<8x128xf32>
    %447 = math.tanh %446 : vector<8x128xf32>
    %448 = arith.subf %423, %447 : vector<8x128xf32>
    %449 = arith.mulf %441, %448 : vector<8x128xf32>
    %450 = arith.addf %447, %449 : vector<8x128xf32>
    %451 = tpu.concatenate %261, %288, %315, %342, %369, %396, %423, %450 in 0 : vector<8x128xf32>, vector<8x128xf32>, vector<8x128xf32>, vector<8x128xf32>, vector<8x128xf32>, vector<8x128xf32>, vector<8x128xf32>, vector<8x128xf32> -> vector<64x128xf32>
    %452 = arith.truncf %451 : vector<64x128xf32> to vector<64x128xbf16>
    %c0_65 = arith.constant 0 : index
    %c0_66 = arith.constant 0 : index
    %453 = vector.load %arg8[%c0_65, %c0_66] : memref<128x128xbf16, #tpu.memory_space<vmem>>, vector<128x128xbf16>
    %cst_67 = arith.constant dense<0.000000e+00> : vector<64x128xf32>
    %454 = tpu.matmul %452, %453, %cst_67 {dimension_numbers = #tpu.dot_dimension_numbers<[1], [0], [0], [1], [0, 0, 1, 1], [], []>} : vector<64x128xbf16>, vector<128x128xbf16>, vector<64x128xf32> -> vector<64x128xf32>
    %c0_68 = arith.constant 0 : index
    %c0_69 = arith.constant 0 : index
    %455 = vector.load %arg9[%c0_68, %c0_69] : memref<1x128xf32, #tpu.memory_space<vmem>>, vector<1x128xf32>
    %456 = vector.broadcast %455 : vector<1x128xf32> to vector<64x128xf32>
    %457 = arith.addf %454, %456 : vector<64x128xf32>
    %c0_70 = arith.constant 0 : index
    %c0_71 = arith.constant 0 : index
    %458 = vector.load %arg10[%c0_70, %c0_71] : memref<64x128xf32, #tpu.memory_space<vmem>>, vector<64x128xf32>
    tpu.vector_store %arg10[%c0_70, %c0_71], %457 {strides = array<i32>} : memref<64x128xf32, #tpu.memory_space<vmem>>, vector<64x128xf32>,
    return
  }
}

</mosaic_0001>

<bundles_post_ra>
// kernel: seq2seq_forward.1
= control target key start
LH: loop header
LB: loop body
LE: loop exit
PB: predicated region body
PF: predicated region fallthrough
CT: control target
= control target key end

     0   :  { %17 = vsyncpa [#allocation3], 0  ;;  %s4447_s0 = inlined_call_operand.vmem [shape: f32[64,16], index: 0, kind: input, shape index: {}]   ;;  %s4448_s1 = inlined_call_operand.vmem [shape: f32[8,128], index: 1, kind: input, shape index: {}]   ;;  %s4449_s2 = inlined_call_operand.vmem [shape: bf16[16,768], index: 2, kind: input, shape index: {}]   ;;  %s4450_s3 = inlined_call_operand.hbm [shape: f32[1,768], index: 3, kind: input, shape index: {}]   ;;  %s4451_s4 = inlined_call_operand.hbm [shape: f32[128,384], index: 4, kind: input, shape index: {}]   ;;  %s4452_s5 = inlined_call_operand.vmem [shape: f32[1,128], index: 5, kind: input, shape index: {}]   ;;  %s4453_s6 = inlined_call_operand.hbm [shape: f32[128,384], index: 6, kind: input, shape index: {}]   ;;  %s4454_s7 = inlined_call_operand.vmem [shape: f32[1,128], index: 7, kind: input, shape index: {}]   ;;  %s4455_s8 = inlined_call_operand.vmem [shape: bf16[128,128], index: 8, kind: input, shape index: {}]   ;;  %s4456_s9 = inlined_call_operand.vmem [shape: f32[1,128], index: 9, kind: input, shape index: {}]   ;;  %s4457_s10 = inlined_call_operand.vmem [shape: f32[64,128], index: 10, kind: output, shape index: {0}]   ;;  %s4458_s11 = inlined_call_operand.vmem [shape: f32[8,128], index: 11, kind: output, shape index: {1}]  }
   0x1   :  { %18 = vsyncpa [#allocation5], 0  ;;  %s40_s19 = sshll.u32 %s4451_s4, 4  ;;  %s2739_s20 = smov [#allocation4]   ;;  %s41_s19 = int_to_ptr.hbm [resolvable:$true] %s40_s19 }
   0x2   :  { %s42_s21 = sshll.u32 %s2739_s20, 4  ;;  %s30_s24 = sshll.u32 %s4450_s3, 4  ;;  %s43_s21 = int_to_ptr.vmem [resolvable:$true] %s42_s21  ;;  %s31_s24 = int_to_ptr.hbm [resolvable:$true] %s30_s24 }
   0x3   :  { %s2740_s25 = smov 384   ;;  %s2741_s26 = smov 24  }
   0x4   :  { %48 = dma.hbm_to_vmem [thread:$0]  %s41_s19, 6144, %s43_s21, [#allocation5], %s2740_s25, %s2740_s25, %s2741_s26  }
   0x5   :  { %s2742_s27 = smov [#allocation2]   ;;  %s55_s12 = sshll.u32 %s4453_s6, 4  ;;  %s56_s12 = int_to_ptr.hbm [resolvable:$true] %s55_s12 }
   0x6   :  { %s32_s28 = sshll.u32 %s2742_s27, 4  ;;  %s2743_s4 = smov [#allocation6]   ;;  %s33_s28 = int_to_ptr.vmem [resolvable:$true] %s32_s28 }
   0x7   :  { %35 = dma.hbm_to_vmem [thread:$0]  %s31_s24, 96, %s33_s28, [#allocation3]  }
   0x8   :  { %s57_s13 = sshll.u32 %s2743_s4, 4  ;;  %s58_s13 = int_to_ptr.vmem [resolvable:$true] %s57_s13 }
   0x9   :  { %63 = dma.hbm_to_vmem [thread:$0]  %s56_s12, 6144, %s58_s13, [#allocation5], %s2740_s25, %s2740_s25, %s2741_s26  }
   0xa   :  { %2735 = dma.done.wait [#allocation3], 96  }
   0xb   :  { %2736 = vsyncadd [#allocation3], 4294967200 }
   0xc   :  { %2737 = dma.done.wait [#allocation5], 12288  }
   0xd   :  { %2738 = vsyncadd [#allocation5], 4294955008  ;;  %v2271_v0 = vld [vmem:[%s4449_s2] sm:$0xf]  ;;  %v2384_v1 = vld [vmem:[%s4449_s2 + $0x14] sm:$0xf0] }
   0xe   :  { %v85_v2 = vld [vmem:[%s4447_s0 + $0x10] sm:$0xff]  ;;  %v2272_v3 = vor.u32 %v2384_v1, %v2271_v0  ;;  %v86_v4 = vld [vmem:[%s4447_s0 + $0x18] sm:$0xff]  ;;  %v2279_v5 = vld [vmem:[%s4449_s2 + $0x8] sm:$0xf]  ;;  %vm145_vm0 = vcmask 130048  }
   0xf   :  { %v2385_v6 = vld [vmem:[%s4449_s2 + $0x1c] sm:$0xf0]  ;;  %v2831_v7 = vpack.c.bf16 %v86_v4, %v85_v2  ;;  %v89_v9 = vld [vmem:[%s4447_s0 + $0x30] sm:$0xff]  ;;  %v90_v10 = vld [vmem:[%s4447_s0 + $0x38] sm:$0xff] }
  0x10   :  { %v2280_v8 = vor.u32 %v2385_v6, %v2279_v5  ;;  %2395 = vmatpush.bf16.msra.mxu2 %v2272_v3  ;;  %2396 = vmatpush.bf16.msra.mxu3 %v2272_v3  ;;  %v2382_v11 = vld [vmem:[%s4449_s2 + $0xc] sm:$0xf]  ;;  %v2281_v12 = vld [vmem:[%s4449_s2 + $0x20] sm:$0xf0]  ;;  %v2845_v13 = vpack.c.bf16 %v90_v10, %v89_v9  ;;  %v2861_v19 = vld [vmem:[#allocation4 + $0x150] sm:$0xff] }
  0x11   :  { %v2284_v14 = vor.u32 %v2382_v11, %v2281_v12  ;;  %v83_v15 = vld [vmem:[%s4447_s0] sm:$0xff]  ;;  %v84_v16 = vld [vmem:[%s4447_s0 + $0x8] sm:$0xff]  ;;  %165 = vmatpush.bf16.msra.mxu1 %v2272_v3  ;;  %v2864_v20 = vld [vmem:[#allocation4 + $0x170] sm:$0xff] }
  0x12   :  { %v2857_v17 = vpack.c.bf16 %v84_v16, %v83_v15  ;;  %v2859_v18 = vld [vmem:[#allocation4 + $0x168] sm:$0xff]  ;;  %v2866_v21 = vld [vmem:[#allocation4 + $0x138] sm:$0xff]  ;;  %v2872_v22 = vld [vmem:[#allocation4 + $0x120] sm:$0xff] }
  0x13   :  { %2294 = vmatmul.msk.bf16.vlgmr.msra.gmra.mxu2 %vm145_vm0, %v2831_v7  ;;  %2296 = vmatmul.msk.bf16.vlgmr.msra.gmra.mxu3 %vm145_vm0, %v2845_v13  ;;  %v87_v23 = vld [vmem:[%s4447_s0 + $0x20] sm:$0xff]  ;;  %v88_v24 = vld [vmem:[%s4447_s0 + $0x28] sm:$0xff]  ;;  %v2892_v28 = vld [vmem:[#allocation4 + $0xf0] sm:$0xff] }
  0x14   :  { %223 = vmatpush.bf16.msrb.mxu2 %v2280_v8  ;;  %252 = vmatpush.bf16.msrb.mxu3 %v2284_v14  ;;  %v2882_v25 = vpack.c.bf16 %v88_v24, %v87_v23  ;;  %v2888_v26 = vld [vmem:[#allocation4 + $0x108] sm:$0xff]  ;;  %v2890_v27 = vld [vmem:[#allocation4 + $0x158] sm:$0xff]  ;;  %v2896_v29 = vld [vmem:[#allocation4 + $0x140] sm:$0xff] }
  0x15   :  { %2293 = vmatmul.msk.bf16.vlgmr.msra.gmra.mxu1 %vm145_vm0, %v2857_v17  ;;  %v2898_v30 = vld [vmem:[#allocation4 + $0xd8] sm:$0xff]  ;;  %v2900_v31 = vld [vmem:[#allocation4 + $0x128] sm:$0xff]  ;;  %v2904_v32 = vld [vmem:[#allocation4 + $0xc0] sm:$0xff] }
  0x16   :  { %v2906_v33 = vld [vmem:[#allocation4 + $0x110] sm:$0xff]  ;;  %v2916_v34 = vld [vmem:[#allocation4 + $0xa8] sm:$0xff]  ;;  %v2918_v35 = vld [vmem:[#allocation4 + $0xf8] sm:$0xff] }
  0x17   :  { %v2920_v36 = vld [vmem:[#allocation4 + $0x90] sm:$0xff]  ;;  %v2924_v37 = vld [vmem:[#allocation4 + $0xe0] sm:$0xff]  ;;  %v2926_v38 = vld [vmem:[#allocation4 + $0x78] sm:$0xff] }
  0x18   :  { %385 = vmatpush.msra.mxu2 %v2859_v18  ;;  %405 = vmatpush.msra.mxu3 %v2864_v20  ;;  %v2928_v39 = vld [vmem:[#allocation4 + $0xc8] sm:$0xff]  ;;  %v2932_v40 = vld [vmem:[#allocation4 + $0x60] sm:$0xff]  ;;  %v2934_v41 = vld [vmem:[#allocation4 + $0xb0] sm:$0xff] }
  0x19   :  { %v2944_v42 = vld [vmem:[#allocation4 + $0x48] sm:$0xff]  ;;  %v2946_v43 = vld [vmem:[#allocation4 + $0x98] sm:$0xff]  ;;  %v2948_v44 = vld [vmem:[#allocation4 + $0x30] sm:$0xff] }
  0x1a   :  { %386 = vmatpush.msra.mxu2 %v2861_v19  ;;  %406 = vmatpush.msra.mxu3 %v2890_v27  ;;  %4515 = vst [vmem:[#allocation9_spill] sm:$0xff] %v2948_v44  ;;  %v2952_v45 = vld [vmem:[#allocation4 + $0x80] sm:$0xff]  ;;  %v2954_v46 = vld [vmem:[#allocation4 + $0x68] sm:$0xff]  ;;  %v2956_v47 = vld [vmem:[#allocation4 + $0x18] sm:$0xff] }
  0x1b   :  { %4516 = vst [vmem:[#allocation10_spill] sm:$0xff] %v2956_v47  ;;  %v2960_v48 = vld [vmem:[#allocation4 + $0x50] sm:$0xff]  ;;  %v2962_v49 = vld [vmem:[#allocation4] sm:$0xff]  ;;  %v2966_v50 = vld [vmem:[#allocation4 + $0x178] sm:$0xff] }
  0x1c   :  { %387 = vmatpush.msra.mxu2 %v2866_v21  ;;  %407 = vmatpush.msra.mxu3 %v2896_v29  ;;  %4517 = vst [vmem:[#allocation11_spill] sm:$0xff] %v2962_v49  ;;  %v2968_v51 = vld [vmem:[#allocation4 + $0x38] sm:$0xff]  ;;  %v2972_v52 = vld [vmem:[#allocation4 + $0x160] sm:$0xff]  ;;  %v2978_v54 = vld [vmem:[#allocation4 + $0x8] sm:$0xff] }
  0x1d   :  { %4518 = vst [vmem:[#allocation12_spill] sm:$0xff] %v2968_v51  ;;  %v2974_v53 = vld [vmem:[#allocation4 + $0x20] sm:$0xff]  ;;  %v2273_v56 = vld [vmem:[%s4449_s2 + $0x18] sm:$0xf0]  ;;  %v2994_v58 = vld [vmem:[#allocation4 + $0x148] sm:$0xff] }
  0x1e   :  { %388 = vmatpush.msra.mxu2 %v2872_v22  ;;  %408 = vmatpush.msra.mxu3 %v2900_v31  ;;  %4519 = vst [vmem:[#allocation13_spill] sm:$0xff] %v2974_v53  ;;  %v2381_v55 = vld [vmem:[%s4449_s2 + $0x4] sm:$0xf]  ;;  %v2996_v59 = vld [vmem:[#allocation4 + $0x130] sm:$0xff]  ;;  %v3009_v62 = vld [vmem:[#allocation4 + $0xe8] sm:$0xff] }
  0x1f   :  { %4520 = vst [vmem:[#allocation14_spill] sm:$0xff] %v2978_v54  ;;  %v2276_v57 = vor.u32 %v2381_v55, %v2273_v56  ;;  %v2999_v60 = vld [vmem:[#allocation4 + $0x118] sm:$0xff]  ;;  %v3005_v61 = vld [vmem:[#allocation4 + $0x100] sm:$0xff]  ;;  %v3013_v63 = vld [vmem:[#allocation4 + $0xd0] sm:$0xff] }
  0x20   :  { %389 = vmatpush.msra.mxu2 %v2888_v26  ;;  %409 = vmatpush.msra.mxu3 %v2906_v33  ;;  %v3017_v0 = vld [vmem:[#allocation4 + $0xb8] sm:$0xff]  ;;  %v3021_v1 = vld [vmem:[#allocation4 + $0xa0] sm:$0xff]  ;;  %v3030_v3 = vld [vmem:[#allocation4 + $0x88] sm:$0xff] }
  0x21   :  { %194 = vmatpush.bf16.msrb.mxu1 %v2276_v57  ;;  %v3027_v2 = vld [vmem:[%s4448_s1] sm:$0xff]  ;;  %v3037_v4 = vld [vmem:[#allocation4 + $0x70] sm:$0xff]  ;;  %v3051_v8 = vld [vmem:[#allocation4 + $0x28] sm:$0xff] }
  0x22   :  { %390 = vmatpush.msra.mxu2 %v2892_v28  ;;  %410 = vmatpush.msra.mxu3 %v2918_v35  ;;  %4521 = vst [vmem:[#allocation15_spill] sm:$0xff] %v3027_v2  ;;  %v3041_v5 = vld [vmem:[#allocation4 + $0x58] sm:$0xff]  ;;  %v3045_v6 = vld [vmem:[#allocation4 + $0x40] sm:$0xff]  ;;  %v3055_v9 = vld [vmem:[#allocation4 + $0x10] sm:$0xff] }
  0x23   :  { %2295 = vmatmul.msk.bf16.gmra.mxu2 %vm145_vm0, %v2882_v25  ;;  %2305 = vmatmul.msk.bf16.vlgmr.msrb.gmra.mxu3 %vm145_vm0, %v2857_v17  ;;  %4522 = vst [vmem:[#allocation16_spill] sm:$0xff] %v3045_v6  ;;  %v3100_v10 = vld [vmem:[#allocation2] sm:$0x3f] }
  0x24   :  { %391 = vmatpush.msra.mxu2 %v2898_v30  ;;  %411 = vmatpush.msra.mxu3 %v2924_v37  ;;  %4523 = vst [vmem:[#allocation17_spill] sm:$0xff] %v3051_v8  ;;  %v3105_v11 = vperm.slane %v3100_v10, 0 }
  0x25   :  { %2297 = vmatmul.msk.bf16.vlgmr.msrb.gmra.mxu1 %vm145_vm0, %v2857_v17  ;;  %4524 = vst [vmem:[#allocation18_spill] sm:$0xff] %v3055_v9 }
  0x26   :  { %392 = vmatpush.msra.mxu2 %v2904_v32  ;;  %412 = vmatpush.msra.mxu3 %v2928_v39  ;;  %4525 = vst [vmem:[#allocation19_spill] sm:$0xff] %v3105_v11 }
  0x28   :  { %393 = vmatpush.msra.mxu2 %v2916_v34  ;;  %413 = vmatpush.msra.mxu3 %v2934_v41 }
  0x2a   :  { %394 = vmatpush.msra.mxu2 %v2920_v36  ;;  %414 = vmatpush.msra.mxu3 %v2946_v43 }
  0x2c   :  { %395 = vmatpush.msra.mxu2 %v2926_v38  ;;  %415 = vmatpush.msra.mxu3 %v2952_v45 }
  0x2e   :  { %396 = vmatpush.msra.mxu2 %v2932_v40  ;;  %416 = vmatpush.msra.mxu3 %v2954_v46 }
  0x30   :  { %397 = vmatpush.msra.mxu2 %v2944_v42  ;;  %417 = vmatpush.msra.mxu3 %v2960_v48 }
  0x32   :  { %398 = vmatpush.msra.mxu2 %v2948_v44  ;;  %418 = vmatpush.msra.mxu3 %v2968_v51 }
  0x33   :  { %2301 = vmatmul.msk.bf16.vlgmr.msrb.gmra.mxu2 %vm145_vm0, %v2857_v17  ;;  %2306 = vmatmul.msk.bf16.gmra.mxu3 %vm145_vm0, %v2831_v7 }
  0x34   :  { %399 = vmatpush.msra.mxu2 %v2956_v47  ;;  %419 = vmatpush.msra.mxu3 %v2974_v53 }
  0x35   :  { %2298 = vmatmul.msk.bf16.gmra.mxu1 %vm145_vm0, %v2831_v7 }
  0x36   :  { %400 = vmatpush.msra.mxu2 %v2962_v49  ;;  %420 = vmatpush.msra.mxu3 %v2978_v54 }
  0x38   :  { %425 = vmatpush.msrb.mxu2 %v2966_v50  ;;  %492 = vmatpush.msrb.mxu3 %v2859_v18 }
  0x3a   :  { %426 = vmatpush.msrb.mxu2 %v2972_v52  ;;  %493 = vmatpush.msrb.mxu3 %v2861_v19 }
  0x3c   :  { %427 = vmatpush.msrb.mxu2 %v2994_v58  ;;  %494 = vmatpush.msrb.mxu3 %v2866_v21 }
  0x3e   :  { %428 = vmatpush.msrb.mxu2 %v2996_v59  ;;  %495 = vmatpush.msrb.mxu3 %v2872_v22 }
  0x40   :  { %429 = vmatpush.msrb.mxu2 %v2999_v60  ;;  %496 = vmatpush.msrb.mxu3 %v2888_v26 }
  0x42   :  { %430 = vmatpush.msrb.mxu2 %v3005_v61  ;;  %497 = vmatpush.msrb.mxu3 %v2892_v28 }
  0x43   :  { %2302 = vmatmul.msk.bf16.gmra.mxu2 %vm145_vm0, %v2831_v7  ;;  %2307 = vmatmul.msk.bf16.gmra.mxu3 %vm145_vm0, %v2882_v25 }
  0x44   :  { %431 = vmatpush.msrb.mxu2 %v3009_v62  ;;  %498 = vmatpush.msrb.mxu3 %v2898_v30 }
  0x45   :  { %2299 = vmatmul.msk.bf16.gmra.mxu1 %vm145_vm0, %v2882_v25 }
  0x46   :  { %432 = vmatpush.msrb.mxu2 %v3013_v63  ;;  %499 = vmatpush.msrb.mxu3 %v2904_v32 }
  0x48   :  { %433 = vmatpush.msrb.mxu2 %v3017_v0  ;;  %500 = vmatpush.msrb.mxu3 %v2916_v34 }
  0x4a   :  { %434 = vmatpush.msrb.mxu2 %v3021_v1  ;;  %501 = vmatpush.msrb.mxu3 %v2920_v36 }
  0x4c   :  { %435 = vmatpush.msrb.mxu2 %v3030_v3  ;;  %502 = vmatpush.msrb.mxu3 %v2926_v38 }
  0x4e   :  { %436 = vmatpush.msrb.mxu2 %v3037_v4  ;;  %503 = vmatpush.msrb.mxu3 %v2932_v40 }
  0x50   :  { %437 = vmatpush.msrb.mxu2 %v3041_v5  ;;  %504 = vmatpush.msrb.mxu3 %v2944_v42 }
  0x52   :  { %438 = vmatpush.msrb.mxu2 %v3045_v6  ;;  %505 = vmatpush.msrb.mxu3 %v2948_v44 }
  0x53   :  { %2303 = vmatmul.msk.bf16.gmra.mxu2 %vm145_vm0, %v2882_v25  ;;  %2308 = vmatmul.msk.bf16.gmra.mxu3 %vm145_vm0, %v2845_v13 }
  0x54   :  { %439 = vmatpush.msrb.mxu2 %v3051_v8  ;;  %506 = vmatpush.msrb.mxu3 %v2956_v47 }
  0x55   :  { %2300 = vmatmul.msk.bf16.gmra.mxu1 %vm145_vm0, %v2845_v13 }
  0x56   :  { %440 = vmatpush.msrb.mxu2 %v3055_v9  ;;  %507 = vmatpush.msrb.mxu3 %v2962_v49 }
  0x63   :  { %2304 = vmatmul.msk.bf16.gmra.mxu2 %vm145_vm0, %v2845_v13  ;;  %421 = vmatmul.f32.vlgmr.msra.gmra.mxu3 %v3027_v2 }
  0x64   :  { %619 = vmatpush.msra.mxu3 %v2864_v20 }
  0x66   :  { %620 = vmatpush.msra.mxu3 %v2890_v27 }
  0x68   :  { %621 = vmatpush.msra.mxu3 %v2896_v29 }
  0x6a   :  { %622 = vmatpush.msra.mxu3 %v2900_v31 }
  0x6c   :  { %623 = vmatpush.msra.mxu3 %v2906_v33 }
  0x6e   :  { %624 = vmatpush.msra.mxu3 %v2918_v35 }
  0x70   :  { %625 = vmatpush.msra.mxu3 %v2924_v37 }
  0x72   :  { %626 = vmatpush.msra.mxu3 %v2928_v39 }
  0x73   :  { %401 = vmatmul.f32.vlgmr.msra.gmra.mxu2 %v3027_v2 }
  0x74   :  { %599 = vmatpush.msra.mxu2 %v2859_v18  ;;  %627 = vmatpush.msra.mxu3 %v2934_v41 }
  0x76   :  { %600 = vmatpush.msra.mxu2 %v2861_v19  ;;  %628 = vmatpush.msra.mxu3 %v2946_v43 }
  0x78   :  { %601 = vmatpush.msra.mxu2 %v2866_v21  ;;  %629 = vmatpush.msra.mxu3 %v2952_v45 }
  0x7a   :  { %602 = vmatpush.msra.mxu2 %v2872_v22  ;;  %630 = vmatpush.msra.mxu3 %v2954_v46 }
  0x7b   :  { %441 = vmatmul.f32.vlgmr.msrb.gmra.mxu2 %v3027_v2 }
  0x7c   :  { %603 = vmatpush.msra.mxu2 %v2888_v26  ;;  %631 = vmatpush.msra.mxu3 %v2960_v48 }
  0x7e   :  { %604 = vmatpush.msra.mxu2 %v2892_v28  ;;  %632 = vmatpush.msra.mxu3 %v2968_v51 }
  0x80   :  { %605 = vmatpush.msra.mxu2 %v2898_v30  ;;  %633 = vmatpush.msra.mxu3 %v2974_v53 }
  0x82   :  { %606 = vmatpush.msra.mxu2 %v2904_v32  ;;  %634 = vmatpush.msra.mxu3 %v2978_v54 }
  0x84   :  { %607 = vmatpush.msra.mxu2 %v2916_v34 }
  0x86   :  { %608 = vmatpush.msra.mxu2 %v2920_v36 }
  0x88   :  { %609 = vmatpush.msra.mxu2 %v2926_v38 }
  0x8a   :  { %610 = vmatpush.msra.mxu2 %v2932_v40 }
  0x8c   :  { %611 = vmatpush.msra.mxu2 %v2944_v42 }
  0x8e   :  { %612 = vmatpush.msra.mxu2 %v2948_v44 }
  0x90   :  { %613 = vmatpush.msra.mxu2 %v2956_v47 }
  0x92   :  { %614 = vmatpush.msra.mxu2 %v2962_v49 }
  0x94   :  { %726 = vmatpush.msrb.mxu2 %v2864_v20 }
  0x96   :  { %727 = vmatpush.msrb.mxu2 %v2890_v27  ;;  %v3108_v12 = vpop.f32.mrf.mxu2  ;;  %v182_v14 = vpop.f32.mrf.mxu3 }
  0x97   :  { %4526 = vst [vmem:[#allocation20_spill] sm:$0xff] %v3108_v12  ;;  %v3111_v15 = vadd.f32 %v182_v14, %v3105_v11  ;;  %v2386_v12 = vld [vmem:[%s4449_s2 + $0x24] sm:$0xf0] }
  0x98   :  { %728 = vmatpush.msrb.mxu2 %v2896_v29 }
  0x99   :  { %4527 = vst [vmem:[#allocation21_spill] sm:$0xff] %v3111_v15  ;;  %v3141_v15 = vperm.slane %v3100_v10, 3 }
  0x9a   :  { %729 = vmatpush.msrb.mxu2 %v2900_v31 }
  0x9b   :  { %4532 = vst [vmem:[#allocation26_spill] sm:$0xff] %v3141_v15 }
  0x9c   :  { %730 = vmatpush.msrb.mxu2 %v2906_v33 }
  0x9e   :  { %731 = vmatpush.msrb.mxu2 %v2918_v35  ;;  %v174_v16 = vpop.f32.mrf.mxu2  ;;  %v184_v23 = vpop.f32.mrf.mxu3 }
  0x9f   :  { %v3118_v24 = vadd.f32 %v174_v16, %v3105_v11  ;;  %v3121_v55 = vadd.f32 %v184_v23, %v3105_v11  ;;  %v2383_v16 = vld [vmem:[%s4449_s2 + $0x14] sm:$0xf]  ;;  %v2289_v23 = vld [vmem:[%s4449_s2 + $0x28] sm:$0xf0] }
  0xa0   :  { %732 = vmatpush.msrb.mxu2 %v2924_v37 }
  0xa1   :  { %4528 = vst [vmem:[#allocation22_spill] sm:$0xff] %v3118_v24 }
  0xa2   :  { %4529 = vst [vmem:[#allocation23_spill] sm:$0xff] %v3121_v55  ;;  %733 = vmatpush.msrb.mxu2 %v2928_v39  ;;  %v2292_v55 = vor.u32 %v2383_v16, %v2289_v23 }
  0xa4   :  { %734 = vmatpush.msrb.mxu2 %v2934_v41  ;;  %310 = vmatpush.bf16.msra.mxu1 %v2292_v55 }
  0xa6   :  { %735 = vmatpush.msrb.mxu2 %v2946_v43  ;;  %v177_v56 = vpop.f32.mrf.mxu2  ;;  %v3127_v57 = vpop.f32.mrf.mxu3 }
  0xa7   :  { %4530 = vst [vmem:[#allocation24_spill] sm:$0xff] %v3127_v57  ;;  %v3130_v14 = vadd.f32 %v177_v56, %v3105_v11  ;;  %2313 = vmatmul.msk.bf16.vlgmr.msra.gmra.mxu1 %vm145_vm0, %v2857_v17 }
  0xa8   :  { %736 = vmatpush.msrb.mxu2 %v2952_v45  ;;  %532 = vmatpush.msrb.mxu1 %v2966_v50 }
  0xa9   :  { %4531 = vst [vmem:[#allocation25_spill] sm:$0xff] %v3130_v14 }
  0xaa   :  { %737 = vmatpush.msrb.mxu2 %v2954_v46  ;;  %533 = vmatpush.msrb.mxu1 %v2972_v52 }
  0xac   :  { %738 = vmatpush.msrb.mxu2 %v2960_v48  ;;  %534 = vmatpush.msrb.mxu1 %v2994_v58 }
  0xae   :  { %739 = vmatpush.msrb.mxu2 %v2968_v51  ;;  %v179_v56 = vpop.f32.mrf.mxu2  ;;  %v256_v57 = vpop.f32.mrf.mxu3  ;;  %535 = vmatpush.msrb.mxu1 %v2996_v59 }
  0xaf   :  { %v3150_v16 = vadd.f32 %v179_v56, %v3105_v11  ;;  %v3153_v55 = vadd.f32 %v256_v57, %v3141_v15  ;;  %v3170_v57 = vperm.slane %v3100_v10, 2 }
  0xb0   :  { %740 = vmatpush.msrb.mxu2 %v2974_v53  ;;  %536 = vmatpush.msrb.mxu1 %v2999_v60 }
  0xb1   :  { %4533 = vst [vmem:[#allocation27_spill] sm:$0xff] %v3150_v16 }
  0xb2   :  { %4534 = vst [vmem:[#allocation28_spill] sm:$0xff] %v3153_v55  ;;  %741 = vmatpush.msrb.mxu2 %v2978_v54  ;;  %537 = vmatpush.msrb.mxu1 %v3005_v61 }
  0xb4   :  { %538 = vmatpush.msrb.mxu1 %v3009_v62 }
  0xb6   :  { %v3160_v23 = vpop.f32.mrf.mxu2  ;;  %v259_v14 = vpop.f32.mrf.mxu3  ;;  %539 = vmatpush.msrb.mxu1 %v3013_v63 }
  0xb7   :  { %v3164_v56 = vadd.f32 %v259_v14, %v3141_v15  ;;  %2314 = vmatmul.msk.bf16.gmra.mxu1 %vm145_vm0, %v2831_v7 }
  0xb8   :  { %540 = vmatpush.msrb.mxu1 %v3017_v0 }
  0xb9   :  { %4535 = vst [vmem:[#allocation29_spill] sm:$0xff] %v3164_v56  ;;  %v2287_v56 = vld [vmem:[%s4449_s2 + $0x10] sm:$0xf] }
  0xba   :  { %541 = vmatpush.msrb.mxu1 %v3021_v1  ;;  %v2288_v2 = vor.u32 %v2386_v12, %v2287_v56 }
  0xbc   :  { %542 = vmatpush.msrb.mxu1 %v3030_v3  ;;  %281 = vmatpush.bf16.msra.mxu0 %v2288_v2 }
  0xbe   :  { %v227_v55 = vpop.f32.mrf.mxu2  ;;  %v261_v16 = vpop.f32.mrf.mxu3  ;;  %543 = vmatpush.msrb.mxu1 %v3037_v4 }
  0xbf   :  { %v3176_v24 = vadd.f32 %v227_v55, %v3170_v57  ;;  %v3179_v14 = vadd.f32 %v261_v16, %v3141_v15  ;;  %2309 = vmatmul.msk.bf16.vlgmr.msra.gmra.mxu0 %vm145_vm0, %v2857_v17 }
  0xc0   :  { %512 = vmatpush.msrb.mxu0 %v2864_v20  ;;  %544 = vmatpush.msrb.mxu1 %v3041_v5 }
  0xc1   :  { %4536 = vst [vmem:[#allocation30_spill] sm:$0xff] %v3176_v24 }
  0xc2   :  { %4537 = vst [vmem:[#allocation31_spill] sm:$0xff] %v3179_v14  ;;  %513 = vmatpush.msrb.mxu0 %v2890_v27  ;;  %545 = vmatpush.msrb.mxu1 %v3045_v6 }
  0xc4   :  { %514 = vmatpush.msrb.mxu0 %v2896_v29  ;;  %546 = vmatpush.msrb.mxu1 %v3051_v8 }
  0xc6   :  { %v230_v16 = vpop.f32.mrf.mxu2  ;;  %v264_v55 = vpop.f32.mrf.mxu3  ;;  %515 = vmatpush.msrb.mxu0 %v2900_v31  ;;  %547 = vmatpush.msrb.mxu1 %v3055_v9 }
  0xc7   :  { %v3196_v12 = vadd.f32 %v230_v16, %v3170_v57  ;;  %v3199_v2 = vadd.f32 %v264_v55, %v3141_v15  ;;  %2315 = vmatmul.msk.bf16.gmra.mxu1 %vm145_vm0, %v2882_v25 }
  0xc8   :  { %706 = vmatpush.msra.mxu1 %v2859_v18  ;;  %516 = vmatpush.msrb.mxu0 %v2906_v33 }
  0xc9   :  { %4538 = vst [vmem:[#allocation32_spill] sm:$0xff] %v3196_v12 }
  0xca   :  { %4539 = vst [vmem:[#allocation33_spill] sm:$0xff] %v3199_v2  ;;  %517 = vmatpush.msrb.mxu0 %v2918_v35  ;;  %707 = vmatpush.msra.mxu1 %v2861_v19  ;;  %v167_v2 = vpop.f32.mrf.mxu1 }
  0xcb   :  { %v168_v24 = vadd.f32 %v167_v2, %v3105_v11 }
  0xcc   :  { %518 = vmatpush.msrb.mxu0 %v2924_v37  ;;  %708 = vmatpush.msra.mxu1 %v2866_v21 }
  0xce   :  { %v232_v17 = vpop.f32.mrf.mxu2  ;;  %v266_v56 = vpop.f32.mrf.mxu3  ;;  %519 = vmatpush.msrb.mxu0 %v2928_v39  ;;  %709 = vmatpush.msra.mxu1 %v2872_v22 }
  0xcf   :  { %v3212_v16 = vadd.f32 %v232_v17, %v3170_v57  ;;  %v3215_v55 = vadd.f32 %v266_v56, %v3141_v15  ;;  %2310 = vmatmul.msk.bf16.gmra.mxu0 %vm145_vm0, %v2831_v7 }
  0xd0   :  { %520 = vmatpush.msrb.mxu0 %v2934_v41  ;;  %710 = vmatpush.msra.mxu1 %v2888_v26 }
  0xd1   :  { %4540 = vst [vmem:[#allocation34_spill] sm:$0xff] %v3212_v16 }
  0xd2   :  { %4541 = vst [vmem:[#allocation35_spill] sm:$0xff] %v3215_v55  ;;  %521 = vmatpush.msrb.mxu0 %v2946_v43  ;;  %711 = vmatpush.msra.mxu1 %v2892_v28 }
  0xd4   :  { %522 = vmatpush.msrb.mxu0 %v2952_v45  ;;  %712 = vmatpush.msra.mxu1 %v2898_v30 }
  0xd6   :  { %v235_v17 = vpop.f32.mrf.mxu2  ;;  %v269_v14 = vpop.f32.mrf.mxu3  ;;  %523 = vmatpush.msrb.mxu0 %v2954_v46  ;;  %713 = vmatpush.msra.mxu1 %v2904_v32 }
  0xd7   :  { %v3228_v56 = vadd.f32 %v235_v17, %v3170_v57  ;;  %v3231_v55 = vadd.f32 %v269_v14, %v3141_v15  ;;  %2316 = vmatmul.msk.bf16.gmra.mxu1 %vm145_vm0, %v2845_v13 }
  0xd8   :  { %524 = vmatpush.msrb.mxu0 %v2960_v48  ;;  %714 = vmatpush.msra.mxu1 %v2916_v34 }
  0xd9   :  { %4542 = vst [vmem:[#allocation36_spill] sm:$0xff] %v3228_v56 }
  0xda   :  { %4543 = vst [vmem:[#allocation37_spill] sm:$0xff] %v3231_v55  ;;  %525 = vmatpush.msrb.mxu0 %v2968_v51  ;;  %715 = vmatpush.msra.mxu1 %v2920_v36  ;;  %v3246_v55 = vpop.f32.mrf.mxu1 }
  0xdb   :  { %4545 = vst [vmem:[#allocation39_spill] sm:$0xff] %v3246_v55 }
  0xdc   :  { %526 = vmatpush.msrb.mxu0 %v2974_v53  ;;  %716 = vmatpush.msra.mxu1 %v2926_v38 }
  0xde   :  { %v237_v7 = vpop.f32.mrf.mxu2  ;;  %v271_v17 = vpop.f32.mrf.mxu3  ;;  %527 = vmatpush.msrb.mxu0 %v2978_v54  ;;  %717 = vmatpush.msra.mxu1 %v2932_v40 }
  0xdf   :  { %v3244_v14 = vadd.f32 %v237_v7, %v3170_v57  ;;  %v3249_v56 = vadd.f32 %v271_v17, %v3141_v15  ;;  %2311 = vmatmul.msk.bf16.gmra.mxu0 %vm145_vm0, %v2882_v25 }
  0xe0   :  { %639 = vmatpush.msra.mxu0 %v2966_v50  ;;  %718 = vmatpush.msra.mxu1 %v2944_v42 }
  0xe1   :  { %4544 = vst [vmem:[#allocation38_spill] sm:$0xff] %v3244_v14 }
  0xe2   :  { %4546 = vst [vmem:[#allocation40_spill] sm:$0xff] %v3249_v56  ;;  %640 = vmatpush.msra.mxu0 %v2972_v52  ;;  %719 = vmatpush.msra.mxu1 %v2948_v44  ;;  %v3265_v56 = vperm.slane %v3100_v10, 1  ;;  %v196_v15 = vpop.f32.mrf.mxu1 }
  0xe4   :  { %4548 = vst [vmem:[#allocation42_spill] sm:$0xff] %v3265_v56  ;;  %641 = vmatpush.msra.mxu0 %v2994_v58  ;;  %720 = vmatpush.msra.mxu1 %v2956_v47  ;;  %v197_v25 = vadd.f32 %v196_v15, %v3265_v56 }
  0xe6   :  { %v240_v7 = vpop.f32.mrf.mxu2  ;;  %642 = vmatpush.msra.mxu0 %v2996_v59  ;;  %721 = vmatpush.msra.mxu1 %v2962_v49  ;;  %v422_v14 = vpop.f32.mrf.mxu3 }
  0xe7   :  { %v3262_v17 = vadd.f32 %v240_v7, %v3170_v57 }
  0xe8   :  { %643 = vmatpush.msra.mxu0 %v2999_v60 }
  0xe9   :  { %4547 = vst [vmem:[#allocation41_spill] sm:$0xff] %v3262_v17  ;;  %v465_v17 = vadd.f32 %v422_v14, %v197_v25 }
  0xea   :  { %644 = vmatpush.msra.mxu0 %v3005_v61  ;;  %v3288_v2 = vpop.f32.mrf.mxu1 }
  0xeb   :  { %v2318_v12 = vmul.f32 -1.442695, %v465_v17  ;;  %4550 = vst [vmem:[#allocation44_spill] sm:$0xff] %v3288_v2 }
  0xec   :  { %645 = vmatpush.msra.mxu0 %v3009_v62 }
  0xed   :  { %2405 = vpow2.f32 %v2318_v12 }
  0xee   :  { %v242_v16 = vpop.f32.mrf.mxu2  ;;  %646 = vmatpush.msra.mxu0 %v3013_v63 }
  0xef   :  { %v3275_v7 = vadd.f32 %v242_v16, %v3170_v57  ;;  %2312 = vmatmul.msk.bf16.gmra.mxu0 %vm145_vm0, %v2845_v13 }
  0xf0   :  { %647 = vmatpush.msra.mxu0 %v3017_v0 }
  0xf1   :  { %4549 = vst [vmem:[#allocation43_spill] sm:$0xff] %v3275_v7 }
  0xf2   :  { %648 = vmatpush.msra.mxu0 %v3021_v1 }
  0xf3   :  { %v2406_v14 = vpop.eup %2405 }
  0xf4   :  { %649 = vmatpush.msra.mxu0 %v3030_v3  ;;  %v469_v17 = vadd.f32 1.0, %v2406_v14 }
  0xf6   :  { %v402_v15 = vpop.f32.mrf.mxu2  ;;  %650 = vmatpush.msra.mxu0 %v3037_v4  ;;  %vm475_vm5 = vweird.f32 %v469_v17 }
  0xf7   :  { %v445_v55 = vadd.f32 %v402_v15, %v168_v24  ;;  %v3292_v24 = vpop.f32.mrf.mxu1 }
  0xf8   :  { %651 = vmatpush.msra.mxu0 %v3041_v5  ;;  %4551 = vst [vmem:[#allocation45_spill] sm:$0xff] %v3292_v24 }
  0xf9   :  { %v2317_v16 = vmul.f32 -1.442695, %v445_v55 }
  0xfa   :  { %652 = vmatpush.msra.mxu0 %v3045_v6 }
  0xfb   :  { %2407 = vpow2.f32 %v2317_v16  ;;  %v3297_v16 = vld [vmem:[%s4452_s5] ss:$0 sm:$0xff] }
  0xfc   :  { %653 = vmatpush.msra.mxu0 %v3051_v8 }
  0xfe   :  { %654 = vmatpush.msra.mxu0 %v3055_v9  ;;  %v442_v2 = vpop.f32.mrf.mxu2 }
  0xff   :  { %v3299_v54 = vpop.f32.mrf.mxu1  ;;  %v485_v24 = vadd.f32 %v3297_v16, %v442_v2  ;;  %v479_v2 = vand.u32 2147483647, %v469_v17 }
 0x100   :  { %4552 = vst [vmem:[#allocation46_spill] sm:$0xff] %v3299_v54 }
 0x101   :  { %v2408_v13 = vpop.eup %2407  ;;  %vm480_vm8 = vcmp.eq.f32.partialorder %v479_v2, 8.507059e+37 }
 0x102   :  { %v449_v25 = vadd.f32 1.0, %v2408_v13 }
 0x104   :  { %2409 = vrcp.f32 %v449_v25  ;;  %v461_v56 = vand.u32 2147483648, %v449_v25  ;;  %v459_v13 = vand.u32 2147483647, %v449_v25  ;;  %vm455_vm2 = vweird.f32 %v449_v25 }
 0x105   :  { %2411 = vrcp.f32 %v469_v17 }
 0x106   :  { %v462_v53 = vor.u32 1.1754944e-38, %v461_v56  ;;  %vm460_vm4 = vcmp.eq.f32.partialorder %v459_v13, 8.507059e+37  ;;  %v4567_v13 = vld [vmem:[#allocation13_spill] sm:$0xff] }
 0x107   :  { %v3304_v6 = vpop.f32.mrf.mxu1 }
 0x108   :  { %4553 = vst [vmem:[#allocation47_spill] sm:$0xff] %v3304_v6 }
 0x10a   :  { %v2410_v12 = vpop.eup %2409 }
 0x10b   :  { %v2412_v55 = vpop.eup %2411  ;;  %v451_v15 = vmul.f32 %v2410_v12, %v449_v25  ;;  %vm456_vm1 = vweird.f32 %v2410_v12  ;;  %v481_v25 = vand.u32 2147483648, %v469_v17 }
 0x10c   :  { %v471_v11 = vmul.f32 %v2412_v55, %v469_v17  ;;  %vm457_vm3 = vmor %vm455_vm2, %vm456_vm1  ;;  %vm476_vm6 = vweird.f32 %v2412_v55  ;;  %v4563_v17 = vld [vmem:[#allocation9_spill] sm:$0xff] }
 0x10d   :  { %v452_v7 = vsub.f32 1.0, %v451_v15  ;;  %v226_v15 = vadd.f32 %v3160_v23, %v3170_v57  ;;  %vm477_vm7 = vmor %vm475_vm5, %vm476_vm6 }
 0x10e   :  { %v472_v9 = vsub.f32 1.0, %v471_v11  ;;  %v482_v11 = vor.u32 1.1754944e-38, %v481_v25  ;;  %v4570_v25 = vld [vmem:[#allocation14_spill] sm:$0xff] }
 0x10f   :  { %v453_v14 = vmul.f32 %v2410_v12, %v452_v7 }
 0x110   :  { %v473_v44 = vmul.f32 %v2412_v55, %v472_v9 }
 0x111   :  { %v454_v49 = vadd.f32 %v2410_v12, %v453_v14 }
 0x112   :  { %v474_v14 = vadd.f32 %v2412_v55, %v473_v44 }
 0x113   :  { %v458_v47 = vsel %vm457_vm3, %v2410_v12, %v454_v49  ;;  %v4565_v12 = vld [vmem:[#allocation17_spill] sm:$0xff] }
 0x114   :  { %v463_v8 = vsel %vm460_vm4, %v462_v53, %v458_v47  ;;  %v478_v56 = vsel %vm477_vm7, %v2412_v55, %v474_v14  ;;  %v3306_v47 = vpop.f32.mrf.mxu1  ;;  %v4555_v53 = vld [vmem:[#allocation15_spill] sm:$0xff]  ;;  %v4566_v55 = vld [vmem:[#allocation10_spill] sm:$0xff]  ;;  %v3377_v14 = vperm.slane %v3100_v10, 4 }
 0x115   :  { %v486_v51 = vmul.f32 %v485_v24, %v463_v8  ;;  %4554 = vst [vmem:[#allocation48_spill] sm:$0xff] %v3306_v47  ;;  %v483_v8 = vsel %vm480_vm8, %v482_v11, %v478_v56  ;;  %v4564_v24 = vld [vmem:[#allocation12_spill] sm:$0xff] }
 0x116   :  { %4571 = vst [vmem:[#allocation9_spill] sm:$0xff] %v3377_v14 }
 0x117   :  { %v487_v7 = vadd.f32 %v486_v51, %v226_v15  ;;  %v4568_v15 = vld [vmem:[#allocation18_spill] sm:$0xff] }
 0x119   :  { %2413 = vtanh.f32 %v487_v7  ;;  %v4569_v7 = vld [vmem:[#allocation11_spill] sm:$0xff] }
 0x11c   :  { %v3314_v44 = vpop.f32.mrf.mxu1 }
 0x11d   :  { %4556 = vst [vmem:[#allocation15_spill] sm:$0xff] %v3314_v44 }
 0x11f   :  { %v2414_v49 = vpop.eup %2413 }
 0x120   :  { %v489_v23 = vsub.f32 %v4555_v53, %v2414_v49 }
 0x122   :  { %v490_v9 = vmul.f32 %v489_v23, %v483_v8 }
 0x124   :  { %v3309_v51 = vadd.f32 %v2414_v49, %v490_v9 }
 0x126   :  { %508 = vmatmul.f32.vlgmr.msrb.gmra.mxu3 %v3309_v51  ;;  %528 = vmatmul.f32.vlgmr.msrb.gmra.mxu0 %v3309_v51 }
 0x127   :  { %548 = vmatmul.f32.vlgmr.msrb.gmra.mxu1 %v3309_v51  ;;  %746 = vmatpush.msrb.mxu3 %v2966_v50 }
 0x128   :  { %813 = vmatpush.msrb.mxu0 %v2859_v18  ;;  %833 = vmatpush.msrb.mxu1 %v2864_v20  ;;  %v3328_v18 = vpop.f32.mrf.mxu1  ;;  %v3352_v20 = vperm.slane %v3100_v10, 5 }
 0x129   :  { %747 = vmatpush.msrb.mxu3 %v2972_v52  ;;  %4557 = vst [vmem:[#allocation49_spill] sm:$0xff] %v3328_v18 }
 0x12a   :  { %814 = vmatpush.msrb.mxu0 %v2861_v19  ;;  %834 = vmatpush.msrb.mxu1 %v2890_v27  ;;  %4559 = vst [vmem:[#allocation51_spill] sm:$0xff] %v3352_v20 }
 0x12b   :  { %748 = vmatpush.msrb.mxu3 %v2994_v58 }
 0x12c   :  { %815 = vmatpush.msrb.mxu0 %v2866_v21  ;;  %835 = vmatpush.msrb.mxu1 %v2896_v29 }
 0x12d   :  { %749 = vmatpush.msrb.mxu3 %v2996_v59 }
 0x12e   :  { %816 = vmatpush.msrb.mxu0 %v2872_v22  ;;  %836 = vmatpush.msrb.mxu1 %v2900_v31 }
 0x12f   :  { %750 = vmatpush.msrb.mxu3 %v2999_v60 }
 0x130   :  { %817 = vmatpush.msrb.mxu0 %v2888_v26  ;;  %837 = vmatpush.msrb.mxu1 %v2906_v33  ;;  %v3342_v19 = vpop.f32.mrf.mxu1 }
 0x131   :  { %751 = vmatpush.msrb.mxu3 %v3005_v61  ;;  %4558 = vst [vmem:[#allocation50_spill] sm:$0xff] %v3342_v19  ;;  %v4586_v19 = vld [vmem:[#allocation44_spill] sm:$0xff] }
 0x132   :  { %818 = vmatpush.msrb.mxu0 %v2892_v28  ;;  %838 = vmatpush.msrb.mxu1 %v2918_v35  ;;  %v4561_v28 = vld [vmem:[#allocation16_spill] sm:$0xff] }
 0x133   :  { %752 = vmatpush.msrb.mxu3 %v3009_v62 }
 0x134   :  { %819 = vmatpush.msrb.mxu0 %v2898_v30  ;;  %839 = vmatpush.msrb.mxu1 %v2924_v37 }
 0x135   :  { %753 = vmatpush.msrb.mxu3 %v3013_v63 }
 0x136   :  { %820 = vmatpush.msrb.mxu0 %v2904_v32  ;;  %840 = vmatpush.msrb.mxu1 %v2928_v39 }
 0x137   :  { %754 = vmatpush.msrb.mxu3 %v3017_v0 }
 0x138   :  { %821 = vmatpush.msrb.mxu0 %v2916_v34  ;;  %841 = vmatpush.msrb.mxu1 %v2934_v41  ;;  %v314_v21 = vpop.f32.mrf.mxu1 }
 0x139   :  { %755 = vmatpush.msrb.mxu3 %v3021_v1  ;;  %v3361_v22 = vadd.f32 %v314_v21, %v3352_v20 }
 0x13a   :  { %822 = vmatpush.msrb.mxu0 %v2920_v36  ;;  %842 = vmatpush.msrb.mxu1 %v2946_v43 }
 0x13b   :  { %756 = vmatpush.msrb.mxu3 %v3030_v3  ;;  %4560 = vst [vmem:[#allocation52_spill] sm:$0xff] %v3361_v22 }
 0x13c   :  { %823 = vmatpush.msrb.mxu0 %v2926_v38  ;;  %843 = vmatpush.msrb.mxu1 %v2952_v45  ;;  %v3366_v57 = vpop.f32.mrf.mxu0 }
 0x13d   :  { %757 = vmatpush.msrb.mxu3 %v3037_v4  ;;  %4562 = vst [vmem:[#allocation16_spill] sm:$0xff] %v3366_v57 }
 0x13e   :  { %824 = vmatpush.msrb.mxu0 %v2932_v40  ;;  %844 = vmatpush.msrb.mxu1 %v2954_v46 }
 0x13f   :  { %758 = vmatpush.msrb.mxu3 %v3041_v5 }
 0x140   :  { %825 = vmatpush.msrb.mxu0 %v2944_v42  ;;  %845 = vmatpush.msrb.mxu1 %v2960_v48  ;;  %v317_v2 = vpop.f32.mrf.mxu1 }
 0x141   :  { %759 = vmatpush.msrb.mxu3 %v4561_v28  ;;  %v3380_v11 = vadd.f32 %v317_v2, %v3352_v20 }
 0x142   :  { %826 = vmatpush.msrb.mxu0 %v4563_v17  ;;  %846 = vmatpush.msrb.mxu1 %v4564_v24 }
 0x143   :  { %760 = vmatpush.msrb.mxu3 %v4565_v12  ;;  %4572 = vst [vmem:[#allocation12_spill] sm:$0xff] %v3380_v11 }
 0x144   :  { %827 = vmatpush.msrb.mxu0 %v4566_v55  ;;  %847 = vmatpush.msrb.mxu1 %v4567_v13  ;;  %v285_v56 = vpop.f32.mrf.mxu0 }
 0x145   :  { %761 = vmatpush.msrb.mxu3 %v4568_v15  ;;  %v3383_v49 = vadd.f32 %v285_v56, %v3377_v14 }
 0x146   :  { %828 = vmatpush.msrb.mxu0 %v4569_v7  ;;  %848 = vmatpush.msrb.mxu1 %v4570_v25 }
 0x147   :  { %4573 = vst [vmem:[#allocation17_spill] sm:$0xff] %v3383_v49 }
 0x148   :  { %v319_v53 = vpop.f32.mrf.mxu1 }
 0x149   :  { %v3386_v23 = vadd.f32 %v319_v53, %v3352_v20 }
 0x14b   :  { %4574 = vst [vmem:[#allocation10_spill] sm:$0xff] %v3386_v23 }
 0x14c   :  { %v3388_v8 = vpop.f32.mrf.mxu0 }
 0x14d   :  { %4575 = vst [vmem:[#allocation13_spill] sm:$0xff] %v3388_v8 }
 0x150   :  { %v322_v9 = vpop.f32.mrf.mxu1 }
 0x151   :  { %v3391_v21 = vadd.f32 %v322_v9, %v3352_v20 }
 0x153   :  { %4576 = vst [vmem:[#allocation18_spill] sm:$0xff] %v3391_v21 }
 0x154   :  { %v290_v10 = vpop.f32.mrf.mxu0 }
 0x155   :  { %v3394_v22 = vadd.f32 %v290_v10, %v3377_v14 }
 0x157   :  { %4577 = vst [vmem:[#allocation53_spill] sm:$0xff] %v3394_v22 }
 0x158   :  { %v324_v2 = vpop.f32.mrf.mxu1 }
 0x159   :  { %v3397_v11 = vadd.f32 %v324_v2, %v3352_v20 }
 0x15b   :  { %4578 = vst [vmem:[#allocation54_spill] sm:$0xff] %v3397_v11 }
 0x15c   :  { %v293_v56 = vpop.f32.mrf.mxu0 }
 0x15d   :  { %v3400_v49 = vadd.f32 %v293_v56, %v3377_v14 }
 0x15f   :  { %4579 = vst [vmem:[#allocation55_spill] sm:$0xff] %v3400_v49  ;;  %v4585_v49 = vld [vmem:[#allocation42_spill] sm:$0xff] }
 0x160   :  { %v327_v53 = vpop.f32.mrf.mxu1 }
 0x161   :  { %v3403_v23 = vadd.f32 %v327_v53, %v3352_v20  ;;  %v199_v53 = vadd.f32 %v4586_v19, %v4585_v49 }
 0x163   :  { %4580 = vst [vmem:[#allocation56_spill] sm:$0xff] %v3403_v23 }
 0x164   :  { %v295_v8 = vpop.f32.mrf.mxu0 }
 0x165   :  { %v3406_v9 = vadd.f32 %v295_v8, %v3377_v14  ;;  %v4587_v8 = vld [vmem:[#allocation19_spill] sm:$0xff] }
 0x167   :  { %4581 = vst [vmem:[#allocation57_spill] sm:$0xff] %v3406_v9  ;;  %v4588_v9 = vld [vmem:[#allocation39_spill] sm:$0xff] }
 0x168   :  { %v329_v21 = vpop.f32.mrf.mxu1  ;;  %v170_v44 = vadd.f32 %v4588_v9, %v4587_v8  ;;  %v4589_v8 = vld [vmem:[#allocation30_spill] sm:$0xff] }
 0x169   :  { %v3409_v10 = vadd.f32 %v329_v21, %v3352_v20 }
 0x16b   :  { %4582 = vst [vmem:[#allocation58_spill] sm:$0xff] %v3409_v10 }
 0x16c   :  { %v298_v22 = vpop.f32.mrf.mxu0 }
 0x16d   :  { %v3412_v2 = vadd.f32 %v298_v22, %v3377_v14 }
 0x16f   :  { %4583 = vst [vmem:[#allocation59_spill] sm:$0xff] %v3412_v2 }
 0x174   :  { %v300_v11 = vpop.f32.mrf.mxu0 }
 0x175   :  { %v3415_v56 = vadd.f32 %v300_v11, %v3377_v14 }
 0x177   :  { %4584 = vst [vmem:[#allocation60_spill] sm:$0xff] %v3415_v56 }
 0x1a3   :  { %v529_v23 = vpop.f32.mrf.mxu0 }
 0x1a4   :  { %v572_v57 = vadd.f32 %v529_v23, %v199_v53  ;;  %v549_v54 = vpop.f32.mrf.mxu1 }
 0x1a6   :  { %v2320_v18 = vmul.f32 -1.442695, %v572_v57 }
 0x1a8   :  { %2415 = vpow2.f32 %v2320_v18 }
 0x1a9   :  { %v509_v47 = vpop.f32.mrf.mxu3 }
 0x1aa   :  { %v552_v21 = vadd.f32 %v509_v47, %v170_v44 }
 0x1ac   :  { %v2319_v10 = vmul.f32 -1.442695, %v552_v21 }
 0x1ae   :  { %2417 = vpow2.f32 %v2319_v10  ;;  %v2416_v22 = vpop.eup %2415  ;;  %v592_v10 = vadd.f32 %v3297_v16, %v549_v54 }
 0x1af   :  { %v576_v20 = vadd.f32 1.0, %v2416_v22 }
 0x1b1   :  { %vm582_vm14 = vweird.f32 %v576_v20  ;;  %v586_v7 = vand.u32 2147483647, %v576_v20 }
 0x1b3   :  { %vm587_vm0 = vcmp.eq.f32.partialorder %v586_v7, 8.507059e+37  ;;  %v3442_v7 = vld [vmem:[#allocation4 + $0x138] sm:$0xff] }
 0x1b4   :  { %v2418_v2 = vpop.eup %2417 }
 0x1b5   :  { %v556_v6 = vadd.f32 1.0, %v2418_v2 }
 0x1b7   :  { %2419 = vrcp.f32 %v556_v6  ;;  %v568_v57 = vand.u32 2147483648, %v556_v6  ;;  %v566_v9 = vand.u32 2147483647, %v556_v6  ;;  %vm562_vm10 = vweird.f32 %v556_v6 }
 0x1b8   :  { %2421 = vrcp.f32 %v576_v20 }
 0x1b9   :  { %v569_v18 = vor.u32 1.1754944e-38, %v568_v57  ;;  %vm567_vm12 = vcmp.eq.f32.partialorder %v566_v9, 8.507059e+37 }
 0x1bd   :  { %v2420_v11 = vpop.eup %2419 }
 0x1be   :  { %v2422_v56 = vpop.eup %2421  ;;  %v558_v19 = vmul.f32 %v2420_v11, %v556_v6  ;;  %vm563_vm9 = vweird.f32 %v2420_v11 }
 0x1bf   :  { %v578_v23 = vmul.f32 %v2422_v56, %v576_v20  ;;  %vm564_vm11 = vmor %vm562_vm10, %vm563_vm9  ;;  %vm583_vm13 = vweird.f32 %v2422_v56 }
 0x1c0   :  { %v559_v14 = vsub.f32 1.0, %v558_v19  ;;  %vm584_vm15 = vmor %vm582_vm14, %vm583_vm13 }
 0x1c1   :  { %v579_v44 = vsub.f32 1.0, %v578_v23 }
 0x1c2   :  { %v560_v53 = vmul.f32 %v2420_v11, %v559_v14  ;;  %v588_v14 = vand.u32 2147483648, %v576_v20  ;;  %v3430_v20 = vld [vmem:[#allocation4 + $0x168] sm:$0xff] }
 0x1c3   :  { %v580_v49 = vmul.f32 %v2422_v56, %v579_v44 }
 0x1c4   :  { %v561_v47 = vadd.f32 %v2420_v11, %v560_v53  ;;  %v589_v53 = vor.u32 1.1754944e-38, %v588_v14  ;;  %v3510_v14 = vld [vmem:[#allocation4 + $0x158] sm:$0xff] }
 0x1c5   :  { %v581_v25 = vadd.f32 %v2422_v56, %v580_v49 }
 0x1c6   :  { %v565_v2 = vsel %vm564_vm11, %v2420_v11, %v561_v47 }
 0x1c7   :  { %v570_v21 = vsel %vm567_vm12, %v569_v18, %v565_v2  ;;  %v585_v6 = vsel %vm584_vm15, %v2422_v56, %v581_v25  ;;  %v3433_v25 = vld [vmem:[#allocation4 + $0x170] sm:$0xff] }
 0x1c8   :  { %v593_v22 = vmul.f32 %v592_v10, %v570_v21  ;;  %v590_v11 = vsel %vm587_vm0, %v589_v53, %v585_v6  ;;  %v3513_v6 = vld [vmem:[#allocation4 + $0x148] sm:$0xff]  ;;  %v3520_v53 = vld [vmem:[#allocation4 + $0x130] sm:$0xff] }
 0x1ca   :  { %v594_v19 = vadd.f32 %v593_v22, %v4589_v8  ;;  %v3501_v22 = vld [vmem:[#allocation4 + $0x178] sm:$0xff] }
 0x1cc   :  { %2423 = vtanh.f32 %v594_v19  ;;  %v3506_v19 = vld [vmem:[#allocation4 + $0x160] sm:$0xff] }
 0x1d2   :  { %v2424_v23 = vpop.eup %2423 }
 0x1d3   :  { %v596_v54 = vsub.f32 %v3309_v51, %v2424_v23  ;;  %v3437_v51 = vld [vmem:[#allocation4 + $0x150] sm:$0xff] }
 0x1d5   :  { %v597_v57 = vmul.f32 %v596_v54, %v590_v11  ;;  %v3524_v54 = vld [vmem:[#allocation4 + $0x128] sm:$0xff]  ;;  %v3527_v11 = vld [vmem:[#allocation4 + $0x118] sm:$0xff] }
 0x1d7   :  { %v3424_v9 = vadd.f32 %v2424_v23, %v597_v57  ;;  %v3517_v23 = vld [vmem:[#allocation4 + $0x140] sm:$0xff]  ;;  %v3530_v57 = vld [vmem:[#allocation4 + $0x108] sm:$0xff] }
 0x1d9   :  { %615 = vmatmul.f32.vlgmr.msra.gmra.mxu2 %v3424_v9  ;;  %635 = vmatmul.f32.vlgmr.msra.gmra.mxu3 %v3424_v9 }
 0x1da   :  { %655 = vmatmul.f32.vlgmr.msra.gmra.mxu0 %v3424_v9  ;;  %853 = vmatpush.msra.mxu2 %v2966_v50  ;;  %v3447_v50 = vld [vmem:[#allocation4 + $0x120] sm:$0xff] }
 0x1db   :  { %920 = vmatpush.msra.mxu3 %v3430_v20  ;;  %940 = vmatpush.msra.mxu0 %v3433_v25 }
 0x1dc   :  { %854 = vmatpush.msra.mxu2 %v2972_v52 }
 0x1dd   :  { %921 = vmatpush.msra.mxu3 %v3437_v51  ;;  %941 = vmatpush.msra.mxu0 %v2890_v27  ;;  %v3455_v27 = vld [vmem:[#allocation4 + $0xf0] sm:$0xff] }
 0x1de   :  { %855 = vmatpush.msra.mxu2 %v2994_v58 }
 0x1df   :  { %922 = vmatpush.msra.mxu3 %v3442_v7  ;;  %942 = vmatpush.msra.mxu0 %v2896_v29  ;;  %v4591_v29 = vld [vmem:[#allocation14_spill] sm:$0xff] }
 0x1e0   :  { %856 = vmatpush.msra.mxu2 %v2996_v59 }
 0x1e1   :  { %923 = vmatpush.msra.mxu3 %v3447_v50  ;;  %943 = vmatpush.msra.mxu0 %v2900_v31  ;;  %v4593_v31 = vld [vmem:[#allocation20_spill] sm:$0xff] }
 0x1e2   :  { %857 = vmatpush.msra.mxu2 %v2999_v60 }
 0x1e3   :  { %924 = vmatpush.msra.mxu3 %v2888_v26  ;;  %944 = vmatpush.msra.mxu0 %v2906_v33  ;;  %v4590_v26 = vld [vmem:[#allocation11_spill] sm:$0xff]  ;;  %v4594_v33 = vld [vmem:[#allocation42_spill] sm:$0xff] }
 0x1e4   :  { %858 = vmatpush.msra.mxu2 %v3005_v61 }
 0x1e5   :  { %925 = vmatpush.msra.mxu3 %v3455_v27  ;;  %945 = vmatpush.msra.mxu0 %v2918_v35 }
 0x1e6   :  { %859 = vmatpush.msra.mxu2 %v3009_v62 }
 0x1e7   :  { %926 = vmatpush.msra.mxu3 %v2898_v30  ;;  %946 = vmatpush.msra.mxu0 %v2924_v37  ;;  %v4592_v30 = vld [vmem:[#allocation19_spill] sm:$0xff] }
 0x1e8   :  { %860 = vmatpush.msra.mxu2 %v3013_v63 }
 0x1e9   :  { %927 = vmatpush.msra.mxu3 %v2904_v32  ;;  %947 = vmatpush.msra.mxu0 %v2928_v39  ;;  %v173_v32 = vadd.f32 %v4593_v31, %v4592_v30  ;;  %v3543_v30 = vld [vmem:[#allocation4 + $0xe8] sm:$0xff]  ;;  %v3546_v31 = vld [vmem:[#allocation4 + $0xd8] sm:$0xff] }
 0x1ea   :  { %861 = vmatpush.msra.mxu2 %v3017_v0 }
 0x1eb   :  { %928 = vmatpush.msra.mxu3 %v2916_v34  ;;  %948 = vmatpush.msra.mxu0 %v2934_v41  ;;  %v4595_v34 = vld [vmem:[#allocation45_spill] sm:$0xff] }
 0x1ec   :  { %862 = vmatpush.msra.mxu2 %v3021_v1  ;;  %v202_v35 = vadd.f32 %v4595_v34, %v4594_v33  ;;  %v3552_v34 = vld [vmem:[#allocation4 + $0xd0] sm:$0xff] }
 0x1ed   :  { %929 = vmatpush.msra.mxu3 %v2920_v36  ;;  %949 = vmatpush.msra.mxu0 %v2946_v43 }
 0x1ee   :  { %863 = vmatpush.msra.mxu2 %v3030_v3 }
 0x1ef   :  { %930 = vmatpush.msra.mxu3 %v2926_v38  ;;  %950 = vmatpush.msra.mxu0 %v2952_v45 }
 0x1f0   :  { %864 = vmatpush.msra.mxu2 %v3037_v4 }
 0x1f1   :  { %931 = vmatpush.msra.mxu3 %v2932_v40  ;;  %951 = vmatpush.msra.mxu0 %v2954_v46 }
 0x1f2   :  { %865 = vmatpush.msra.mxu2 %v3041_v5 }
 0x1f3   :  { %932 = vmatpush.msra.mxu3 %v2944_v42  ;;  %952 = vmatpush.msra.mxu0 %v2960_v48 }
 0x1f4   :  { %866 = vmatpush.msra.mxu2 %v4561_v28 }
 0x1f5   :  { %933 = vmatpush.msra.mxu3 %v4563_v17  ;;  %953 = vmatpush.msra.mxu0 %v4564_v24 }
 0x1f6   :  { %867 = vmatpush.msra.mxu2 %v4565_v12 }
 0x1f7   :  { %934 = vmatpush.msra.mxu3 %v4566_v55  ;;  %954 = vmatpush.msra.mxu0 %v4567_v13  ;;  %v4596_v55 = vld [vmem:[#allocation32_spill] sm:$0xff] }
 0x1f8   :  { %868 = vmatpush.msra.mxu2 %v4568_v15 }
 0x1f9   :  { %935 = vmatpush.msra.mxu3 %v4590_v26  ;;  %955 = vmatpush.msra.mxu0 %v4591_v29  ;;  %v3536_v26 = vld [vmem:[#allocation4 + $0x100] sm:$0xff]  ;;  %v3540_v29 = vld [vmem:[#allocation4 + $0xf8] sm:$0xff] }
 0x257   :  { %v656_v0 = vpop.f32.mrf.mxu0 }
 0x258   :  { %v699_v5 = vadd.f32 %v3297_v16, %v656_v0  ;;  %v3612_v0 = vld [vmem:[#allocation4 + $0x38] sm:$0xff] }
 0x259   :  { %4598 = vst [vmem:[#allocation39_spill] sm:$0xff] %v3612_v0 }
 0x25c   :  { %v616_v36 = vpop.f32.mrf.mxu2  ;;  %v636_v37 = vpop.f32.mrf.mxu3 }
 0x25d   :  { %v659_v38 = vadd.f32 %v616_v36, %v173_v32  ;;  %v679_v39 = vadd.f32 %v636_v37, %v202_v35  ;;  %v3549_v32 = vld [vmem:[#allocation4 + $0xe0] sm:$0xff]  ;;  %v3558_v36 = vld [vmem:[#allocation4 + $0xc8] sm:$0xff]  ;;  %v3561_v37 = vld [vmem:[#allocation4 + $0xb8] sm:$0xff] }
 0x25e   :  { %v3555_v35 = vld [vmem:[#allocation4 + $0xc0] sm:$0xff] }
 0x25f   :  { %v2321_v40 = vmul.f32 -1.442695, %v659_v38  ;;  %v2322_v41 = vmul.f32 -1.442695, %v679_v39  ;;  %v3564_v38 = vld [vmem:[#allocation4 + $0xa8] sm:$0xff]  ;;  %v3567_v39 = vld [vmem:[#allocation4 + $0xb0] sm:$0xff] }
 0x261   :  { %2425 = vpow2.f32 %v2321_v40  ;;  %v3570_v40 = vld [vmem:[#allocation4 + $0xa0] sm:$0xff] }
 0x262   :  { %2427 = vpow2.f32 %v2322_v41  ;;  %v3573_v41 = vld [vmem:[#allocation4 + $0x90] sm:$0xff] }
 0x267   :  { %v2426_v42 = vpop.eup %2425 }
 0x268   :  { %v2428_v43 = vpop.eup %2427  ;;  %v663_v45 = vadd.f32 1.0, %v2426_v42  ;;  %v3576_v42 = vld [vmem:[#allocation4 + $0x98] sm:$0xff] }
 0x269   :  { %v683_v46 = vadd.f32 1.0, %v2428_v43  ;;  %v3579_v43 = vld [vmem:[#allocation4 + $0x88] sm:$0xff] }
 0x26a   :  { %2429 = vrcp.f32 %v663_v45  ;;  %v675_v60 = vand.u32 2147483648, %v663_v45  ;;  %v673_v63 = vand.u32 2147483647, %v663_v45  ;;  %vm669_vm2 = vweird.f32 %v663_v45 }
 0x26b   :  { %2431 = vrcp.f32 %v683_v46  ;;  %v695_v49 = vand.u32 2147483648, %v683_v46  ;;  %vm689_vm6 = vweird.f32 %v683_v46  ;;  %v693_v56 = vand.u32 2147483647, %v683_v46 }
 0x26c   :  { %v676_v3 = vor.u32 1.1754944e-38, %v675_v60  ;;  %vm674_vm4 = vcmp.eq.f32.partialorder %v673_v63, 8.507059e+37  ;;  %v3600_v60 = vld [vmem:[#allocation4 + $0x48] sm:$0xff]  ;;  %v3609_v63 = vld [vmem:[#allocation4 + $0x30] sm:$0xff] }
 0x26d   :  { %v696_v44 = vor.u32 1.1754944e-38, %v695_v49  ;;  %vm694_vm8 = vcmp.eq.f32.partialorder %v693_v56, 8.507059e+37  ;;  %4597 = vst [vmem:[#allocation44_spill] sm:$0xff] %v3609_v63 }
 0x270   :  { %v2430_v48 = vpop.eup %2429 }
 0x271   :  { %v2432_v52 = vpop.eup %2431  ;;  %v665_v58 = vmul.f32 %v2430_v48, %v663_v45  ;;  %vm670_vm1 = vweird.f32 %v2430_v48  ;;  %v3582_v45 = vld [vmem:[#allocation4 + $0x78] sm:$0xff] }
 0x272   :  { %v685_v61 = vmul.f32 %v2432_v52, %v683_v46  ;;  %vm671_vm3 = vmor %vm669_vm2, %vm670_vm1  ;;  %vm690_vm5 = vweird.f32 %v2432_v52  ;;  %v3585_v46 = vld [vmem:[#allocation4 + $0x80] sm:$0xff] }
 0x273   :  { %v666_v59 = vsub.f32 1.0, %v665_v58  ;;  %vm691_vm7 = vmor %vm689_vm6, %vm690_vm5  ;;  %v3594_v58 = vld [vmem:[#allocation4 + $0x68] sm:$0xff] }
 0x274   :  { %v686_v4 = vsub.f32 1.0, %v685_v61  ;;  %v3603_v61 = vld [vmem:[#allocation4 + $0x50] sm:$0xff] }
 0x275   :  { %v667_v62 = vmul.f32 %v2430_v48, %v666_v59  ;;  %v3597_v59 = vld [vmem:[#allocation4 + $0x58] sm:$0xff] }
 0x276   :  { %v687_v12 = vmul.f32 %v2432_v52, %v686_v4  ;;  %v3621_v4 = vld [vmem:[#allocation4 + $0x20] sm:$0xff] }
 0x277   :  { %v668_v1 = vadd.f32 %v2430_v48, %v667_v62  ;;  %v3606_v62 = vld [vmem:[#allocation4 + $0x40] sm:$0xff]  ;;  %4601 = vst [vmem:[#allocation14_spill] sm:$0xff] %v3621_v4 }
 0x278   :  { %v688_v15 = vadd.f32 %v2432_v52, %v687_v12  ;;  %v4605_v12 = vld [vmem:[#allocation22_spill] sm:$0xff] }
 0x279   :  { %v672_v28 = vsel %vm671_vm3, %v2430_v48, %v668_v1  ;;  %v3588_v48 = vld [vmem:[#allocation4 + $0x70] sm:$0xff]  ;;  %v3615_v1 = vld [vmem:[#allocation4 + $0x28] sm:$0xff] }
 0x27a   :  { %v677_v17 = vsel %vm674_vm4, %v676_v3, %v672_v28  ;;  %v692_v8 = vsel %vm691_vm7, %v2432_v52, %v688_v15  ;;  %v3591_v52 = vld [vmem:[#allocation4 + $0x60] sm:$0xff]  ;;  %4599 = vst [vmem:[#allocation30_spill] sm:$0xff] %v3615_v1  ;;  %v3618_v3 = vld [vmem:[#allocation4 + $0x18] sm:$0xff]  ;;  %v4606_v15 = vld [vmem:[#allocation46_spill] sm:$0xff] }
 0x27b   :  { %v700_v24 = vmul.f32 %v699_v5, %v677_v17  ;;  %v697_v10 = vsel %vm694_vm8, %v696_v44, %v692_v8  ;;  %4600 = vst [vmem:[#allocation11_spill] sm:$0xff] %v3618_v3  ;;  %v3624_v5 = vld [vmem:[#allocation4 + $0x10] sm:$0xff]  ;;  %v3627_v28 = vld [vmem:[#allocation4] sm:$0xff]  ;;  %v3630_v17 = vld [vmem:[#allocation4 + $0x8] sm:$0xff]  ;;  %v204_v49 = vadd.f32 %v4606_v15, %v4594_v33 }
 0x27c   :  { %4602 = vst [vmem:[#allocation19_spill] sm:$0xff] %v3624_v5 }
 0x27d   :  { %v701_v13 = vadd.f32 %v700_v24, %v4596_v55  ;;  %4603 = vst [vmem:[#allocation20_spill] sm:$0xff] %v3627_v28 }
 0x27e   :  { %4604 = vst [vmem:[#allocation45_spill] sm:$0xff] %v3630_v17 }
 0x27f   :  { %2433 = vtanh.f32 %v701_v13 }
 0x285   :  { %v2434_v47 = vpop.eup %2433 }
 0x286   :  { %v703_v18 = vsub.f32 %v3424_v9, %v2434_v47  ;;  %v3533_v9 = vld [vmem:[#allocation4 + $0x110] sm:$0xff] }
 0x288   :  { %v704_v2 = vmul.f32 %v703_v18, %v697_v10 }
 0x28a   :  { %v3496_v21 = vadd.f32 %v2434_v47, %v704_v2 }
 0x28c   :  { %722 = vmatmul.f32.vlgmr.msra.gmra.mxu1 %v3496_v21  ;;  %742 = vmatmul.f32.vlgmr.msrb.gmra.mxu2 %v3496_v21 }
 0x28d   :  { %762 = vmatmul.f32.vlgmr.msrb.gmra.mxu3 %v3496_v21  ;;  %960 = vmatpush.msra.mxu1 %v3501_v22 }
 0x28e   :  { %1027 = vmatpush.msrb.mxu2 %v3430_v20  ;;  %1047 = vmatpush.msrb.mxu3 %v3433_v25 }
 0x28f   :  { %961 = vmatpush.msra.mxu1 %v3506_v19 }
 0x290   :  { %1028 = vmatpush.msrb.mxu2 %v3437_v51  ;;  %1048 = vmatpush.msrb.mxu3 %v3510_v14 }
 0x291   :  { %962 = vmatpush.msra.mxu1 %v3513_v6 }
 0x292   :  { %1029 = vmatpush.msrb.mxu2 %v3442_v7  ;;  %1049 = vmatpush.msrb.mxu3 %v3517_v23 }
 0x293   :  { %963 = vmatpush.msra.mxu1 %v3520_v53 }
 0x294   :  { %1030 = vmatpush.msrb.mxu2 %v3447_v50  ;;  %1050 = vmatpush.msrb.mxu3 %v3524_v54 }
 0x295   :  { %964 = vmatpush.msra.mxu1 %v3527_v11 }
 0x296   :  { %1031 = vmatpush.msrb.mxu2 %v3530_v57  ;;  %1051 = vmatpush.msrb.mxu3 %v3533_v9 }
 0x297   :  { %965 = vmatpush.msra.mxu1 %v3536_v26 }
 0x298   :  { %1032 = vmatpush.msrb.mxu2 %v3455_v27  ;;  %1052 = vmatpush.msrb.mxu3 %v3540_v29 }
 0x299   :  { %966 = vmatpush.msra.mxu1 %v3543_v30 }
 0x29a   :  { %1033 = vmatpush.msrb.mxu2 %v3546_v31  ;;  %1053 = vmatpush.msrb.mxu3 %v3549_v32 }
 0x29b   :  { %967 = vmatpush.msra.mxu1 %v3552_v34 }
 0x29c   :  { %1034 = vmatpush.msrb.mxu2 %v3555_v35  ;;  %1054 = vmatpush.msrb.mxu3 %v3558_v36 }
 0x29d   :  { %968 = vmatpush.msra.mxu1 %v3561_v37 }
 0x29e   :  { %1035 = vmatpush.msrb.mxu2 %v3564_v38  ;;  %1055 = vmatpush.msrb.mxu3 %v3567_v39 }
 0x29f   :  { %969 = vmatpush.msra.mxu1 %v3570_v40 }
 0x2a0   :  { %1036 = vmatpush.msrb.mxu2 %v3573_v41  ;;  %1056 = vmatpush.msrb.mxu3 %v3576_v42 }
 0x2a1   :  { %970 = vmatpush.msra.mxu1 %v3579_v43 }
 0x2a2   :  { %1037 = vmatpush.msrb.mxu2 %v3582_v45  ;;  %1057 = vmatpush.msrb.mxu3 %v3585_v46 }
 0x2a3   :  { %971 = vmatpush.msra.mxu1 %v3588_v48 }
 0x2a4   :  { %1038 = vmatpush.msrb.mxu2 %v3591_v52  ;;  %1058 = vmatpush.msrb.mxu3 %v3594_v58 }
 0x2a5   :  { %972 = vmatpush.msra.mxu1 %v3597_v59 }
 0x2a6   :  { %1039 = vmatpush.msrb.mxu2 %v3600_v60  ;;  %1059 = vmatpush.msrb.mxu3 %v3603_v61 }
 0x2a7   :  { %973 = vmatpush.msra.mxu1 %v3606_v62 }
 0x2a8   :  { %1040 = vmatpush.msrb.mxu2 %v3609_v63  ;;  %1060 = vmatpush.msrb.mxu3 %v3612_v0 }
 0x2a9   :  { %974 = vmatpush.msra.mxu1 %v3615_v1 }
 0x2aa   :  { %1041 = vmatpush.msrb.mxu2 %v3618_v3  ;;  %1061 = vmatpush.msrb.mxu3 %v3621_v4 }
 0x2ab   :  { %975 = vmatpush.msra.mxu1 %v3624_v5 }
 0x2ac   :  { %1042 = vmatpush.msrb.mxu2 %v3627_v28  ;;  %1062 = vmatpush.msrb.mxu3 %v3630_v17 }
 0x309   :  { %v723_v24 = vpop.f32.mrf.mxu1 }
 0x30a   :  { %v766_v55 = vadd.f32 %v723_v24, %v4605_v12 }
 0x30c   :  { %v2323_v13 = vmul.f32 -1.442695, %v766_v55 }
 0x30e   :  { %2435 = vpow2.f32 %v2323_v13 }
 0x30f   :  { %v743_v56 = vpop.f32.mrf.mxu2 }
 0x310   :  { %v786_v8 = vadd.f32 %v743_v56, %v204_v49  ;;  %v763_v15 = vpop.f32.mrf.mxu3 }
 0x312   :  { %v2324_v47 = vmul.f32 -1.442695, %v786_v8 }
 0x314   :  { %v2436_v44 = vpop.eup %2435  ;;  %2437 = vpow2.f32 %v2324_v47  ;;  %v806_v47 = vadd.f32 %v3297_v16, %v763_v15 }
 0x315   :  { %v770_v18 = vadd.f32 1.0, %v2436_v44 }
 0x317   :  { %2439 = vrcp.f32 %v770_v18  ;;  %v782_v4 = vand.u32 2147483648, %v770_v18  ;;  %v780_v12 = vand.u32 2147483647, %v770_v18  ;;  %vm776_vm10 = vweird.f32 %v770_v18 }
 0x319   :  { %v783_v49 = vor.u32 1.1754944e-38, %v782_v4  ;;  %vm781_vm12 = vcmp.eq.f32.partialorder %v780_v12, 8.507059e+37 }
 0x31a   :  { %v2438_v10 = vpop.eup %2437 }
 0x31b   :  { %v790_v2 = vadd.f32 1.0, %v2438_v10 }
 0x31d   :  { %v2440_v28 = vpop.eup %2439  ;;  %2441 = vrcp.f32 %v790_v2  ;;  %v802_v0 = vand.u32 2147483648, %v790_v2  ;;  %vm796_vm14 = vweird.f32 %v790_v2  ;;  %v800_v63 = vand.u32 2147483647, %v790_v2 }
 0x31e   :  { %v772_v17 = vmul.f32 %v2440_v28, %v770_v18  ;;  %vm777_vm9 = vweird.f32 %v2440_v28 }
 0x31f   :  { %vm778_vm11 = vmor %vm776_vm10, %vm777_vm9  ;;  %v803_v4 = vor.u32 1.1754944e-38, %v802_v0  ;;  %vm801_vm0 = vcmp.eq.f32.partialorder %v800_v63, 8.507059e+37 }
 0x320   :  { %v773_v5 = vsub.f32 1.0, %v772_v17  ;;  %v4607_v17 = vld [vmem:[#allocation34_spill] sm:$0xff] }
 0x322   :  { %v774_v24 = vmul.f32 %v2440_v28, %v773_v5 }
 0x323   :  { %v2442_v55 = vpop.eup %2441 }
 0x324   :  { %v792_v13 = vmul.f32 %v2442_v55, %v790_v2  ;;  %v775_v33 = vadd.f32 %v2440_v28, %v774_v24  ;;  %vm797_vm13 = vweird.f32 %v2442_v55 }
 0x325   :  { %vm798_vm15 = vmor %vm796_vm14, %vm797_vm13 }
 0x326   :  { %v793_v56 = vsub.f32 1.0, %v792_v13  ;;  %v779_v8 = vsel %vm778_vm11, %v2440_v28, %v775_v33 }
 0x327   :  { %v784_v44 = vsel %vm781_vm12, %v783_v49, %v779_v8 }
 0x328   :  { %v807_v10 = vmul.f32 %v806_v47, %v784_v44  ;;  %v794_v3 = vmul.f32 %v2442_v55, %v793_v56 }
 0x32a   :  { %v808_v1 = vadd.f32 %v807_v10, %v4607_v17  ;;  %v795_v5 = vadd.f32 %v2442_v55, %v794_v3  ;;  %v4619_v10 = vld [vmem:[#allocation36_spill] sm:$0xff] }
 0x32c   :  { %2443 = vtanh.f32 %v808_v1  ;;  %v799_v18 = vsel %vm798_vm15, %v2442_v55, %v795_v5 }
 0x32d   :  { %v804_v28 = vsel %vm801_vm0, %v803_v4, %v799_v18 }
 0x332   :  { %v2444_v24 = vpop.eup %2443 }
 0x333   :  { %v810_v33 = vsub.f32 %v3496_v21, %v2444_v24  ;;  %v4614_v21 = vld [vmem:[#allocation20_spill] sm:$0xff] }
 0x335   :  { %v811_v12 = vmul.f32 %v810_v33, %v804_v28 }
 0x337   :  { %v3639_v15 = vadd.f32 %v2444_v24, %v811_v12 }
 0x339   :  { %829 = vmatmul.f32.vlgmr.msrb.gmra.mxu0 %v3639_v15  ;;  %849 = vmatmul.f32.vlgmr.msrb.gmra.mxu1 %v3639_v15 }
 0x33a   :  { %869 = vmatmul.f32.vlgmr.msra.gmra.mxu2 %v3639_v15  ;;  %1067 = vmatpush.msrb.mxu0 %v3501_v22 }
 0x33b   :  { %1134 = vmatpush.msrb.mxu1 %v3430_v20  ;;  %1154 = vmatpush.msra.mxu2 %v3433_v25  ;;  %v4608_v20 = vld [vmem:[#allocation44_spill] sm:$0xff]  ;;  %v4609_v25 = vld [vmem:[#allocation39_spill] sm:$0xff] }
 0x33c   :  { %1068 = vmatpush.msrb.mxu0 %v3506_v19 }
 0x33d   :  { %1135 = vmatpush.msrb.mxu1 %v3437_v51  ;;  %1155 = vmatpush.msra.mxu2 %v3510_v14  ;;  %v4610_v51 = vld [vmem:[#allocation30_spill] sm:$0xff]  ;;  %v4615_v14 = vld [vmem:[#allocation45_spill] sm:$0xff] }
 0x33e   :  { %1069 = vmatpush.msrb.mxu0 %v3513_v6 }
 0x33f   :  { %1136 = vmatpush.msrb.mxu1 %v3442_v7  ;;  %1156 = vmatpush.msra.mxu2 %v3517_v23  ;;  %v4611_v7 = vld [vmem:[#allocation11_spill] sm:$0xff]  ;;  %v4616_v23 = vld [vmem:[#allocation42_spill] sm:$0xff] }
 0x340   :  { %1070 = vmatpush.msrb.mxu0 %v3520_v53 }
 0x341   :  { %1137 = vmatpush.msrb.mxu1 %v3447_v50  ;;  %1157 = vmatpush.msra.mxu2 %v3524_v54  ;;  %v4612_v50 = vld [vmem:[#allocation14_spill] sm:$0xff]  ;;  %v4617_v54 = vld [vmem:[#allocation47_spill] sm:$0xff] }
 0x342   :  { %1071 = vmatpush.msrb.mxu0 %v3527_v11 }
 0x343   :  { %1138 = vmatpush.msrb.mxu1 %v3530_v57  ;;  %1158 = vmatpush.msra.mxu2 %v3533_v9  ;;  %v207_v57 = vadd.f32 %v4617_v54, %v4616_v23 }
 0x344   :  { %1072 = vmatpush.msrb.mxu0 %v3536_v26 }
 0x345   :  { %1139 = vmatpush.msrb.mxu1 %v3455_v27  ;;  %1159 = vmatpush.msra.mxu2 %v3540_v29  ;;  %v4613_v27 = vld [vmem:[#allocation19_spill] sm:$0xff] }
 0x346   :  { %1073 = vmatpush.msrb.mxu0 %v3543_v30 }
 0x347   :  { %1140 = vmatpush.msrb.mxu1 %v3546_v31  ;;  %1160 = vmatpush.msra.mxu2 %v3549_v32  ;;  %v4618_v31 = vld [vmem:[#allocation25_spill] sm:$0xff] }
 0x348   :  { %1074 = vmatpush.msrb.mxu0 %v3552_v34 }
 0x349   :  { %1141 = vmatpush.msrb.mxu1 %v3555_v35  ;;  %1161 = vmatpush.msra.mxu2 %v3558_v36 }
 0x34a   :  { %1075 = vmatpush.msrb.mxu0 %v3561_v37 }
 0x34b   :  { %1142 = vmatpush.msrb.mxu1 %v3564_v38  ;;  %1162 = vmatpush.msra.mxu2 %v3567_v39 }
 0x34c   :  { %1076 = vmatpush.msrb.mxu0 %v3570_v40 }
 0x34d   :  { %1143 = vmatpush.msrb.mxu1 %v3573_v41  ;;  %1163 = vmatpush.msra.mxu2 %v3576_v42 }
 0x34e   :  { %1077 = vmatpush.msrb.mxu0 %v3579_v43 }
 0x34f   :  { %1144 = vmatpush.msrb.mxu1 %v3582_v45  ;;  %1164 = vmatpush.msra.mxu2 %v3585_v46 }
 0x350   :  { %1078 = vmatpush.msrb.mxu0 %v3588_v48 }
 0x351   :  { %1145 = vmatpush.msrb.mxu1 %v3591_v52  ;;  %1165 = vmatpush.msra.mxu2 %v3594_v58 }
 0x352   :  { %1079 = vmatpush.msrb.mxu0 %v3597_v59 }
 0x353   :  { %1146 = vmatpush.msrb.mxu1 %v3600_v60  ;;  %1166 = vmatpush.msra.mxu2 %v3603_v61 }
 0x354   :  { %1080 = vmatpush.msrb.mxu0 %v3606_v62 }
 0x355   :  { %1147 = vmatpush.msrb.mxu1 %v4608_v20  ;;  %1167 = vmatpush.msra.mxu2 %v4609_v25 }
 0x356   :  { %1081 = vmatpush.msrb.mxu0 %v4610_v51 }
 0x357   :  { %1148 = vmatpush.msrb.mxu1 %v4611_v7  ;;  %1168 = vmatpush.msra.mxu2 %v4612_v50 }
 0x358   :  { %1082 = vmatpush.msrb.mxu0 %v4613_v27 }
 0x359   :  { %1149 = vmatpush.msrb.mxu1 %v4614_v21  ;;  %1169 = vmatpush.msra.mxu2 %v4615_v14 }
 0x3b6   :  { %v830_v9 = vpop.f32.mrf.mxu0  ;;  %v850_v29 = vpop.f32.mrf.mxu1 }
 0x3b7   :  { %v873_v32 = vadd.f32 %v830_v9, %v4618_v31  ;;  %v893_v35 = vadd.f32 %v850_v29, %v207_v57  ;;  %v3725_v31 = vld [vmem:[%s4452_s5] ss:$0 sm:$0xff] }
 0x3b9   :  { %v2325_v36 = vmul.f32 -1.442695, %v873_v32  ;;  %v2326_v38 = vmul.f32 -1.442695, %v893_v35 }
 0x3bb   :  { %2445 = vpow2.f32 %v2325_v36 }
 0x3bc   :  { %2447 = vpow2.f32 %v2326_v38 }
 0x3bd   :  { %v870_v3 = vpop.f32.mrf.mxu2 }
 0x3be   :  { %v913_v56 = vadd.f32 %v3297_v16, %v870_v3 }
 0x3c1   :  { %v2446_v39 = vpop.eup %2445 }
 0x3c2   :  { %v2448_v41 = vpop.eup %2447  ;;  %v877_v42 = vadd.f32 1.0, %v2446_v39 }
 0x3c3   :  { %v897_v45 = vadd.f32 1.0, %v2448_v41  ;;  %v4622_v41 = vld [vmem:[#allocation38_spill] sm:$0xff] }
 0x3c4   :  { %2449 = vrcp.f32 %v877_v42  ;;  %v889_v63 = vand.u32 2147483648, %v877_v42  ;;  %v887_v1 = vand.u32 2147483647, %v877_v42  ;;  %vm883_vm2 = vweird.f32 %v877_v42 }
 0x3c5   :  { %2451 = vrcp.f32 %v897_v45  ;;  %v909_v18 = vand.u32 2147483648, %v897_v45  ;;  %vm903_vm6 = vweird.f32 %v897_v45  ;;  %v907_v24 = vand.u32 2147483647, %v897_v45 }
 0x3c6   :  { %v890_v13 = vor.u32 1.1754944e-38, %v889_v63  ;;  %vm888_vm4 = vcmp.eq.f32.partialorder %v887_v1, 8.507059e+37 }
 0x3c7   :  { %v910_v28 = vor.u32 1.1754944e-38, %v909_v18  ;;  %vm908_vm8 = vcmp.eq.f32.partialorder %v907_v24, 8.507059e+37 }
 0x3ca   :  { %v2450_v46 = vpop.eup %2449 }
 0x3cb   :  { %v2452_v52 = vpop.eup %2451  ;;  %v879_v58 = vmul.f32 %v2450_v46, %v877_v42  ;;  %vm884_vm1 = vweird.f32 %v2450_v46 }
 0x3cc   :  { %v899_v61 = vmul.f32 %v2452_v52, %v897_v45  ;;  %vm885_vm3 = vmor %vm883_vm2, %vm884_vm1  ;;  %vm904_vm5 = vweird.f32 %v2452_v52 }
 0x3cd   :  { %v880_v60 = vsub.f32 1.0, %v879_v58  ;;  %vm905_vm7 = vmor %vm903_vm6, %vm904_vm5 }
 0x3ce   :  { %v900_v55 = vsub.f32 1.0, %v899_v61 }
 0x3cf   :  { %v881_v0 = vmul.f32 %v2450_v46, %v880_v60 }
 0x3d0   :  { %v901_v44 = vmul.f32 %v2452_v52, %v900_v55 }
 0x3d1   :  { %v882_v2 = vadd.f32 %v2450_v46, %v881_v0 }
 0x3d2   :  { %v902_v5 = vadd.f32 %v2452_v52, %v901_v44 }
 0x3d3   :  { %v886_v49 = vsel %vm885_vm3, %v2450_v46, %v882_v2  ;;  %v4623_v2 = vld [vmem:[#allocation15_spill] sm:$0xff] }
 0x3d4   :  { %v891_v8 = vsel %vm888_vm4, %v890_v13, %v886_v49  ;;  %v906_v4 = vsel %vm905_vm7, %v2452_v52, %v902_v5  ;;  %v212_v55 = vadd.f32 %v4623_v2, %v4616_v23  ;;  %v3803_v2 = vld [vmem:[#allocation6 + $0xe8] sm:$0xff] }
 0x3d5   :  { %v914_v47 = vmul.f32 %v913_v56, %v891_v8  ;;  %v911_v20 = vsel %vm908_vm8, %v910_v28, %v906_v4  ;;  %v4624_v56 = vld [vmem:[#allocation21_spill] sm:$0xff] }
 0x3d7   :  { %v915_v17 = vadd.f32 %v914_v47, %v4619_v10 }
 0x3d9   :  { %2453 = vtanh.f32 %v915_v17 }
 0x3df   :  { %v2454_v33 = vpop.eup %2453 }
 0x3e0   :  { %v917_v12 = vsub.f32 %v3639_v15, %v2454_v33 }
 0x3e2   :  { %v918_v16 = vmul.f32 %v917_v12, %v911_v20 }
 0x3e4   :  { %v3698_v25 = vadd.f32 %v2454_v33, %v918_v16 }
 0x3e6   :  { %936 = vmatmul.f32.vlgmr.msra.gmra.mxu3 %v3698_v25  ;;  %956 = vmatmul.f32.vlgmr.msra.gmra.mxu0 %v3698_v25 }
 0x3e7   :  { %976 = vmatmul.f32.vlgmr.msra.gmra.mxu1 %v3698_v25  ;;  %1174 = vmatpush.msra.mxu3 %v3501_v22  ;;  %v4620_v22 = vld [vmem:[#allocation48_spill] sm:$0xff] }
 0x3e9   :  { %1175 = vmatpush.msra.mxu3 %v3506_v19  ;;  %v209_v19 = vadd.f32 %v4620_v22, %v4616_v23 }
 0x3eb   :  { %1176 = vmatpush.msra.mxu3 %v3513_v6 }
 0x3ed   :  { %1177 = vmatpush.msra.mxu3 %v3520_v53 }
 0x3ef   :  { %1178 = vmatpush.msra.mxu3 %v3527_v11 }
 0x3f1   :  { %1179 = vmatpush.msra.mxu3 %v3536_v26 }
 0x3f3   :  { %1180 = vmatpush.msra.mxu3 %v3543_v30  ;;  %v4621_v30 = vld [vmem:[#allocation27_spill] sm:$0xff] }
 0x3f5   :  { %1181 = vmatpush.msra.mxu3 %v3552_v34 }
 0x3f7   :  { %1182 = vmatpush.msra.mxu3 %v3561_v37 }
 0x3f9   :  { %1183 = vmatpush.msra.mxu3 %v3570_v40 }
 0x3fb   :  { %1184 = vmatpush.msra.mxu3 %v3579_v43 }
 0x3fd   :  { %1185 = vmatpush.msra.mxu3 %v3588_v48 }
 0x3ff   :  { %1186 = vmatpush.msra.mxu3 %v3597_v59 }
 0x401   :  { %1187 = vmatpush.msra.mxu3 %v3606_v62 }
 0x403   :  { %1188 = vmatpush.msra.mxu3 %v4610_v51 }
 0x405   :  { %1189 = vmatpush.msra.mxu3 %v4613_v27 }
 0x463   :  { %v957_v6 = vpop.f32.mrf.mxu0 }
 0x464   :  { %v1000_v53 = vadd.f32 %v957_v6, %v209_v19  ;;  %v977_v54 = vpop.f32.mrf.mxu1 }
 0x465   :  { %v1020_v32 = vadd.f32 %v3725_v31, %v977_v54 }
 0x466   :  { %v2328_v11 = vmul.f32 -1.442695, %v1000_v53 }
 0x468   :  { %2455 = vpow2.f32 %v2328_v11 }
 0x469   :  { %v937_v26 = vpop.f32.mrf.mxu3 }
 0x46a   :  { %v980_v34 = vadd.f32 %v937_v26, %v4621_v30 }
 0x46c   :  { %v2327_v37 = vmul.f32 -1.442695, %v980_v34 }
 0x46e   :  { %2457 = vpow2.f32 %v2327_v37  ;;  %v2456_v40 = vpop.eup %2455 }
 0x46f   :  { %v1004_v48 = vadd.f32 1.0, %v2456_v40 }
 0x471   :  { %v1016_v46 = vand.u32 2147483648, %v1004_v48  ;;  %vm1010_vm14 = vweird.f32 %v1004_v48  ;;  %v1014_v52 = vand.u32 2147483647, %v1004_v48 }
 0x473   :  { %v1017_v61 = vor.u32 1.1754944e-38, %v1016_v46  ;;  %vm1015_vm0 = vcmp.eq.f32.partialorder %v1014_v52, 8.507059e+37  ;;  %v3773_v46 = vld [vmem:[#allocation6 + $0x130] sm:$0xff]  ;;  %v3779_v52 = vld [vmem:[#allocation6 + $0x108] sm:$0xff] }
 0x474   :  { %v2458_v43 = vpop.eup %2457 }
 0x475   :  { %v984_v59 = vadd.f32 1.0, %v2458_v43  ;;  %v4625_v43 = vld [vmem:[#allocation41_spill] sm:$0xff] }
 0x477   :  { %2459 = vrcp.f32 %v984_v59  ;;  %v996_v27 = vand.u32 2147483648, %v984_v59  ;;  %v994_v14 = vand.u32 2147483647, %v984_v59  ;;  %vm990_vm10 = vweird.f32 %v984_v59 }
 0x478   :  { %2461 = vrcp.f32 %v1004_v48 }
 0x479   :  { %v997_v29 = vor.u32 1.1754944e-38, %v996_v27  ;;  %vm995_vm12 = vcmp.eq.f32.partialorder %v994_v14, 8.507059e+37 }
 0x47d   :  { %v2460_v62 = vpop.eup %2459 }
 0x47e   :  { %v2462_v15 = vpop.eup %2461  ;;  %v986_v51 = vmul.f32 %v2460_v62, %v984_v59  ;;  %vm991_vm9 = vweird.f32 %v2460_v62 }
 0x47f   :  { %v1006_v50 = vmul.f32 %v2462_v15, %v1004_v48  ;;  %vm992_vm11 = vmor %vm990_vm10, %vm991_vm9  ;;  %vm1011_vm13 = vweird.f32 %v2462_v15 }
 0x480   :  { %v987_v7 = vsub.f32 1.0, %v986_v51  ;;  %vm1012_vm15 = vmor %vm1010_vm14, %vm1011_vm13 }
 0x481   :  { %v1007_v9 = vsub.f32 1.0, %v1006_v50 }
 0x482   :  { %v988_v21 = vmul.f32 %v2460_v62, %v987_v7 }
 0x483   :  { %v1008_v39 = vmul.f32 %v2462_v15, %v1007_v9  ;;  %v3742_v9 = vld [vmem:[#allocation6 + $0x170] sm:$0xff] }
 0x484   :  { %v989_v57 = vadd.f32 %v2460_v62, %v988_v21  ;;  %1314 = vmatpush.msra.mxu1 %v3742_v9 }
 0x485   :  { %v1009_v45 = vadd.f32 %v2462_v15, %v1008_v39  ;;  %v3761_v39 = vld [vmem:[#allocation6 + $0x140] sm:$0xff] }
 0x486   :  { %v993_v35 = vsel %vm992_vm11, %v2460_v62, %v989_v57  ;;  %v3740_v57 = vld [vmem:[#allocation6 + $0x168] sm:$0xff] }
 0x487   :  { %v998_v36 = vsel %vm995_vm12, %v997_v29, %v993_v35  ;;  %v1013_v58 = vsel %vm1012_vm15, %v2462_v15, %v1009_v45  ;;  %v3744_v29 = vld [vmem:[#allocation6 + $0x178] sm:$0xff]  ;;  %1294 = vmatpush.msra.mxu0 %v3740_v57  ;;  %v3771_v45 = vld [vmem:[#allocation6 + $0x128] sm:$0xff] }
 0x488   :  { %v1021_v38 = vmul.f32 %v1020_v32, %v998_v36  ;;  %v1018_v0 = vsel %vm1015_vm0, %v1017_v61, %v1013_v58  ;;  %v3749_v32 = vld [vmem:[#allocation6 + $0x150] sm:$0xff]  ;;  %v3751_v35 = vld [vmem:[#allocation6 + $0x158] sm:$0xff]  ;;  %v3753_v36 = vld [vmem:[#allocation6 + $0x160] sm:$0xff] }
 0x489   :  { %1295 = vmatpush.msra.mxu0 %v3749_v32  ;;  %1315 = vmatpush.msra.mxu1 %v3751_v35  ;;  %v3781_v58 = vld [vmem:[#allocation6 + $0x110] sm:$0xff] }
 0x48a   :  { %v1022_v42 = vadd.f32 %v1021_v38, %v4622_v41  ;;  %v3759_v38 = vld [vmem:[#allocation6 + $0x138] sm:$0xff]  ;;  %v3763_v41 = vld [vmem:[#allocation6 + $0x148] sm:$0xff]  ;;  %v3789_v61 = vld [vmem:[#allocation6 + $0xf0] sm:$0xff] }
 0x48b   :  { %1296 = vmatpush.msra.mxu0 %v3759_v38  ;;  %1316 = vmatpush.msra.mxu1 %v3761_v39 }
 0x48c   :  { %2463 = vtanh.f32 %v1022_v42  ;;  %v3769_v42 = vld [vmem:[#allocation6 + $0x120] sm:$0xff] }
 0x48d   :  { %1297 = vmatpush.msra.mxu0 %v3769_v42  ;;  %1317 = vmatpush.msra.mxu1 %v3771_v45 }
 0x48f   :  { %1298 = vmatpush.msra.mxu0 %v3779_v52  ;;  %1318 = vmatpush.msra.mxu1 %v3781_v58 }
 0x491   :  { %1299 = vmatpush.msra.mxu0 %v3789_v61 }
 0x492   :  { %v2464_v60 = vpop.eup %2463 }
 0x493   :  { %v1024_v63 = vsub.f32 %v3698_v25, %v2464_v60 }
 0x495   :  { %v1025_v1 = vmul.f32 %v1024_v63, %v1018_v0  ;;  %v3791_v63 = vld [vmem:[#allocation6 + $0xf8] sm:$0xff]  ;;  %v3793_v0 = vld [vmem:[#allocation6 + $0x100] sm:$0xff] }
 0x496   :  { %1319 = vmatpush.msra.mxu1 %v3791_v63 }
 0x497   :  { %v1026_v3 = vadd.f32 %v2464_v60, %v1025_v1  ;;  %v3783_v60 = vld [vmem:[#allocation6 + $0x118] sm:$0xff] }
 0x498   :  { %v3799_v1 = vld [vmem:[#allocation6 + $0xd8] sm:$0xff] }
 0x499   :  { %1043 = vmatmul.f32.vlgmr.msrb.gmra.mxu2 %v1026_v3  ;;  %1063 = vmatmul.f32.vlgmr.msrb.gmra.mxu3 %v1026_v3 }
 0x49a   :  { %1083 = vmatmul.f32.vlgmr.msrb.gmra.mxu0 %v1026_v3  ;;  %1334 = vmatpush.msrb.mxu2 %v3744_v29 }
 0x49b   :  { %1401 = vmatpush.msrb.mxu3 %v3740_v57  ;;  %1300 = vmatpush.msra.mxu0 %v3799_v1 }
 0x49c   :  { %1335 = vmatpush.msrb.mxu2 %v3753_v36 }
 0x49d   :  { %1402 = vmatpush.msrb.mxu3 %v3749_v32 }
 0x49e   :  { %1336 = vmatpush.msrb.mxu2 %v3763_v41 }
 0x49f   :  { %1403 = vmatpush.msrb.mxu3 %v3759_v38 }
 0x4a0   :  { %1337 = vmatpush.msrb.mxu2 %v3773_v46 }
 0x4a1   :  { %1404 = vmatpush.msrb.mxu3 %v3769_v42 }
 0x4a2   :  { %1338 = vmatpush.msrb.mxu2 %v3783_v60 }
 0x4a3   :  { %1405 = vmatpush.msrb.mxu3 %v3779_v52 }
 0x4a4   :  { %1339 = vmatpush.msrb.mxu2 %v3793_v0 }
 0x4a5   :  { %1406 = vmatpush.msrb.mxu3 %v3789_v61 }
 0x4a6   :  { %1340 = vmatpush.msrb.mxu2 %v3803_v2 }
 0x4a7   :  { %1407 = vmatpush.msrb.mxu3 %v3799_v1 }
 0x517   :  { %v1084_v19 = vpop.f32.mrf.mxu0 }
 0x518   :  { %v1127_v26 = vadd.f32 %v3725_v31, %v1084_v19  ;;  %v3854_v19 = vld [vmem:[#allocation6 + $0x68] sm:$0xff] }
 0x51c   :  { %v1044_v13 = vpop.f32.mrf.mxu2  ;;  %v1064_v49 = vpop.f32.mrf.mxu3 }
 0x51d   :  { %v1087_v8 = vadd.f32 %v1044_v13, %v4624_v56  ;;  %v1107_v47 = vadd.f32 %v1064_v49, %v212_v55  ;;  %v3809_v55 = vld [vmem:[#allocation6 + $0xc0] sm:$0xff]  ;;  %v3811_v13 = vld [vmem:[#allocation6 + $0xc8] sm:$0xff]  ;;  %v3813_v49 = vld [vmem:[#allocation6 + $0xd0] sm:$0xff] }
 0x51e   :  { %1301 = vmatpush.msra.mxu0 %v3809_v55  ;;  %1341 = vmatpush.msrb.mxu2 %v3813_v49 }
 0x51f   :  { %v2329_v44 = vmul.f32 -1.442695, %v1087_v8  ;;  %v2330_v10 = vmul.f32 -1.442695, %v1107_v47  ;;  %v4626_v8 = vld [vmem:[#allocation23_spill] sm:$0xff]  ;;  %1408 = vmatpush.msrb.mxu3 %v3809_v55 }
 0x521   :  { %2465 = vpow2.f32 %v2329_v44  ;;  %v3820_v44 = vld [vmem:[#allocation6 + $0xa8] sm:$0xff] }
 0x522   :  { %2467 = vpow2.f32 %v2330_v10  ;;  %v3822_v10 = vld [vmem:[#allocation6 + $0xb0] sm:$0xff]  ;;  %1302 = vmatpush.msra.mxu0 %v3820_v44  ;;  %1409 = vmatpush.msrb.mxu3 %v3820_v44 }
 0x527   :  { %v2466_v17 = vpop.eup %2465 }
 0x528   :  { %v2468_v5 = vpop.eup %2467  ;;  %v1091_v18 = vadd.f32 1.0, %v2466_v17  ;;  %v3824_v17 = vld [vmem:[#allocation6 + $0xb8] sm:$0xff] }
 0x529   :  { %v1111_v24 = vadd.f32 1.0, %v2468_v5  ;;  %1342 = vmatpush.msrb.mxu2 %v3824_v17 }
 0x52a   :  { %2469 = vrcp.f32 %v1091_v18  ;;  %v1103_v20 = vand.u32 2147483648, %v1091_v18  ;;  %v1101_v22 = vand.u32 2147483647, %v1091_v18  ;;  %vm1097_vm2 = vweird.f32 %v1091_v18 }
 0x52b   :  { %2471 = vrcp.f32 %v1111_v24  ;;  %v1123_v62 = vand.u32 2147483648, %v1111_v24  ;;  %vm1117_vm6 = vweird.f32 %v1111_v24  ;;  %v1121_v15 = vand.u32 2147483647, %v1111_v24 }
 0x52c   :  { %v1104_v53 = vor.u32 1.1754944e-38, %v1103_v20  ;;  %vm1102_vm4 = vcmp.eq.f32.partialorder %v1101_v22, 8.507059e+37  ;;  %v3844_v20 = vld [vmem:[#allocation6 + $0x80] sm:$0xff] }
 0x52d   :  { %v1124_v50 = vor.u32 1.1754944e-38, %v1123_v62  ;;  %vm1122_vm8 = vcmp.eq.f32.partialorder %v1121_v15, 8.507059e+37  ;;  %v3885_v15 = vld [vmem:[#allocation6 + $0x28] sm:$0xff] }
 0x52e   :  { %4633 = vst [vmem:[#allocation39_spill] sm:$0xff] %v3885_v15 }
 0x530   :  { %v2470_v4 = vpop.eup %2469 }
 0x531   :  { %v2472_v33 = vpop.eup %2471  ;;  %v1093_v28 = vmul.f32 %v2470_v4, %v1091_v18  ;;  %vm1098_vm1 = vweird.f32 %v2470_v4  ;;  %v3830_v18 = vld [vmem:[#allocation6 + $0x90] sm:$0xff] }
 0x532   :  { %v1113_v16 = vmul.f32 %v2472_v33, %v1111_v24  ;;  %vm1099_vm3 = vmor %vm1097_vm2, %vm1098_vm1  ;;  %vm1118_vm5 = vweird.f32 %v2472_v33  ;;  %v3832_v24 = vld [vmem:[#allocation6 + $0x98] sm:$0xff]  ;;  %1303 = vmatpush.msra.mxu0 %v3830_v18  ;;  %1410 = vmatpush.msrb.mxu3 %v3830_v18 }
 0x533   :  { %v1094_v12 = vsub.f32 1.0, %v1093_v28  ;;  %vm1119_vm7 = vmor %vm1117_vm6, %vm1118_vm5 }
 0x534   :  { %v1114_v11 = vsub.f32 1.0, %v1113_v16  ;;  %v3846_v16 = vld [vmem:[#allocation6 + $0x88] sm:$0xff] }
 0x535   :  { %v1095_v25 = vmul.f32 %v2470_v4, %v1094_v12  ;;  %v3842_v12 = vld [vmem:[#allocation6 + $0x78] sm:$0xff] }
 0x536   :  { %v1115_v40 = vmul.f32 %v2472_v33, %v1114_v11  ;;  %1304 = vmatpush.msra.mxu0 %v3842_v12  ;;  %1411 = vmatpush.msrb.mxu3 %v3842_v12  ;;  %v3862_v11 = vld [vmem:[#allocation6 + $0x48] sm:$0xff] }
 0x537   :  { %v1096_v6 = vadd.f32 %v2470_v4, %v1095_v25 }
 0x538   :  { %v1116_v59 = vadd.f32 %v2472_v33, %v1115_v40  ;;  %v3875_v40 = vld [vmem:[#allocation6 + $0x40] sm:$0xff] }
 0x539   :  { %v1100_v30 = vsel %vm1099_vm3, %v2470_v4, %v1096_v6  ;;  %v3834_v4 = vld [vmem:[#allocation6 + $0xa0] sm:$0xff]  ;;  %v3856_v6 = vld [vmem:[#allocation6 + $0x70] sm:$0xff]  ;;  %4630 = vst [vmem:[#allocation46_spill] sm:$0xff] %v3875_v40 }
 0x53a   :  { %v1105_v34 = vsel %vm1102_vm4, %v1104_v53, %v1100_v30  ;;  %v1120_v51 = vsel %vm1119_vm7, %v2472_v33, %v1116_v59  ;;  %v4627_v33 = vld [vmem:[#allocation49_spill] sm:$0xff]  ;;  %1343 = vmatpush.msrb.mxu2 %v3834_v4  ;;  %v3866_v30 = vld [vmem:[#allocation6 + $0x58] sm:$0xff] }
 0x53b   :  { %v1128_v37 = vmul.f32 %v1127_v26, %v1105_v34  ;;  %v1125_v21 = vsel %vm1122_vm8, %v1124_v50, %v1120_v51  ;;  %v214_v28 = vadd.f32 %v4627_v33, %v4616_v23  ;;  %v3852_v23 = vld [vmem:[#allocation6 + $0x60] sm:$0xff]  ;;  %v3864_v26 = vld [vmem:[#allocation6 + $0x50] sm:$0xff] }
 0x53c   :  { %1344 = vmatpush.msrb.mxu2 %v3846_v16  ;;  %1305 = vmatpush.msra.mxu0 %v3852_v23  ;;  %v3871_v34 = vld [vmem:[#allocation6 + $0x30] sm:$0xff]  ;;  %v3880_v59 = vld [vmem:[#allocation6 + $0x20] sm:$0xff] }
 0x53d   :  { %v1129_v48 = vadd.f32 %v1128_v37, %v4625_v43  ;;  %1412 = vmatpush.msrb.mxu3 %v3852_v23  ;;  %4628 = vst [vmem:[#allocation32_spill] sm:$0xff] %v3871_v34  ;;  %v3873_v37 = vld [vmem:[#allocation6 + $0x38] sm:$0xff]  ;;  %v3888_v51 = vld [vmem:[#allocation6] sm:$0xff]  ;;  %v3895_v50 = vld [vmem:[#allocation6 + $0x10] sm:$0xff] }
 0x53e   :  { %1345 = vmatpush.msrb.mxu2 %v3856_v6  ;;  %1306 = vmatpush.msra.mxu0 %v3862_v11  ;;  %4629 = vst [vmem:[#allocation22_spill] sm:$0xff] %v3873_v37 }
 0x53f   :  { %2473 = vtanh.f32 %v1129_v48  ;;  %v3878_v48 = vld [vmem:[#allocation6 + $0x18] sm:$0xff]  ;;  %4632 = vst [vmem:[#allocation44_spill] sm:$0xff] %v3880_v59  ;;  %1413 = vmatpush.msrb.mxu3 %v3862_v11 }
 0x540   :  { %1346 = vmatpush.msrb.mxu2 %v3866_v30  ;;  %4631 = vst [vmem:[#allocation34_spill] sm:$0xff] %v3878_v48  ;;  %1307 = vmatpush.msra.mxu0 %v3871_v34 }
 0x541   :  { %4634 = vst [vmem:[#allocation30_spill] sm:$0xff] %v3888_v51  ;;  %1414 = vmatpush.msrb.mxu3 %v3871_v34 }
 0x542   :  { %1347 = vmatpush.msrb.mxu2 %v3875_v40  ;;  %1308 = vmatpush.msra.mxu0 %v3878_v48  ;;  %4636 = vst [vmem:[#allocation14_spill] sm:$0xff] %v3895_v50 }
 0x543   :  { %1415 = vmatpush.msrb.mxu3 %v3878_v48 }
 0x544   :  { %1348 = vmatpush.msrb.mxu2 %v3885_v15  ;;  %1309 = vmatpush.msra.mxu0 %v3888_v51 }
 0x545   :  { %v2474_v7 = vpop.eup %2473  ;;  %1416 = vmatpush.msrb.mxu3 %v3888_v51 }
 0x546   :  { %v1131_v27 = vsub.f32 %v1026_v3, %v2474_v7  ;;  %v3801_v3 = vld [vmem:[#allocation6 + $0xe0] sm:$0xff]  ;;  %1349 = vmatpush.msrb.mxu2 %v3895_v50  ;;  %1421 = vmatpush.msrb.mxu0 %v3742_v9 }
 0x547   :  { %1320 = vmatpush.msra.mxu1 %v3801_v3 }
 0x548   :  { %v1132_v14 = vmul.f32 %v1131_v27, %v1125_v21  ;;  %1422 = vmatpush.msrb.mxu0 %v3751_v35 }
 0x549   :  { %1321 = vmatpush.msra.mxu1 %v3811_v13 }
 0x54a   :  { %v3735_v54 = vadd.f32 %v2474_v7, %v1132_v14  ;;  %v3890_v7 = vld [vmem:[#allocation6 + $0x8] sm:$0xff]  ;;  %1423 = vmatpush.msrb.mxu0 %v3761_v39 }
 0x54b   :  { %1322 = vmatpush.msra.mxu1 %v3822_v10  ;;  %4635 = vst [vmem:[#allocation11_spill] sm:$0xff] %v3890_v7 }
 0x54c   :  { %1150 = vmatmul.f32.vlgmr.msrb.gmra.mxu1 %v3735_v54  ;;  %1170 = vmatmul.f32.vlgmr.msra.gmra.mxu2 %v3735_v54 }
 0x54d   :  { %1190 = vmatmul.f32.vlgmr.msra.gmra.mxu3 %v3735_v54  ;;  %1323 = vmatpush.msra.mxu1 %v3832_v24 }
 0x54e   :  { %1508 = vmatpush.msra.mxu2 %v3740_v57  ;;  %1528 = vmatpush.msra.mxu3 %v3742_v9 }
 0x54f   :  { %1324 = vmatpush.msra.mxu1 %v3844_v20  ;;  %1424 = vmatpush.msrb.mxu0 %v3771_v45 }
 0x550   :  { %1509 = vmatpush.msra.mxu2 %v3749_v32  ;;  %1529 = vmatpush.msra.mxu3 %v3751_v35 }
 0x551   :  { %1325 = vmatpush.msra.mxu1 %v3854_v19  ;;  %1425 = vmatpush.msrb.mxu0 %v3781_v58 }
 0x552   :  { %1510 = vmatpush.msra.mxu2 %v3759_v38  ;;  %1530 = vmatpush.msra.mxu3 %v3761_v39 }
 0x553   :  { %1326 = vmatpush.msra.mxu1 %v3864_v26  ;;  %1426 = vmatpush.msrb.mxu0 %v3791_v63 }
 0x554   :  { %1511 = vmatpush.msra.mxu2 %v3769_v42  ;;  %1531 = vmatpush.msra.mxu3 %v3771_v45 }
 0x555   :  { %1327 = vmatpush.msra.mxu1 %v3873_v37  ;;  %1427 = vmatpush.msrb.mxu0 %v3801_v3 }
 0x556   :  { %1512 = vmatpush.msra.mxu2 %v3779_v52  ;;  %1532 = vmatpush.msra.mxu3 %v3781_v58 }
 0x557   :  { %1328 = vmatpush.msra.mxu1 %v3880_v59  ;;  %1428 = vmatpush.msrb.mxu0 %v3811_v13 }
 0x558   :  { %1513 = vmatpush.msra.mxu2 %v3789_v61  ;;  %1533 = vmatpush.msra.mxu3 %v3791_v63 }
 0x559   :  { %1329 = vmatpush.msra.mxu1 %v3890_v7  ;;  %1429 = vmatpush.msrb.mxu0 %v3822_v10 }
 0x55a   :  { %1514 = vmatpush.msra.mxu2 %v3799_v1  ;;  %1534 = vmatpush.msra.mxu3 %v3801_v3 }
 0x55b   :  { %1441 = vmatpush.msrb.mxu1 %v3744_v29  ;;  %1430 = vmatpush.msrb.mxu0 %v3832_v24 }
 0x55c   :  { %1515 = vmatpush.msra.mxu2 %v3809_v55  ;;  %1535 = vmatpush.msra.mxu3 %v3811_v13 }
 0x55d   :  { %1442 = vmatpush.msrb.mxu1 %v3753_v36  ;;  %1431 = vmatpush.msrb.mxu0 %v3844_v20 }
 0x55e   :  { %1516 = vmatpush.msra.mxu2 %v3820_v44  ;;  %1536 = vmatpush.msra.mxu3 %v3822_v10 }
 0x55f   :  { %1443 = vmatpush.msrb.mxu1 %v3763_v41  ;;  %1432 = vmatpush.msrb.mxu0 %v3854_v19 }
 0x560   :  { %1517 = vmatpush.msra.mxu2 %v3830_v18  ;;  %1537 = vmatpush.msra.mxu3 %v3832_v24 }
 0x561   :  { %1444 = vmatpush.msrb.mxu1 %v3773_v46  ;;  %1433 = vmatpush.msrb.mxu0 %v3864_v26 }
 0x562   :  { %1518 = vmatpush.msra.mxu2 %v3842_v12  ;;  %1538 = vmatpush.msra.mxu3 %v3844_v20 }
 0x563   :  { %1445 = vmatpush.msrb.mxu1 %v3783_v60  ;;  %1434 = vmatpush.msrb.mxu0 %v3873_v37 }
 0x564   :  { %1519 = vmatpush.msra.mxu2 %v3852_v23  ;;  %1539 = vmatpush.msra.mxu3 %v3854_v19 }
 0x565   :  { %1446 = vmatpush.msrb.mxu1 %v3793_v0  ;;  %1435 = vmatpush.msrb.mxu0 %v3880_v59 }
 0x566   :  { %1520 = vmatpush.msra.mxu2 %v3862_v11  ;;  %1540 = vmatpush.msra.mxu3 %v3864_v26 }
 0x567   :  { %1447 = vmatpush.msrb.mxu1 %v3803_v2  ;;  %1436 = vmatpush.msrb.mxu0 %v3890_v7 }
 0x568   :  { %1521 = vmatpush.msra.mxu2 %v3871_v34  ;;  %1541 = vmatpush.msra.mxu3 %v3873_v37 }
 0x569   :  { %1448 = vmatpush.msrb.mxu1 %v3813_v49 }
 0x56a   :  { %1522 = vmatpush.msra.mxu2 %v3878_v48  ;;  %1542 = vmatpush.msra.mxu3 %v3880_v59 }
 0x56b   :  { %1449 = vmatpush.msrb.mxu1 %v3824_v17 }
 0x56c   :  { %1523 = vmatpush.msra.mxu2 %v3888_v51  ;;  %1543 = vmatpush.msra.mxu3 %v3890_v7 }
 0x56d   :  { %1450 = vmatpush.msrb.mxu1 %v3834_v4 }
 0x56f   :  { %1451 = vmatpush.msrb.mxu1 %v3846_v16 }
 0x571   :  { %1452 = vmatpush.msrb.mxu1 %v3856_v6 }
 0x573   :  { %1453 = vmatpush.msrb.mxu1 %v3866_v30 }
 0x575   :  { %1454 = vmatpush.msrb.mxu1 %v3875_v40 }
 0x577   :  { %1455 = vmatpush.msrb.mxu1 %v3885_v15 }
 0x579   :  { %1456 = vmatpush.msrb.mxu1 %v3895_v50 }
 0x5c9   :  { %v1151_v56 = vpop.f32.mrf.mxu1 }
 0x5ca   :  { %v1194_v47 = vadd.f32 %v1151_v56, %v4626_v8 }
 0x5cc   :  { %v2331_v5 = vmul.f32 -1.442695, %v1194_v47 }
 0x5ce   :  { %2475 = vpow2.f32 %v2331_v5 }
 0x5cf   :  { %v1171_v25 = vpop.f32.mrf.mxu2 }
 0x5d0   :  { %v1214_v22 = vadd.f32 %v1171_v25, %v214_v28  ;;  %v1191_v25 = vpop.f32.mrf.mxu3 }
 0x5d2   :  { %v2332_v53 = vmul.f32 -1.442695, %v1214_v22 }
 0x5d4   :  { %v2476_v43 = vpop.eup %2475  ;;  %2477 = vpow2.f32 %v2332_v53 }
 0x5d5   :  { %v1198_v62 = vadd.f32 1.0, %v2476_v43 }
 0x5d7   :  { %2479 = vrcp.f32 %v1198_v62  ;;  %v1210_v47 = vand.u32 2147483648, %v1198_v62  ;;  %v1208_v33 = vand.u32 2147483647, %v1198_v62  ;;  %vm1204_vm10 = vweird.f32 %v1198_v62 }
 0x5d9   :  { %v1211_v43 = vor.u32 1.1754944e-38, %v1210_v47  ;;  %vm1209_vm12 = vcmp.eq.f32.partialorder %v1208_v33, 8.507059e+37 }
 0x5da   :  { %v2478_v27 = vpop.eup %2477 }
 0x5db   :  { %v3903_v21 = vadd.f32 1.0, %v2478_v27 }
 0x5dd   :  { %v2480_v14 = vpop.eup %2479  ;;  %2481 = vrcp.f32 %v3903_v21  ;;  %vm1224_vm14 = vweird.f32 %v3903_v21 }
 0x5de   :  { %v1200_v56 = vmul.f32 %v2480_v14, %v1198_v62  ;;  %vm1205_vm9 = vweird.f32 %v2480_v14 }
 0x5df   :  { %vm1206_vm11 = vmor %vm1204_vm10, %vm1205_vm9 }
 0x5e0   :  { %v1201_v8 = vsub.f32 1.0, %v1200_v56 }
 0x5e2   :  { %v1202_v5 = vmul.f32 %v2480_v14, %v1201_v8  ;;  %v1234_v8 = vadd.f32 %v3725_v31, %v1191_v25  ;;  %v4637_v31 = vld [vmem:[#allocation43_spill] sm:$0xff]  ;;  %v1230_v25 = vand.u32 2147483648, %v3903_v21 }
 0x5e3   :  { %v3922_v28 = vpop.eup %2481 }
 0x5e4   :  { %v1220_v22 = vmul.f32 %v3922_v28, %v3903_v21  ;;  %v1203_v53 = vadd.f32 %v2480_v14, %v1202_v5  ;;  %vm1225_vm13 = vweird.f32 %v3922_v28 }
 0x5e5   :  { %vm1226_vm15 = vmor %vm1224_vm14, %vm1225_vm13 }
 0x5e6   :  { %v1221_v27 = vsub.f32 1.0, %v1220_v22  ;;  %v1207_v56 = vsel %vm1206_vm11, %v2480_v14, %v1203_v53  ;;  %v1228_v22 = vand.u32 2147483647, %v3903_v21 }
 0x5e7   :  { %v1212_v62 = vsel %vm1209_vm12, %v1211_v43, %v1207_v56 }
 0x5e8   :  { %v1235_v5 = vmul.f32 %v1234_v8, %v1212_v62  ;;  %v1222_v47 = vmul.f32 %v3922_v28, %v1221_v27  ;;  %v1231_v27 = vor.u32 1.1754944e-38, %v1230_v25  ;;  %vm1229_vm0 = vcmp.eq.f32.partialorder %v1228_v22, 8.507059e+37  ;;  %v4639_v62 = vld [vmem:[#allocation24_spill] sm:$0xff] }
 0x5ea   :  { %v1236_v14 = vadd.f32 %v1235_v5, %v4637_v31  ;;  %v1223_v33 = vadd.f32 %v3922_v28, %v1222_v47  ;;  %v4640_v47 = vld [vmem:[#allocation9_spill] sm:$0xff]  ;;  %v4641_v31 = vld [vmem:[#allocation16_spill] sm:$0xff] }
 0x5ec   :  { %2483 = vtanh.f32 %v1236_v14  ;;  %v1227_v53 = vsel %vm1226_vm15, %v3922_v28, %v1223_v33  ;;  %v284_v14 = vadd.f32 %v4641_v31, %v4640_v47  ;;  %v4643_v47 = vld [vmem:[#allocation50_spill] sm:$0xff] }
 0x5ed   :  { %v1232_v56 = vsel %vm1229_vm0, %v1231_v27, %v1227_v53 }
 0x5f2   :  { %v2484_v43 = vpop.eup %2483 }
 0x5f3   :  { %v1238_v21 = vsub.f32 %v3735_v54, %v2484_v43  ;;  %v4638_v54 = vld [vmem:[#allocation26_spill] sm:$0xff] }
 0x5f4   :  { %v255_v5 = vadd.f32 %v4639_v62, %v4638_v54 }
 0x5f5   :  { %v1239_v28 = vmul.f32 %v1238_v21, %v1232_v56 }
 0x5f7   :  { %v3976_v8 = vadd.f32 %v2484_v43, %v1239_v28 }
 0x5f9   :  { %1241 = vst [vmem:[%s4458_s11] sm:$0xff] %v3976_v8  ;;  %1310 = vmatmul.f32.vlgmr.msra.gmra.mxu0 %v3976_v8  ;;  %1330 = vmatmul.f32.vlgmr.msra.gmra.mxu1 %v3976_v8 }
 0x5fa   :  { %1350 = vmatmul.f32.vlgmr.msrb.gmra.mxu2 %v3976_v8  ;;  %1548 = vmatpush.msra.mxu0 %v3744_v29 }
 0x5fb   :  { %1615 = vmatpush.msra.mxu1 %v3740_v57  ;;  %1635 = vmatpush.msrb.mxu2 %v3742_v9 }
 0x5fc   :  { %1549 = vmatpush.msra.mxu0 %v3753_v36 }
 0x5fd   :  { %1616 = vmatpush.msra.mxu1 %v3749_v32  ;;  %1636 = vmatpush.msrb.mxu2 %v3751_v35 }
 0x5fe   :  { %1550 = vmatpush.msra.mxu0 %v3763_v41 }
 0x5ff   :  { %1617 = vmatpush.msra.mxu1 %v3759_v38  ;;  %1637 = vmatpush.msrb.mxu2 %v3761_v39 }
 0x600   :  { %1551 = vmatpush.msra.mxu0 %v3773_v46 }
 0x601   :  { %1618 = vmatpush.msra.mxu1 %v3769_v42  ;;  %1638 = vmatpush.msrb.mxu2 %v3771_v45 }
 0x602   :  { %1552 = vmatpush.msra.mxu0 %v3783_v60 }
 0x603   :  { %1619 = vmatpush.msra.mxu1 %v3779_v52  ;;  %1639 = vmatpush.msrb.mxu2 %v3781_v58 }
 0x604   :  { %1553 = vmatpush.msra.mxu0 %v3793_v0 }
 0x605   :  { %1620 = vmatpush.msra.mxu1 %v3789_v61  ;;  %1640 = vmatpush.msrb.mxu2 %v3791_v63 }
 0x606   :  { %1554 = vmatpush.msra.mxu0 %v3803_v2 }
 0x607   :  { %1621 = vmatpush.msra.mxu1 %v3799_v1  ;;  %1641 = vmatpush.msrb.mxu2 %v3801_v3 }
 0x608   :  { %1555 = vmatpush.msra.mxu0 %v3813_v49 }
 0x609   :  { %1622 = vmatpush.msra.mxu1 %v3809_v55  ;;  %1642 = vmatpush.msrb.mxu2 %v3811_v13 }
 0x60a   :  { %1556 = vmatpush.msra.mxu0 %v3824_v17 }
 0x60b   :  { %1623 = vmatpush.msra.mxu1 %v3820_v44  ;;  %1643 = vmatpush.msrb.mxu2 %v3822_v10 }
 0x60c   :  { %1557 = vmatpush.msra.mxu0 %v3834_v4 }
 0x60d   :  { %1624 = vmatpush.msra.mxu1 %v3830_v18  ;;  %1644 = vmatpush.msrb.mxu2 %v3832_v24 }
 0x60e   :  { %1558 = vmatpush.msra.mxu0 %v3846_v16 }
 0x60f   :  { %1625 = vmatpush.msra.mxu1 %v3842_v12  ;;  %1645 = vmatpush.msrb.mxu2 %v3844_v20 }
 0x610   :  { %1559 = vmatpush.msra.mxu0 %v3856_v6 }
 0x611   :  { %1626 = vmatpush.msra.mxu1 %v3852_v23  ;;  %1646 = vmatpush.msrb.mxu2 %v3854_v19 }
 0x612   :  { %1560 = vmatpush.msra.mxu0 %v3866_v30 }
 0x613   :  { %1627 = vmatpush.msra.mxu1 %v3862_v11  ;;  %1647 = vmatpush.msrb.mxu2 %v3864_v26 }
 0x614   :  { %1561 = vmatpush.msra.mxu0 %v3875_v40 }
 0x615   :  { %1628 = vmatpush.msra.mxu1 %v3871_v34  ;;  %1648 = vmatpush.msrb.mxu2 %v3873_v37 }
 0x616   :  { %1562 = vmatpush.msra.mxu0 %v3885_v15 }
 0x617   :  { %1629 = vmatpush.msra.mxu1 %v3878_v48  ;;  %1649 = vmatpush.msrb.mxu2 %v3880_v59 }
 0x618   :  { %1563 = vmatpush.msra.mxu0 %v3895_v50 }
 0x619   :  { %1630 = vmatpush.msra.mxu1 %v3888_v51  ;;  %1650 = vmatpush.msrb.mxu2 %v3890_v7 }
 0x676   :  { %v1311_v33 = vpop.f32.mrf.mxu0  ;;  %v1331_v25 = vpop.f32.mrf.mxu1 }
 0x677   :  { %v1354_v22 = vadd.f32 %v1311_v33, %v255_v5  ;;  %v1374_v53 = vadd.f32 %v1331_v25, %v284_v14  ;;  %v4048_v5 = vld [vmem:[%s4454_s7] ss:$0 sm:$0xff] }
 0x679   :  { %v2333_v43 = vmul.f32 -1.442695, %v1354_v22  ;;  %v2334_v27 = vmul.f32 -1.442695, %v1374_v53 }
 0x67b   :  { %2485 = vpow2.f32 %v2333_v43 }
 0x67c   :  { %2487 = vpow2.f32 %v2334_v27 }
 0x67d   :  { %v1351_v25 = vpop.f32.mrf.mxu2 }
 0x681   :  { %v2486_v21 = vpop.eup %2485 }
 0x682   :  { %v2488_v56 = vpop.eup %2487  ;;  %v1358_v28 = vadd.f32 1.0, %v2486_v21  ;;  %v1394_v21 = vadd.f32 %v4048_v5, %v1351_v25 }
 0x683   :  { %v1378_v51 = vadd.f32 1.0, %v2488_v56 }
 0x684   :  { %2489 = vrcp.f32 %v1358_v28  ;;  %v1370_v31 = vand.u32 2147483648, %v1358_v28  ;;  %v1368_v33 = vand.u32 2147483647, %v1358_v28  ;;  %vm1364_vm2 = vweird.f32 %v1358_v28 }
 0x685   :  { %2491 = vrcp.f32 %v1378_v51  ;;  %v1390_v40 = vand.u32 2147483648, %v1378_v51  ;;  %vm1384_vm6 = vweird.f32 %v1378_v51 }
 0x686   :  { %v1371_v43 = vor.u32 1.1754944e-38, %v1370_v31  ;;  %vm1369_vm4 = vcmp.eq.f32.partialorder %v1368_v33, 8.507059e+37 }
 0x68a   :  { %v2490_v7 = vpop.eup %2489 }
 0x68b   :  { %v2492_v50 = vpop.eup %2491  ;;  %v1360_v54 = vmul.f32 %v2490_v7, %v1358_v28  ;;  %vm1365_vm1 = vweird.f32 %v2490_v7  ;;  %v1388_v28 = vand.u32 2147483647, %v1378_v51 }
 0x68c   :  { %v1380_v59 = vmul.f32 %v2492_v50, %v1378_v51  ;;  %vm1366_vm3 = vmor %vm1364_vm2, %vm1365_vm1  ;;  %vm1385_vm5 = vweird.f32 %v2492_v50  ;;  %v4649_v51 = vld [vmem:[#allocation44_spill] sm:$0xff] }
 0x68d   :  { %v1361_v62 = vsub.f32 1.0, %v1360_v54  ;;  %v4642_v54 = vld [vmem:[#allocation51_spill] sm:$0xff]  ;;  %vm1386_vm7 = vmor %vm1384_vm6, %vm1385_vm5  ;;  %vm1389_vm8 = vcmp.eq.f32.partialorder %v1388_v28, 8.507059e+37 }
 0x68e   :  { %v1381_v53 = vsub.f32 1.0, %v1380_v59  ;;  %v313_v48 = vadd.f32 %v4643_v47, %v4642_v54  ;;  %v4652_v47 = vld [vmem:[#allocation11_spill] sm:$0xff]  ;;  %v4654_v54 = vld [vmem:[#allocation28_spill] sm:$0xff] }
 0x68f   :  { %v1362_v14 = vmul.f32 %v2490_v7, %v1361_v62 }
 0x690   :  { %v1382_v37 = vmul.f32 %v2492_v50, %v1381_v53 }
 0x691   :  { %v1363_v22 = vadd.f32 %v2490_v7, %v1362_v14 }
 0x692   :  { %v1383_v62 = vadd.f32 %v2492_v50, %v1382_v37  ;;  %v4645_v37 = vld [vmem:[#allocation32_spill] sm:$0xff] }
 0x693   :  { %v1367_v27 = vsel %vm1366_vm3, %v2490_v7, %v1363_v22  ;;  %v1391_v7 = vor.u32 1.1754944e-38, %v1390_v40  ;;  %v4646_v40 = vld [vmem:[#allocation22_spill] sm:$0xff] }
 0x694   :  { %v1372_v56 = vsel %vm1369_vm4, %v1371_v43, %v1367_v27  ;;  %v1387_v59 = vsel %vm1386_vm7, %v2492_v50, %v1383_v62  ;;  %v4650_v50 = vld [vmem:[#allocation14_spill] sm:$0xff]  ;;  %v4653_v43 = vld [vmem:[#allocation17_spill] sm:$0xff] }
 0x695   :  { %v1395_v15 = vmul.f32 %v1394_v21, %v1372_v56  ;;  %v1392_v33 = vsel %vm1389_vm8, %v1391_v7, %v1387_v59 }
 0x697   :  { %v1396_v34 = vadd.f32 %v1395_v15, %v313_v48  ;;  %v4647_v48 = vld [vmem:[#allocation39_spill] sm:$0xff]  ;;  %v4648_v15 = vld [vmem:[#allocation34_spill] sm:$0xff] }
 0x699   :  { %2493 = vtanh.f32 %v1396_v34  ;;  %v4644_v34 = vld [vmem:[#allocation46_spill] sm:$0xff] }
 0x69f   :  { %v2494_v31 = vpop.eup %2493 }
 0x6a0   :  { %v1398_v14 = vsub.f32 %v3976_v8, %v2494_v31  ;;  %v4651_v8 = vld [vmem:[#allocation30_spill] sm:$0xff] }
 0x6a2   :  { %v1399_v25 = vmul.f32 %v1398_v14, %v1392_v33 }
 0x6a4   :  { %v4054_v22 = vadd.f32 %v2494_v31, %v1399_v25 }
 0x6a6   :  { %1417 = vmatmul.f32.vlgmr.msrb.gmra.mxu3 %v4054_v22  ;;  %1437 = vmatmul.f32.vlgmr.msrb.gmra.mxu0 %v4054_v22 }
 0x6a7   :  { %1457 = vmatmul.f32.vlgmr.msrb.gmra.mxu1 %v4054_v22  ;;  %1655 = vmatpush.msrb.mxu3 %v3744_v29 }
 0x6a8   :  { %1722 = vmatpush.msrb.mxu0 %v3740_v57  ;;  %1742 = vmatpush.msrb.mxu1 %v3742_v9 }
 0x6a9   :  { %1656 = vmatpush.msrb.mxu3 %v3753_v36 }
 0x6aa   :  { %1723 = vmatpush.msrb.mxu0 %v3749_v32  ;;  %1743 = vmatpush.msrb.mxu1 %v3751_v35 }
 0x6ab   :  { %1657 = vmatpush.msrb.mxu3 %v3763_v41 }
 0x6ac   :  { %1724 = vmatpush.msrb.mxu0 %v3759_v38  ;;  %1744 = vmatpush.msrb.mxu1 %v3761_v39 }
 0x6ad   :  { %1658 = vmatpush.msrb.mxu3 %v3773_v46 }
 0x6ae   :  { %1725 = vmatpush.msrb.mxu0 %v3769_v42  ;;  %1745 = vmatpush.msrb.mxu1 %v3771_v45 }
 0x6af   :  { %1659 = vmatpush.msrb.mxu3 %v3783_v60 }
 0x6b0   :  { %1726 = vmatpush.msrb.mxu0 %v3779_v52  ;;  %1746 = vmatpush.msrb.mxu1 %v3781_v58 }
 0x6b1   :  { %1660 = vmatpush.msrb.mxu3 %v3793_v0 }
 0x6b2   :  { %1727 = vmatpush.msrb.mxu0 %v3789_v61  ;;  %1747 = vmatpush.msrb.mxu1 %v3791_v63 }
 0x6b3   :  { %1661 = vmatpush.msrb.mxu3 %v3803_v2 }
 0x6b4   :  { %1728 = vmatpush.msrb.mxu0 %v3799_v1  ;;  %1748 = vmatpush.msrb.mxu1 %v3801_v3 }
 0x6b5   :  { %1662 = vmatpush.msrb.mxu3 %v3813_v49 }
 0x6b6   :  { %1729 = vmatpush.msrb.mxu0 %v3809_v55  ;;  %1749 = vmatpush.msrb.mxu1 %v3811_v13 }
 0x6b7   :  { %1663 = vmatpush.msrb.mxu3 %v3824_v17 }
 0x6b8   :  { %1730 = vmatpush.msrb.mxu0 %v3820_v44  ;;  %1750 = vmatpush.msrb.mxu1 %v3822_v10 }
 0x6b9   :  { %1664 = vmatpush.msrb.mxu3 %v3834_v4 }
 0x6ba   :  { %1731 = vmatpush.msrb.mxu0 %v3830_v18  ;;  %1751 = vmatpush.msrb.mxu1 %v3832_v24 }
 0x6bb   :  { %1665 = vmatpush.msrb.mxu3 %v3846_v16 }
 0x6bc   :  { %1732 = vmatpush.msrb.mxu0 %v3842_v12  ;;  %1752 = vmatpush.msrb.mxu1 %v3844_v20 }
 0x6bd   :  { %1666 = vmatpush.msrb.mxu3 %v3856_v6 }
 0x6be   :  { %1733 = vmatpush.msrb.mxu0 %v3852_v23  ;;  %1753 = vmatpush.msrb.mxu1 %v3854_v19 }
 0x6bf   :  { %1667 = vmatpush.msrb.mxu3 %v3866_v30 }
 0x6c0   :  { %1734 = vmatpush.msrb.mxu0 %v3862_v11  ;;  %1754 = vmatpush.msrb.mxu1 %v3864_v26 }
 0x6c1   :  { %1668 = vmatpush.msrb.mxu3 %v4644_v34 }
 0x6c2   :  { %1735 = vmatpush.msrb.mxu0 %v4645_v37  ;;  %1755 = vmatpush.msrb.mxu1 %v4646_v40 }
 0x6c3   :  { %1669 = vmatpush.msrb.mxu3 %v4647_v48  ;;  %v4655_v48 = vld [vmem:[#allocation52_spill] sm:$0xff] }
 0x6c4   :  { %1736 = vmatpush.msrb.mxu0 %v4648_v15  ;;  %1756 = vmatpush.msrb.mxu1 %v4649_v51 }
 0x6c5   :  { %1670 = vmatpush.msrb.mxu3 %v4650_v50 }
 0x6c6   :  { %1737 = vmatpush.msrb.mxu0 %v4651_v8  ;;  %1757 = vmatpush.msrb.mxu1 %v4652_v47 }
 0x723   :  { %v1438_v53 = vpop.f32.mrf.mxu0 }
 0x724   :  { %v1481_v27 = vadd.f32 %v1438_v53, %v4653_v43 }
 0x726   :  { %v2336_v21 = vmul.f32 -1.442695, %v1481_v27  ;;  %v1458_v27 = vpop.f32.mrf.mxu1 }
 0x728   :  { %2495 = vpow2.f32 %v2336_v21 }
 0x729   :  { %v1418_v56 = vpop.f32.mrf.mxu3 }
 0x72a   :  { %v1461_v62 = vadd.f32 %v1418_v56, %v4654_v54 }
 0x72c   :  { %v2335_v28 = vmul.f32 -1.442695, %v1461_v62  ;;  %v1501_v62 = vadd.f32 %v4048_v5, %v1458_v27 }
 0x72e   :  { %2497 = vpow2.f32 %v2335_v28  ;;  %v2496_v59 = vpop.eup %2495 }
 0x72f   :  { %v1485_v7 = vadd.f32 1.0, %v2496_v59 }
 0x731   :  { %vm1491_vm14 = vweird.f32 %v1485_v7  ;;  %v1495_v37 = vand.u32 2147483647, %v1485_v7 }
 0x733   :  { %vm1496_vm0 = vcmp.eq.f32.partialorder %v1495_v37, 8.507059e+37 }
 0x734   :  { %v2498_v31 = vpop.eup %2497 }
 0x735   :  { %v1465_v14 = vadd.f32 1.0, %v2498_v31 }
 0x737   :  { %2499 = vrcp.f32 %v1465_v14  ;;  %v1477_v51 = vand.u32 2147483648, %v1465_v14  ;;  %v1475_v43 = vand.u32 2147483647, %v1465_v14  ;;  %vm1471_vm10 = vweird.f32 %v1465_v14 }
 0x738   :  { %2501 = vrcp.f32 %v1485_v7 }
 0x739   :  { %v1478_v54 = vor.u32 1.1754944e-38, %v1477_v51  ;;  %vm1476_vm12 = vcmp.eq.f32.partialorder %v1475_v43, 8.507059e+37 }
 0x73d   :  { %v2500_v33 = vpop.eup %2499 }
 0x73e   :  { %v2502_v25 = vpop.eup %2501  ;;  %v1467_v8 = vmul.f32 %v2500_v33, %v1465_v14  ;;  %vm1472_vm9 = vweird.f32 %v2500_v33 }
 0x73f   :  { %v1487_v50 = vmul.f32 %v2502_v25, %v1485_v7  ;;  %vm1473_vm11 = vmor %vm1471_vm10, %vm1472_vm9  ;;  %vm1492_vm13 = vweird.f32 %v2502_v25 }
 0x740   :  { %v1468_v47 = vsub.f32 1.0, %v1467_v8  ;;  %vm1493_vm15 = vmor %vm1491_vm14, %vm1492_vm13 }
 0x741   :  { %v1488_v21 = vsub.f32 1.0, %v1487_v50 }
 0x742   :  { %v1469_v53 = vmul.f32 %v2500_v33, %v1468_v47  ;;  %v1497_v47 = vand.u32 2147483648, %v1485_v7 }
 0x743   :  { %v1489_v15 = vmul.f32 %v2502_v25, %v1488_v21 }
 0x744   :  { %v1470_v56 = vadd.f32 %v2500_v33, %v1469_v53  ;;  %v1498_v53 = vor.u32 1.1754944e-38, %v1497_v47 }
 0x745   :  { %v1490_v40 = vadd.f32 %v2502_v25, %v1489_v15 }
 0x746   :  { %v1474_v28 = vsel %vm1473_vm11, %v2500_v33, %v1470_v56 }
 0x747   :  { %v1479_v59 = vsel %vm1476_vm12, %v1478_v54, %v1474_v28  ;;  %v1494_v14 = vsel %vm1493_vm15, %v2502_v25, %v1490_v40 }
 0x748   :  { %v1502_v31 = vmul.f32 %v1501_v62, %v1479_v59  ;;  %v1499_v33 = vsel %vm1496_vm0, %v1498_v53, %v1494_v14  ;;  %v4667_v14 = vld [vmem:[#allocation12_spill] sm:$0xff] }
 0x74a   :  { %v1503_v8 = vadd.f32 %v1502_v31, %v4655_v48 }
 0x74c   :  { %2503 = vtanh.f32 %v1503_v8 }
 0x752   :  { %v2504_v50 = vpop.eup %2503 }
 0x753   :  { %v1505_v51 = vsub.f32 %v4054_v22, %v2504_v50 }
 0x755   :  { %v1506_v43 = vmul.f32 %v1505_v51, %v1499_v33 }
 0x757   :  { %v4112_v27 = vadd.f32 %v2504_v50, %v1506_v43 }
 0x759   :  { %1524 = vmatmul.f32.vlgmr.msra.gmra.mxu2 %v4112_v27  ;;  %1544 = vmatmul.f32.vlgmr.msra.gmra.mxu3 %v4112_v27 }
 0x75a   :  { %1564 = vmatmul.f32.vlgmr.msra.gmra.mxu0 %v4112_v27  ;;  %1762 = vmatpush.msra.mxu2 %v3744_v29  ;;  %v4658_v29 = vld [vmem:[#allocation39_spill] sm:$0xff] }
 0x75b   :  { %1829 = vmatpush.msra.mxu3 %v3740_v57  ;;  %1849 = vmatpush.msra.mxu0 %v3742_v9  ;;  %v4656_v57 = vld [vmem:[#allocation32_spill] sm:$0xff]  ;;  %v4657_v9 = vld [vmem:[#allocation22_spill] sm:$0xff] }
 0x75c   :  { %1763 = vmatpush.msra.mxu2 %v3753_v36  ;;  %v4661_v36 = vld [vmem:[#allocation14_spill] sm:$0xff] }
 0x75d   :  { %1830 = vmatpush.msra.mxu3 %v3749_v32  ;;  %1850 = vmatpush.msra.mxu0 %v3751_v35  ;;  %v4659_v32 = vld [vmem:[#allocation34_spill] sm:$0xff]  ;;  %v4660_v35 = vld [vmem:[#allocation44_spill] sm:$0xff] }
 0x75e   :  { %1764 = vmatpush.msra.mxu2 %v3763_v41  ;;  %v4664_v41 = vld [vmem:[#allocation9_spill] sm:$0xff] }
 0x75f   :  { %1831 = vmatpush.msra.mxu3 %v3759_v38  ;;  %1851 = vmatpush.msra.mxu0 %v3761_v39  ;;  %v4662_v38 = vld [vmem:[#allocation30_spill] sm:$0xff]  ;;  %v4663_v39 = vld [vmem:[#allocation11_spill] sm:$0xff] }
 0x760   :  { %1765 = vmatpush.msra.mxu2 %v3773_v46 }
 0x761   :  { %1832 = vmatpush.msra.mxu3 %v3769_v42  ;;  %1852 = vmatpush.msra.mxu0 %v3771_v45  ;;  %v4665_v42 = vld [vmem:[#allocation13_spill] sm:$0xff] }
 0x762   :  { %1766 = vmatpush.msra.mxu2 %v3783_v60  ;;  %v289_v45 = vadd.f32 %v4665_v42, %v4664_v41 }
 0x763   :  { %1833 = vmatpush.msra.mxu3 %v3779_v52  ;;  %1853 = vmatpush.msra.mxu0 %v3781_v58  ;;  %v4666_v58 = vld [vmem:[#allocation29_spill] sm:$0xff] }
 0x764   :  { %1767 = vmatpush.msra.mxu2 %v3793_v0 }
 0x765   :  { %1834 = vmatpush.msra.mxu3 %v3789_v61  ;;  %1854 = vmatpush.msra.mxu0 %v3791_v63 }
 0x766   :  { %1768 = vmatpush.msra.mxu2 %v3803_v2 }
 0x767   :  { %1835 = vmatpush.msra.mxu3 %v3799_v1  ;;  %1855 = vmatpush.msra.mxu0 %v3801_v3 }
 0x768   :  { %1769 = vmatpush.msra.mxu2 %v3813_v49 }
 0x769   :  { %1836 = vmatpush.msra.mxu3 %v3809_v55  ;;  %1856 = vmatpush.msra.mxu0 %v3811_v13 }
 0x76a   :  { %1770 = vmatpush.msra.mxu2 %v3824_v17 }
 0x76b   :  { %1837 = vmatpush.msra.mxu3 %v3820_v44  ;;  %1857 = vmatpush.msra.mxu0 %v3822_v10 }
 0x76c   :  { %1771 = vmatpush.msra.mxu2 %v3834_v4 }
 0x76d   :  { %1838 = vmatpush.msra.mxu3 %v3830_v18  ;;  %1858 = vmatpush.msra.mxu0 %v3832_v24 }
 0x76e   :  { %1772 = vmatpush.msra.mxu2 %v3846_v16 }
 0x76f   :  { %1839 = vmatpush.msra.mxu3 %v3842_v12  ;;  %1859 = vmatpush.msra.mxu0 %v3844_v20 }
 0x770   :  { %1773 = vmatpush.msra.mxu2 %v3856_v6 }
 0x771   :  { %1840 = vmatpush.msra.mxu3 %v3852_v23  ;;  %1860 = vmatpush.msra.mxu0 %v3854_v19 }
 0x772   :  { %1774 = vmatpush.msra.mxu2 %v3866_v30 }
 0x773   :  { %1841 = vmatpush.msra.mxu3 %v3862_v11  ;;  %1861 = vmatpush.msra.mxu0 %v3864_v26 }
 0x774   :  { %1775 = vmatpush.msra.mxu2 %v4644_v34 }
 0x775   :  { %1842 = vmatpush.msra.mxu3 %v4656_v57  ;;  %1862 = vmatpush.msra.mxu0 %v4657_v9 }
 0x776   :  { %1776 = vmatpush.msra.mxu2 %v4658_v29 }
 0x777   :  { %1843 = vmatpush.msra.mxu3 %v4659_v32  ;;  %1863 = vmatpush.msra.mxu0 %v4660_v35 }
 0x778   :  { %1777 = vmatpush.msra.mxu2 %v4661_v36 }
 0x779   :  { %1844 = vmatpush.msra.mxu3 %v4662_v38  ;;  %1864 = vmatpush.msra.mxu0 %v4663_v39 }
 0x7d7   :  { %v1565_v56 = vpop.f32.mrf.mxu0 }
 0x7d8   :  { %v1608_v28 = vadd.f32 %v4048_v5, %v1565_v56  ;;  %v4224_v56 = vld [vmem:[#allocation6 + $0xf0] sm:$0xff] }
 0x7dc   :  { %v1525_v46 = vpop.f32.mrf.mxu2  ;;  %v1545_v52 = vpop.f32.mrf.mxu3 }
 0x7dd   :  { %v1568_v60 = vadd.f32 %v1525_v46, %v4666_v58  ;;  %v1588_v61 = vadd.f32 %v1545_v52, %v289_v45 }
 0x7df   :  { %v2337_v63 = vmul.f32 -1.442695, %v1568_v60  ;;  %v2338_v0 = vmul.f32 -1.442695, %v1588_v61  ;;  %v4176_v60 = vld [vmem:[#allocation6 + $0x178] sm:$0xff]  ;;  %v4179_v61 = vld [vmem:[#allocation6 + $0x168] sm:$0xff] }
 0x7e1   :  { %2505 = vpow2.f32 %v2337_v63  ;;  %v4182_v63 = vld [vmem:[#allocation6 + $0x170] sm:$0xff] }
 0x7e2   :  { %2507 = vpow2.f32 %v2338_v0  ;;  %v4185_v0 = vld [vmem:[#allocation6 + $0x160] sm:$0xff] }
 0x7e7   :  { %v2506_v1 = vpop.eup %2505 }
 0x7e8   :  { %v2508_v3 = vpop.eup %2507  ;;  %v1572_v2 = vadd.f32 1.0, %v2506_v1  ;;  %v4188_v1 = vld [vmem:[#allocation6 + $0x150] sm:$0xff] }
 0x7e9   :  { %v1592_v55 = vadd.f32 1.0, %v2508_v3  ;;  %v4191_v3 = vld [vmem:[#allocation6 + $0x158] sm:$0xff] }
 0x7ea   :  { %2509 = vrcp.f32 %v1572_v2  ;;  %v1584_v48 = vand.u32 2147483648, %v1572_v2  ;;  %v1582_v25 = vand.u32 2147483647, %v1572_v2  ;;  %vm1578_vm2 = vweird.f32 %v1572_v2 }
 0x7eb   :  { %2511 = vrcp.f32 %v1592_v55  ;;  %v1604_v51 = vand.u32 2147483648, %v1592_v55  ;;  %vm1598_vm6 = vweird.f32 %v1592_v55  ;;  %v1602_v33 = vand.u32 2147483647, %v1592_v55 }
 0x7ec   :  { %v1585_v54 = vor.u32 1.1754944e-38, %v1584_v48  ;;  %vm1583_vm4 = vcmp.eq.f32.partialorder %v1582_v25, 8.507059e+37  ;;  %v4212_v48 = vld [vmem:[#allocation6 + $0x118] sm:$0xff]  ;;  %v4221_v25 = vld [vmem:[#allocation6 + $0x100] sm:$0xff] }
 0x7ed   :  { %v1605_v42 = vor.u32 1.1754944e-38, %v1604_v51  ;;  %vm1603_vm8 = vcmp.eq.f32.partialorder %v1602_v33, 8.507059e+37  ;;  %v4670_v33 = vld [vmem:[#allocation10_spill] sm:$0xff] }
 0x7f0   :  { %v2510_v13 = vpop.eup %2509 }
 0x7f1   :  { %v2512_v49 = vpop.eup %2511  ;;  %v1574_v37 = vmul.f32 %v2510_v13, %v1572_v2  ;;  %vm1579_vm1 = vweird.f32 %v2510_v13  ;;  %v4194_v2 = vld [vmem:[#allocation6 + $0x148] sm:$0xff] }
 0x7f2   :  { %v1594_v15 = vmul.f32 %v2512_v49, %v1592_v55  ;;  %vm1580_vm3 = vmor %vm1578_vm2, %vm1579_vm1  ;;  %vm1599_vm5 = vweird.f32 %v2512_v49  ;;  %v4197_v55 = vld [vmem:[#allocation6 + $0x138] sm:$0xff] }
 0x7f3   :  { %v1575_v40 = vsub.f32 1.0, %v1574_v37  ;;  %vm1600_vm7 = vmor %vm1598_vm6, %vm1599_vm5  ;;  %v4206_v37 = vld [vmem:[#allocation6 + $0x120] sm:$0xff] }
 0x7f4   :  { %v1595_v62 = vsub.f32 1.0, %v1594_v15  ;;  %v4215_v15 = vld [vmem:[#allocation6 + $0x108] sm:$0xff] }
 0x7f5   :  { %v1576_v7 = vmul.f32 %v2510_v13, %v1575_v40  ;;  %v4209_v40 = vld [vmem:[#allocation6 + $0x128] sm:$0xff] }
 0x7f6   :  { %v1596_v47 = vmul.f32 %v2512_v49, %v1595_v62  ;;  %v4233_v62 = vld [vmem:[#allocation6 + $0xd8] sm:$0xff] }
 0x7f7   :  { %v1577_v21 = vadd.f32 %v2510_v13, %v1576_v7  ;;  %v4218_v7 = vld [vmem:[#allocation6 + $0x110] sm:$0xff] }
 0x7f8   :  { %v1597_v53 = vadd.f32 %v2512_v49, %v1596_v47 }
 0x7f9   :  { %v1581_v59 = vsel %vm1580_vm3, %v2510_v13, %v1577_v21  ;;  %v4200_v13 = vld [vmem:[#allocation6 + $0x140] sm:$0xff]  ;;  %v4227_v21 = vld [vmem:[#allocation6 + $0xf8] sm:$0xff] }
 0x7fa   :  { %v1586_v31 = vsel %vm1583_vm4, %v1585_v54, %v1581_v59  ;;  %v1601_v43 = vsel %vm1600_vm7, %v2512_v49, %v1597_v53  ;;  %v4203_v49 = vld [vmem:[#allocation6 + $0x130] sm:$0xff]  ;;  %v4230_v54 = vld [vmem:[#allocation6 + $0xe8] sm:$0xff] }
 0x7fb   :  { %v1609_v8 = vmul.f32 %v1608_v28, %v1586_v31  ;;  %v1606_v46 = vsel %vm1603_vm8, %v1605_v42, %v1601_v43  ;;  %v4236_v28 = vld [vmem:[#allocation6 + $0xe0] sm:$0xff]  ;;  %v4239_v59 = vld [vmem:[#allocation6 + $0xd0] sm:$0xff] }
 0x7fc   :  { %v4242_v31 = vld [vmem:[#allocation6 + $0xc0] sm:$0xff] }
 0x7fd   :  { %v1610_v50 = vadd.f32 %v1609_v8, %v4667_v14  ;;  %v4245_v8 = vld [vmem:[#allocation6 + $0xc8] sm:$0xff] }
 0x7ff   :  { %2513 = vtanh.f32 %v1610_v50 }
 0x805   :  { %v2514_v41 = vpop.eup %2513 }
 0x806   :  { %v1612_v45 = vsub.f32 %v4112_v27, %v2514_v41 }
 0x808   :  { %v1613_v52 = vmul.f32 %v1612_v45, %v1606_v46 }
 0x80a   :  { %v4171_v58 = vadd.f32 %v2514_v41, %v1613_v52 }
 0x80c   :  { %1631 = vmatmul.f32.vlgmr.msra.gmra.mxu1 %v4171_v58  ;;  %1651 = vmatmul.f32.vlgmr.msrb.gmra.mxu2 %v4171_v58 }
 0x80d   :  { %1671 = vmatmul.f32.vlgmr.msrb.gmra.mxu3 %v4171_v58  ;;  %1869 = vmatpush.msra.mxu1 %v4176_v60 }
 0x80e   :  { %1936 = vmatpush.msrb.mxu2 %v4179_v61  ;;  %1956 = vmatpush.msrb.mxu3 %v4182_v63 }
 0x80f   :  { %1870 = vmatpush.msra.mxu1 %v4185_v0 }
 0x810   :  { %1937 = vmatpush.msrb.mxu2 %v4188_v1  ;;  %1957 = vmatpush.msrb.mxu3 %v4191_v3 }
 0x811   :  { %1871 = vmatpush.msra.mxu1 %v4194_v2 }
 0x812   :  { %1938 = vmatpush.msrb.mxu2 %v4197_v55  ;;  %1958 = vmatpush.msrb.mxu3 %v4200_v13 }
 0x813   :  { %1872 = vmatpush.msra.mxu1 %v4203_v49 }
 0x814   :  { %1939 = vmatpush.msrb.mxu2 %v4206_v37  ;;  %1959 = vmatpush.msrb.mxu3 %v4209_v40 }
 0x815   :  { %1873 = vmatpush.msra.mxu1 %v4212_v48 }
 0x816   :  { %1940 = vmatpush.msrb.mxu2 %v4215_v15  ;;  %1960 = vmatpush.msrb.mxu3 %v4218_v7 }
 0x817   :  { %1874 = vmatpush.msra.mxu1 %v4221_v25 }
 0x818   :  { %1941 = vmatpush.msrb.mxu2 %v4224_v56  ;;  %1961 = vmatpush.msrb.mxu3 %v4227_v21 }
 0x819   :  { %1875 = vmatpush.msra.mxu1 %v4230_v54 }
 0x81a   :  { %1942 = vmatpush.msrb.mxu2 %v4233_v62  ;;  %1962 = vmatpush.msrb.mxu3 %v4236_v28 }
 0x81b   :  { %1876 = vmatpush.msra.mxu1 %v4239_v59 }
 0x81c   :  { %1943 = vmatpush.msrb.mxu2 %v4242_v31  ;;  %1963 = vmatpush.msrb.mxu3 %v4245_v8 }
 0x81d   :  { %1877 = vmatpush.msra.mxu1 %v3824_v17 }
 0x81e   :  { %1944 = vmatpush.msrb.mxu2 %v3820_v44  ;;  %1964 = vmatpush.msrb.mxu3 %v3822_v10  ;;  %v4668_v10 = vld [vmem:[#allocation31_spill] sm:$0xff] }
 0x81f   :  { %1878 = vmatpush.msra.mxu1 %v3834_v4  ;;  %v4669_v4 = vld [vmem:[#allocation53_spill] sm:$0xff] }
 0x820   :  { %1945 = vmatpush.msrb.mxu2 %v3830_v18  ;;  %1965 = vmatpush.msrb.mxu3 %v3832_v24 }
 0x821   :  { %1879 = vmatpush.msra.mxu1 %v3846_v16 }
 0x822   :  { %1946 = vmatpush.msrb.mxu2 %v3842_v12  ;;  %1966 = vmatpush.msrb.mxu3 %v3844_v20 }
 0x823   :  { %1880 = vmatpush.msra.mxu1 %v3856_v6 }
 0x824   :  { %1947 = vmatpush.msrb.mxu2 %v3852_v23  ;;  %1967 = vmatpush.msrb.mxu3 %v3854_v19 }
 0x825   :  { %1881 = vmatpush.msra.mxu1 %v3866_v30 }
 0x826   :  { %1948 = vmatpush.msrb.mxu2 %v3862_v11  ;;  %1968 = vmatpush.msrb.mxu3 %v3864_v26 }
 0x827   :  { %1882 = vmatpush.msra.mxu1 %v4644_v34 }
 0x828   :  { %1949 = vmatpush.msrb.mxu2 %v4656_v57  ;;  %1969 = vmatpush.msrb.mxu3 %v4657_v9 }
 0x829   :  { %1883 = vmatpush.msra.mxu1 %v4658_v29 }
 0x82a   :  { %1950 = vmatpush.msrb.mxu2 %v4659_v32  ;;  %1970 = vmatpush.msrb.mxu3 %v4660_v35 }
 0x82b   :  { %1884 = vmatpush.msra.mxu1 %v4661_v36 }
 0x82c   :  { %1951 = vmatpush.msrb.mxu2 %v4662_v38  ;;  %1971 = vmatpush.msrb.mxu3 %v4663_v39 }
 0x889   :  { %v1632_v44 = vpop.f32.mrf.mxu1 }
 0x88a   :  { %v1675_v17 = vadd.f32 %v1632_v44, %v4668_v10 }
 0x88c   :  { %v2339_v18 = vmul.f32 -1.442695, %v1675_v17 }
 0x88e   :  { %2515 = vpow2.f32 %v2339_v18 }
 0x88f   :  { %v1652_v24 = vpop.f32.mrf.mxu2 }
 0x890   :  { %v1695_v12 = vadd.f32 %v1652_v24, %v4669_v4  ;;  %v1672_v32 = vpop.f32.mrf.mxu3  ;;  %v2654_v4 = vld [vmem:[#allocation6 + $0x30] sm:$0xff] }
 0x891   :  { %v1715_v14 = vadd.f32 %v4048_v5, %v1672_v32 }
 0x892   :  { %v2340_v20 = vmul.f32 -1.442695, %v1695_v12  ;;  %v2655_v12 = vld [vmem:[#allocation6 + $0x38] sm:$0xff] }
 0x894   :  { %v2516_v16 = vpop.eup %2515  ;;  %2517 = vpow2.f32 %v2340_v20  ;;  %v4324_v20 = vld [vmem:[#allocation6 + $0x28] sm:$0xff] }
 0x895   :  { %v1679_v23 = vadd.f32 1.0, %v2516_v16  ;;  %v2657_v16 = vld [vmem:[#allocation6 + $0x18] sm:$0xff] }
 0x897   :  { %2519 = vrcp.f32 %v1679_v23  ;;  %v1691_v34 = vand.u32 2147483648, %v1679_v23  ;;  %v1689_v9 = vand.u32 2147483647, %v1679_v23  ;;  %vm1685_vm10 = vweird.f32 %v1679_v23 }
 0x899   :  { %v1692_v38 = vor.u32 1.1754944e-38, %v1691_v34  ;;  %vm1690_vm12 = vcmp.eq.f32.partialorder %v1689_v9, 8.507059e+37  ;;  %v4671_v34 = vld [vmem:[#allocation33_spill] sm:$0xff]  ;;  %v4672_v9 = vld [vmem:[#allocation55_spill] sm:$0xff] }
 0x89a   :  { %v2518_v19 = vpop.eup %2517 }
 0x89b   :  { %v1699_v6 = vadd.f32 1.0, %v2518_v19  ;;  %v4327_v19 = vld [vmem:[#allocation6 + $0x10] sm:$0xff] }
 0x89d   :  { %v2520_v11 = vpop.eup %2519  ;;  %2521 = vrcp.f32 %v1699_v6  ;;  %v1711_v42 = vand.u32 2147483648, %v1699_v6  ;;  %vm1705_vm14 = vweird.f32 %v1699_v6  ;;  %v1709_v45 = vand.u32 2147483647, %v1699_v6 }
 0x89e   :  { %v1681_v26 = vmul.f32 %v2520_v11, %v1679_v23  ;;  %vm1686_vm9 = vweird.f32 %v2520_v11  ;;  %v2658_v23 = vld [vmem:[#allocation6 + $0x20] sm:$0xff] }
 0x89f   :  { %vm1687_vm11 = vmor %vm1685_vm10, %vm1686_vm9  ;;  %v1712_v44 = vor.u32 1.1754944e-38, %v1711_v42  ;;  %vm1710_vm0 = vcmp.eq.f32.partialorder %v1709_v45, 8.507059e+37 }
 0x8a0   :  { %v1682_v30 = vsub.f32 1.0, %v1681_v26 }
 0x8a2   :  { %v1683_v57 = vmul.f32 %v2520_v11, %v1682_v30 }
 0x8a3   :  { %v2522_v29 = vpop.eup %2521 }
 0x8a4   :  { %v1701_v35 = vmul.f32 %v2522_v29, %v1699_v6  ;;  %v1684_v36 = vadd.f32 %v2520_v11, %v1683_v57  ;;  %vm1706_vm13 = vweird.f32 %v2522_v29  ;;  %v2660_v6 = vld [vmem:[#allocation6] sm:$0xff] }
 0x8a5   :  { %vm1707_vm15 = vmor %vm1705_vm14, %vm1706_vm13 }
 0x8a6   :  { %v1702_v39 = vsub.f32 1.0, %v1701_v35  ;;  %v1688_v47 = vsel %vm1687_vm11, %v2520_v11, %v1684_v36  ;;  %v2661_v11 = vld [vmem:[#allocation6 + $0x8] sm:$0xff] }
 0x8a7   :  { %v1693_v50 = vsel %vm1690_vm12, %v1692_v38, %v1688_v47 }
 0x8a8   :  { %v1716_v53 = vmul.f32 %v1715_v14, %v1693_v50  ;;  %v1703_v51 = vmul.f32 %v2522_v29, %v1702_v39 }
 0x8aa   :  { %v1717_v43 = vadd.f32 %v1716_v53, %v4670_v33  ;;  %v1704_v41 = vadd.f32 %v2522_v29, %v1703_v51 }
 0x8ac   :  { %2523 = vtanh.f32 %v1717_v43  ;;  %v1708_v46 = vsel %vm1707_vm15, %v2522_v29, %v1704_v41 }
 0x8ad   :  { %v1713_v17 = vsel %vm1710_vm0, %v1712_v44, %v1708_v46 }
 0x8b2   :  { %v2524_v52 = vpop.eup %2523 }
 0x8b3   :  { %v1719_v10 = vsub.f32 %v4171_v58, %v2524_v52 }
 0x8b5   :  { %v1720_v18 = vmul.f32 %v1719_v10, %v1713_v17 }
 0x8b7   :  { %v4277_v24 = vadd.f32 %v2524_v52, %v1720_v18 }
 0x8b9   :  { %1738 = vmatmul.f32.vlgmr.msrb.gmra.mxu0 %v4277_v24  ;;  %1758 = vmatmul.f32.vlgmr.msrb.gmra.mxu1 %v4277_v24 }
 0x8ba   :  { %1778 = vmatmul.f32.vlgmr.msra.gmra.mxu2 %v4277_v24  ;;  %1976 = vmatpush.msrb.mxu0 %v4176_v60 }
 0x8bb   :  { %2043 = vmatpush.msrb.mxu1 %v4179_v61  ;;  %2063 = vmatpush.msra.mxu2 %v4182_v63  ;;  %v4306_v61 = vld [vmem:[#allocation6 + $0xb8] sm:$0xff]  ;;  %v2639_v63 = vld [vmem:[#allocation6 + $0xa8] sm:$0xff] }
 0x8bc   :  { %1977 = vmatpush.msrb.mxu0 %v4185_v0 }
 0x8bd   :  { %2044 = vmatpush.msrb.mxu1 %v4188_v1  ;;  %2064 = vmatpush.msra.mxu2 %v4191_v3  ;;  %v2640_v1 = vld [vmem:[#allocation6 + $0xb0] sm:$0xff]  ;;  %v4309_v3 = vld [vmem:[#allocation6 + $0xa0] sm:$0xff] }
 0x8be   :  { %1978 = vmatpush.msrb.mxu0 %v4194_v2 }
 0x8bf   :  { %2045 = vmatpush.msrb.mxu1 %v4197_v55  ;;  %2065 = vmatpush.msra.mxu2 %v4200_v13  ;;  %v2642_v55 = vld [vmem:[#allocation6 + $0x90] sm:$0xff]  ;;  %v2643_v13 = vld [vmem:[#allocation6 + $0x98] sm:$0xff] }
 0x8c0   :  { %1979 = vmatpush.msrb.mxu0 %v4203_v49 }
 0x8c1   :  { %2046 = vmatpush.msrb.mxu1 %v4206_v37  ;;  %2066 = vmatpush.msra.mxu2 %v4209_v40  ;;  %v4312_v37 = vld [vmem:[#allocation6 + $0x88] sm:$0xff]  ;;  %v2645_v40 = vld [vmem:[#allocation6 + $0x78] sm:$0xff] }
 0x8c2   :  { %1980 = vmatpush.msrb.mxu0 %v4212_v48 }
 0x8c3   :  { %2047 = vmatpush.msrb.mxu1 %v4215_v15  ;;  %2067 = vmatpush.msra.mxu2 %v4218_v7  ;;  %v2646_v15 = vld [vmem:[#allocation6 + $0x80] sm:$0xff]  ;;  %v4315_v7 = vld [vmem:[#allocation6 + $0x70] sm:$0xff] }
 0x8c4   :  { %1981 = vmatpush.msrb.mxu0 %v4221_v25 }
 0x8c5   :  { %2048 = vmatpush.msrb.mxu1 %v4224_v56  ;;  %2068 = vmatpush.msra.mxu2 %v4227_v21  ;;  %v2648_v56 = vld [vmem:[#allocation6 + $0x60] sm:$0xff]  ;;  %v2649_v21 = vld [vmem:[#allocation6 + $0x68] sm:$0xff] }
 0x8c6   :  { %1982 = vmatpush.msrb.mxu0 %v4230_v54 }
 0x8c7   :  { %2049 = vmatpush.msrb.mxu1 %v4233_v62  ;;  %2069 = vmatpush.msra.mxu2 %v4236_v28  ;;  %v4318_v62 = vld [vmem:[#allocation6 + $0x58] sm:$0xff]  ;;  %v2651_v28 = vld [vmem:[#allocation6 + $0x48] sm:$0xff] }
 0x8c8   :  { %1983 = vmatpush.msrb.mxu0 %v4239_v59 }
 0x8c9   :  { %2050 = vmatpush.msrb.mxu1 %v4242_v31  ;;  %2070 = vmatpush.msra.mxu2 %v4245_v8  ;;  %v2652_v31 = vld [vmem:[#allocation6 + $0x50] sm:$0xff]  ;;  %v4321_v8 = vld [vmem:[#allocation6 + $0x40] sm:$0xff] }
 0x8ca   :  { %1984 = vmatpush.msrb.mxu0 %v4306_v61 }
 0x8cb   :  { %2051 = vmatpush.msrb.mxu1 %v2639_v63  ;;  %2071 = vmatpush.msra.mxu2 %v2640_v1 }
 0x8cc   :  { %1985 = vmatpush.msrb.mxu0 %v4309_v3 }
 0x8cd   :  { %2052 = vmatpush.msrb.mxu1 %v2642_v55  ;;  %2072 = vmatpush.msra.mxu2 %v2643_v13  ;;  %v4673_v55 = vld [vmem:[#allocation18_spill] sm:$0xff] }
 0x8ce   :  { %1986 = vmatpush.msrb.mxu0 %v4312_v37 }
 0x8cf   :  { %2053 = vmatpush.msrb.mxu1 %v2645_v40  ;;  %2073 = vmatpush.msra.mxu2 %v2646_v15 }
 0x8d0   :  { %1987 = vmatpush.msrb.mxu0 %v4315_v7 }
 0x8d1   :  { %2054 = vmatpush.msrb.mxu1 %v2648_v56  ;;  %2074 = vmatpush.msra.mxu2 %v2649_v21 }
 0x8d2   :  { %1988 = vmatpush.msrb.mxu0 %v4318_v62 }
 0x8d3   :  { %2055 = vmatpush.msrb.mxu1 %v2651_v28  ;;  %2075 = vmatpush.msra.mxu2 %v2652_v31 }
 0x8d4   :  { %1989 = vmatpush.msrb.mxu0 %v4321_v8 }
 0x8d5   :  { %2056 = vmatpush.msrb.mxu1 %v2654_v4  ;;  %2076 = vmatpush.msra.mxu2 %v2655_v12 }
 0x8d6   :  { %1990 = vmatpush.msrb.mxu0 %v4324_v20 }
 0x8d7   :  { %2057 = vmatpush.msrb.mxu1 %v2657_v16  ;;  %2077 = vmatpush.msra.mxu2 %v2658_v23 }
 0x8d8   :  { %1991 = vmatpush.msrb.mxu0 %v4327_v19 }
 0x8d9   :  { %2058 = vmatpush.msrb.mxu1 %v2660_v6  ;;  %2078 = vmatpush.msra.mxu2 %v2661_v11 }
 0x936   :  { %v1739_v26 = vpop.f32.mrf.mxu0  ;;  %v1759_v30 = vpop.f32.mrf.mxu1 }
 0x937   :  { %v1782_v57 = vadd.f32 %v1739_v26, %v4671_v34  ;;  %v1802_v29 = vadd.f32 %v1759_v30, %v4672_v9  ;;  %v2388_v26 = vld [vmem:[%s4455_s8 + $0x8] sm:$0xff]  ;;  %v2387_v30 = vld [vmem:[%s4455_s8] sm:$0xff] }
 0x939   :  { %v2341_v32 = vmul.f32 -1.442695, %v1782_v57  ;;  %v2342_v35 = vmul.f32 -1.442695, %v1802_v29 }
 0x93b   :  { %2525 = vpow2.f32 %v2341_v32 }
 0x93c   :  { %2527 = vpow2.f32 %v2342_v35 }
 0x93d   :  { %v1779_v45 = vpop.f32.mrf.mxu2 }
 0x93e   :  { %v1822_v17 = vadd.f32 %v4048_v5, %v1779_v45 }
 0x941   :  { %v2526_v36 = vpop.eup %2525 }
 0x942   :  { %v2528_v38 = vpop.eup %2527  ;;  %v1786_v39 = vadd.f32 1.0, %v2526_v36 }
 0x943   :  { %v1806_v47 = vadd.f32 1.0, %v2528_v38 }
 0x944   :  { %2529 = vrcp.f32 %v1786_v39  ;;  %v1798_v43 = vand.u32 2147483648, %v1786_v39  ;;  %v1796_v42 = vand.u32 2147483647, %v1786_v39  ;;  %vm1792_vm2 = vweird.f32 %v1786_v39 }
 0x945   :  { %2531 = vrcp.f32 %v1806_v47  ;;  %v1818_v15 = vand.u32 2147483648, %v1806_v47  ;;  %vm1812_vm6 = vweird.f32 %v1806_v47  ;;  %v1816_v56 = vand.u32 2147483647, %v1806_v47 }
 0x946   :  { %v1799_v44 = vor.u32 1.1754944e-38, %v1798_v43  ;;  %vm1797_vm4 = vcmp.eq.f32.partialorder %v1796_v42, 8.507059e+37  ;;  %v4676_v42 = vld [vmem:[#allocation54_spill] sm:$0xff] }
 0x947   :  { %v1819_v31 = vor.u32 1.1754944e-38, %v1818_v15  ;;  %vm1817_vm8 = vcmp.eq.f32.partialorder %v1816_v56, 8.507059e+37 }
 0x94a   :  { %v2530_v14 = vpop.eup %2529 }
 0x94b   :  { %v2532_v50 = vpop.eup %2531  ;;  %v1788_v53 = vmul.f32 %v2530_v14, %v1786_v39  ;;  %vm1793_vm1 = vweird.f32 %v2530_v14 }
 0x94c   :  { %v1808_v33 = vmul.f32 %v2532_v50, %v1806_v47  ;;  %vm1794_vm3 = vmor %vm1792_vm2, %vm1793_vm1  ;;  %vm1813_vm5 = vweird.f32 %v2532_v50 }
 0x94d   :  { %v1789_v51 = vsub.f32 1.0, %v1788_v53  ;;  %vm1814_vm7 = vmor %vm1812_vm6, %vm1813_vm5 }
 0x94e   :  { %v1809_v52 = vsub.f32 1.0, %v1808_v33 }
 0x94f   :  { %v1790_v41 = vmul.f32 %v2530_v14, %v1789_v51 }
 0x950   :  { %v1810_v1 = vmul.f32 %v2532_v50, %v1809_v52 }
 0x951   :  { %v1791_v46 = vadd.f32 %v2530_v14, %v1790_v41 }
 0x952   :  { %v1811_v40 = vadd.f32 %v2532_v50, %v1810_v1 }
 0x953   :  { %v1795_v10 = vsel %vm1794_vm3, %v2530_v14, %v1791_v46 }
 0x954   :  { %v1800_v18 = vsel %vm1797_vm4, %v1799_v44, %v1795_v10  ;;  %v1815_v21 = vsel %vm1814_vm7, %v2532_v50, %v1811_v40  ;;  %v2151_v40 = vpack.c.bf16 %v4277_v24, %v4171_v58 }
 0x955   :  { %v1823_v63 = vmul.f32 %v1822_v17, %v1800_v18  ;;  %v1820_v12 = vsel %vm1817_vm8, %v1819_v31, %v1815_v21  ;;  %v4399_v31 = vld [vmem:[%s4456_s9] ss:$0 sm:$0xff] }
 0x957   :  { %v1824_v13 = vadd.f32 %v1823_v63, %v4673_v55 }
 0x959   :  { %2533 = vtanh.f32 %v1824_v13  ;;  %v2150_v13 = vpack.c.bf16 %v4112_v27, %v4054_v22  ;;  %v4678_v22 = vld [vmem:[#allocation59_spill] sm:$0xff] }
 0x95f   :  { %v2534_v28 = vpop.eup %2533 }
 0x960   :  { %v1826_v4 = vsub.f32 %v4277_v24, %v2534_v28 }
 0x962   :  { %v1827_v16 = vmul.f32 %v1826_v4, %v1820_v12  ;;  %v4677_v4 = vld [vmem:[#allocation37_spill] sm:$0xff] }
 0x964   :  { %v4335_v23 = vadd.f32 %v2534_v28, %v1827_v16 }
 0x966   :  { %1845 = vmatmul.f32.vlgmr.msra.gmra.mxu3 %v4335_v23  ;;  %1865 = vmatmul.f32.vlgmr.msra.gmra.mxu0 %v4335_v23 }
 0x967   :  { %1885 = vmatmul.f32.vlgmr.msra.gmra.mxu1 %v4335_v23  ;;  %2083 = vmatpush.msra.mxu3 %v4176_v60  ;;  %v2394_v60 = vld [vmem:[%s4455_s8 + $0x38] sm:$0xff] }
 0x968   :  { %2222 = vmatpush.bf16.msra.mxu0 %v2394_v60 }
 0x969   :  { %2084 = vmatpush.msra.mxu3 %v4185_v0 }
 0x96b   :  { %2085 = vmatpush.msra.mxu3 %v4194_v2  ;;  %v4674_v2 = vld [vmem:[#allocation57_spill] sm:$0xff] }
 0x96d   :  { %2086 = vmatpush.msra.mxu3 %v4203_v49 }
 0x96f   :  { %2087 = vmatpush.msra.mxu3 %v4212_v48  ;;  %v2393_v48 = vld [vmem:[%s4455_s8 + $0x30] sm:$0xff] }
 0x970   :  { %2223 = vmatpush.bf16.msra.mxu0 %v2393_v48 }
 0x971   :  { %2088 = vmatpush.msra.mxu3 %v4221_v25 }
 0x973   :  { %2089 = vmatpush.msra.mxu3 %v4230_v54  ;;  %v2392_v54 = vld [vmem:[%s4455_s8 + $0x28] sm:$0xff] }
 0x974   :  { %2224 = vmatpush.bf16.msra.mxu0 %v2392_v54 }
 0x975   :  { %2090 = vmatpush.msra.mxu3 %v4239_v59 }
 0x977   :  { %2091 = vmatpush.msra.mxu3 %v4306_v61  ;;  %v4675_v61 = vld [vmem:[#allocation35_spill] sm:$0xff] }
 0x979   :  { %2092 = vmatpush.msra.mxu3 %v4309_v3 }
 0x97b   :  { %2093 = vmatpush.msra.mxu3 %v4312_v37  ;;  %v2391_v37 = vld [vmem:[%s4455_s8 + $0x20] sm:$0xff] }
 0x97c   :  { %2225 = vmatpush.bf16.msra.mxu0 %v2391_v37 }
 0x97d   :  { %2094 = vmatpush.msra.mxu3 %v4315_v7 }
 0x97f   :  { %2095 = vmatpush.msra.mxu3 %v4318_v62  ;;  %v2390_v62 = vld [vmem:[%s4455_s8 + $0x18] sm:$0xff] }
 0x980   :  { %2226 = vmatpush.bf16.msra.mxu0 %v2390_v62 }
 0x981   :  { %2096 = vmatpush.msra.mxu3 %v4321_v8 }
 0x983   :  { %2097 = vmatpush.msra.mxu3 %v4324_v20  ;;  %v2389_v20 = vld [vmem:[%s4455_s8 + $0x10] sm:$0xff] }
 0x984   :  { %2227 = vmatpush.bf16.msra.mxu0 %v2389_v20 }
 0x985   :  { %2098 = vmatpush.msra.mxu3 %v4327_v19 }
 0x988   :  { %2228 = vmatpush.bf16.msra.mxu0 %v2388_v26 }
 0x98c   :  { %2229 = vmatpush.bf16.msra.mxu0 %v2387_v30 }
 0x9e3   :  { %v1866_v0 = vpop.f32.mrf.mxu0 }
 0x9e4   :  { %v1909_v49 = vadd.f32 %v1866_v0, %v4674_v2  ;;  %v1886_v39 = vpop.f32.mrf.mxu1 }
 0x9e5   :  { %v1929_v53 = vadd.f32 %v4048_v5, %v1886_v39 }
 0x9e6   :  { %v2344_v25 = vmul.f32 -1.442695, %v1909_v49 }
 0x9e8   :  { %2535 = vpow2.f32 %v2344_v25 }
 0x9e9   :  { %v1846_v59 = vpop.f32.mrf.mxu3 }
 0x9ea   :  { %v1889_v3 = vadd.f32 %v1846_v59, %v4675_v61 }
 0x9ec   :  { %v2343_v7 = vmul.f32 -1.442695, %v1889_v3 }
 0x9ee   :  { %2537 = vpow2.f32 %v2343_v7  ;;  %v2536_v8 = vpop.eup %2535 }
 0x9ef   :  { %v1913_v6 = vadd.f32 1.0, %v2536_v8 }
 0x9f1   :  { %v1925_v52 = vand.u32 2147483648, %v1913_v6  ;;  %vm1919_vm14 = vweird.f32 %v1913_v6  ;;  %v1923_v44 = vand.u32 2147483647, %v1913_v6 }
 0x9f3   :  { %v1926_v18 = vor.u32 1.1754944e-38, %v1925_v52  ;;  %vm1924_vm0 = vcmp.eq.f32.partialorder %v1923_v44, 8.507059e+37 }
 0x9f4   :  { %v2538_v19 = vpop.eup %2537 }
 0x9f5   :  { %v1893_v11 = vadd.f32 1.0, %v2538_v19 }
 0x9f7   :  { %2539 = vrcp.f32 %v1893_v11  ;;  %v1905_v35 = vand.u32 2147483648, %v1893_v11  ;;  %v1903_v38 = vand.u32 2147483647, %v1893_v11  ;;  %vm1899_vm10 = vweird.f32 %v1893_v11 }
 0x9f8   :  { %2541 = vrcp.f32 %v1913_v6 }
 0x9f9   :  { %v1906_v50 = vor.u32 1.1754944e-38, %v1905_v35  ;;  %vm1904_vm12 = vcmp.eq.f32.partialorder %v1903_v38, 8.507059e+37  ;;  %v4679_v38 = vld [vmem:[#allocation56_spill] sm:$0xff] }
 0x9fd   :  { %v2540_v34 = vpop.eup %2539 }
 0x9fe   :  { %v2542_v57 = vpop.eup %2541  ;;  %v1895_v9 = vmul.f32 %v2540_v34, %v1893_v11  ;;  %vm1900_vm9 = vweird.f32 %v2540_v34 }
 0x9ff   :  { %v1915_v32 = vmul.f32 %v2542_v57, %v1913_v6  ;;  %vm1901_vm11 = vmor %vm1899_vm10, %vm1900_vm9  ;;  %vm1920_vm13 = vweird.f32 %v2542_v57 }
 0xa00   :  { %v1896_v29 = vsub.f32 1.0, %v1895_v9  ;;  %vm1921_vm15 = vmor %vm1919_vm14, %vm1920_vm13 }
 0xa01   :  { %v1916_v14 = vsub.f32 1.0, %v1915_v32 }
 0xa02   :  { %v1897_v36 = vmul.f32 %v2540_v34, %v1896_v29 }
 0xa03   :  { %v1917_v41 = vmul.f32 %v2542_v57, %v1916_v14 }
 0xa04   :  { %v1898_v47 = vadd.f32 %v2540_v34, %v1897_v36 }
 0xa05   :  { %v1918_v46 = vadd.f32 %v2542_v57, %v1917_v41 }
 0xa06   :  { %v1902_v51 = vsel %vm1901_vm11, %v2540_v34, %v1898_v47 }
 0xa07   :  { %v1907_v33 = vsel %vm1904_vm12, %v1906_v50, %v1902_v51  ;;  %v1922_v10 = vsel %vm1921_vm15, %v2542_v57, %v1918_v46  ;;  %v4419_v57 = vld [vmem:[%s4454_s7] ss:$0 sm:$0xff] }
 0xa08   :  { %v1930_v43 = vmul.f32 %v1929_v53, %v1907_v33  ;;  %v1927_v63 = vsel %vm1924_vm0, %v1926_v18, %v1922_v10  ;;  %v4680_v18 = vld [vmem:[#allocation40_spill] sm:$0xff] }
 0xa0a   :  { %v1931_v45 = vadd.f32 %v1930_v43, %v4676_v42 }
 0xa0c   :  { %2543 = vtanh.f32 %v1931_v45 }
 0xa12   :  { %v2544_v17 = vpop.eup %2543 }
 0xa13   :  { %v1933_v5 = vsub.f32 %v4335_v23, %v2544_v17 }
 0xa15   :  { %v1934_v1 = vmul.f32 %v1933_v5, %v1927_v63 }
 0xa17   :  { %v4385_v55 = vadd.f32 %v2544_v17, %v1934_v1 }
 0xa19   :  { %1952 = vmatmul.f32.vlgmr.msrb.gmra.mxu2 %v4385_v55  ;;  %1972 = vmatmul.f32.vlgmr.msrb.gmra.mxu3 %v4385_v55  ;;  %v2152_v15 = vpack.c.bf16 %v4385_v55, %v4335_v23 }
 0xa1a   :  { %1992 = vmatmul.f32.vlgmr.msrb.gmra.mxu0 %v4385_v55 }
 0xa22   :  { %2230 = vmatmul.bf16.vlgmr.msra.gmra.mxu0 %v2150_v13 }
 0xa32   :  { %2235 = vmatmul.bf16.gmra.mxu0 %v2151_v40 }
 0xa42   :  { %2240 = vmatmul.bf16.gmra.mxu0 %v2152_v15 }
 0xa97   :  { %v1993_v56 = vpop.f32.mrf.mxu0 }
 0xa98   :  { %v2036_v9 = vadd.f32 %v4419_v57, %v1993_v56 }
 0xa9c   :  { %v1953_v21 = vpop.f32.mrf.mxu2  ;;  %v1973_v28 = vpop.f32.mrf.mxu3 }
 0xa9d   :  { %v1996_v12 = vadd.f32 %v1953_v21, %v4677_v4  ;;  %v2016_v27 = vadd.f32 %v1973_v28, %v4678_v22 }
 0xa9f   :  { %v2345_v16 = vmul.f32 -1.442695, %v1996_v12  ;;  %v2346_v60 = vmul.f32 -1.442695, %v2016_v27  ;;  %v2231_v58 = vpop.f32.mrf.mxu0 }
 0xaa0   :  { %v2232_v24 = vadd.f32 %v4399_v31, %v2231_v58 }
 0xaa1   :  { %2545 = vpow2.f32 %v2345_v16 }
 0xaa2   :  { %2547 = vpow2.f32 %v2346_v60  ;;  %2251 = vst [vmem:[%s4457_s10] sm:$0xff] %v2232_v24 }
 0xaa7   :  { %v2546_v23 = vpop.eup %2545  ;;  %v2233_v0 = vpop.f32.mrf.mxu0 }
 0xaa8   :  { %v2548_v2 = vpop.eup %2547  ;;  %v2000_v49 = vadd.f32 1.0, %v2546_v23  ;;  %v2234_v48 = vadd.f32 %v4399_v31, %v2233_v0 }
 0xaa9   :  { %v2020_v25 = vadd.f32 1.0, %v2548_v2 }
 0xaaa   :  { %2549 = vrcp.f32 %v2000_v49  ;;  %2252 = vst [vmem:[%s4457_s10 + $0x8] sm:$0xff] %v2234_v48  ;;  %v2012_v62 = vand.u32 2147483648, %v2000_v49  ;;  %v2010_v19 = vand.u32 2147483647, %v2000_v49  ;;  %vm2006_vm2 = vweird.f32 %v2000_v49 }
 0xaab   :  { %2551 = vrcp.f32 %v2020_v25  ;;  %v2032_v53 = vand.u32 2147483648, %v2020_v25  ;;  %vm2026_vm6 = vweird.f32 %v2020_v25  ;;  %v2030_v51 = vand.u32 2147483647, %v2020_v25 }
 0xaac   :  { %v2013_v26 = vor.u32 1.1754944e-38, %v2012_v62  ;;  %vm2011_vm4 = vcmp.eq.f32.partialorder %v2010_v19, 8.507059e+37 }
 0xaad   :  { %v2033_v41 = vor.u32 1.1754944e-38, %v2032_v53  ;;  %vm2031_vm8 = vcmp.eq.f32.partialorder %v2030_v51, 8.507059e+37 }
 0xaaf   :  { %v2236_v54 = vpop.f32.mrf.mxu0 }
 0xab0   :  { %v2550_v59 = vpop.eup %2549  ;;  %v2237_v61 = vadd.f32 %v4399_v31, %v2236_v54 }
 0xab1   :  { %v2552_v3 = vpop.eup %2551  ;;  %v2002_v37 = vmul.f32 %v2550_v59, %v2000_v49  ;;  %vm2007_vm1 = vweird.f32 %v2550_v59 }
 0xab2   :  { %2253 = vst [vmem:[%s4457_s10 + $0x10] sm:$0xff] %v2237_v61  ;;  %v2022_v8 = vmul.f32 %v2552_v3, %v2020_v25  ;;  %vm2008_vm3 = vmor %vm2006_vm2, %vm2007_vm1  ;;  %vm2027_vm5 = vweird.f32 %v2552_v3 }
 0xab3   :  { %v2003_v7 = vsub.f32 1.0, %v2002_v37  ;;  %vm2028_vm7 = vmor %vm2026_vm6, %vm2027_vm5 }
 0xab4   :  { %v2023_v30 = vsub.f32 1.0, %v2022_v8 }
 0xab5   :  { %v2004_v20 = vmul.f32 %v2550_v59, %v2003_v7 }
 0xab6   :  { %v2024_v36 = vmul.f32 %v2552_v3, %v2023_v30 }
 0xab7   :  { %v2005_v6 = vadd.f32 %v2550_v59, %v2004_v20  ;;  %v2238_v11 = vpop.f32.mrf.mxu0 }
 0xab8   :  { %v2239_v34 = vadd.f32 %v4399_v31, %v2238_v11  ;;  %v2025_v14 = vadd.f32 %v2552_v3, %v2024_v36 }
 0xab9   :  { %v2009_v29 = vsel %vm2008_vm3, %v2550_v59, %v2005_v6 }
 0xaba   :  { %v2014_v32 = vsel %vm2011_vm4, %v2013_v26, %v2009_v29  ;;  %2254 = vst [vmem:[%s4457_s10 + $0x18] sm:$0xff] %v2239_v34  ;;  %v2029_v33 = vsel %vm2028_vm7, %v2552_v3, %v2025_v14  ;;  %v4682_v3 = vld [vmem:[#allocation58_spill] sm:$0xff] }
 0xabb   :  { %v2037_v35 = vmul.f32 %v2036_v9, %v2014_v32  ;;  %v2034_v46 = vsel %vm2031_vm8, %v2033_v41, %v2029_v33 }
 0xabd   :  { %v2038_v39 = vadd.f32 %v2037_v35, %v4679_v38 }
 0xabf   :  { %v2241_v47 = vpop.f32.mrf.mxu0  ;;  %2553 = vtanh.f32 %v2038_v39 }
 0xac0   :  { %v2242_v50 = vadd.f32 %v4399_v31, %v2241_v47 }
 0xac2   :  { %2255 = vst [vmem:[%s4457_s10 + $0x20] sm:$0xff] %v2242_v50 }
 0xac5   :  { %v2554_v43 = vpop.eup %2553 }
 0xac6   :  { %v2040_v42 = vsub.f32 %v4385_v55, %v2554_v43  ;;  %v4681_v55 = vld [vmem:[#allocation60_spill] sm:$0xff] }
 0xac7   :  { %v2243_v45 = vpop.f32.mrf.mxu0 }
 0xac8   :  { %v2244_v52 = vadd.f32 %v4399_v31, %v2243_v45  ;;  %v2041_v44 = vmul.f32 %v2040_v42, %v2034_v46 }
 0xaca   :  { %2256 = vst [vmem:[%s4457_s10 + $0x28] sm:$0xff] %v2244_v52  ;;  %v2042_v10 = vadd.f32 %v2554_v43, %v2041_v44 }
 0xacc   :  { %2059 = vmatmul.f32.vlgmr.msrb.gmra.mxu1 %v2042_v10  ;;  %2079 = vmatmul.f32.vlgmr.msra.gmra.mxu2 %v2042_v10 }
 0xacd   :  { %2099 = vmatmul.f32.vlgmr.msra.gmra.mxu3 %v2042_v10 }
 0xb49   :  { %v2060_v17 = vpop.f32.mrf.mxu1 }
 0xb4a   :  { %v2103_v5 = vadd.f32 %v2060_v17, %v4680_v18 }
 0xb4c   :  { %v2347_v63 = vmul.f32 -1.442695, %v2103_v5 }
 0xb4e   :  { %2555 = vpow2.f32 %v2347_v63 }
 0xb4f   :  { %v2080_v1 = vpop.f32.mrf.mxu2 }
 0xb50   :  { %v2123_v13 = vadd.f32 %v2080_v1, %v4681_v55  ;;  %v2100_v24 = vpop.f32.mrf.mxu3 }
 0xb51   :  { %v2143_v25 = vadd.f32 %v4419_v57, %v2100_v24 }
 0xb52   :  { %v2348_v40 = vmul.f32 -1.442695, %v2123_v13 }
 0xb54   :  { %v2556_v15 = vpop.eup %2555  ;;  %2557 = vpow2.f32 %v2348_v40 }
 0xb55   :  { %v2107_v56 = vadd.f32 1.0, %v2556_v15 }
 0xb57   :  { %2559 = vrcp.f32 %v2107_v56  ;;  %v2119_v27 = vand.u32 2147483648, %v2107_v56  ;;  %v2117_v60 = vand.u32 2147483647, %v2107_v56  ;;  %vm2113_vm10 = vweird.f32 %v2107_v56 }
 0xb59   :  { %v2120_v2 = vor.u32 1.1754944e-38, %v2119_v27  ;;  %vm2118_vm12 = vcmp.eq.f32.partialorder %v2117_v60, 8.507059e+37 }
 0xb5a   :  { %v2558_v21 = vpop.eup %2557 }
 0xb5b   :  { %v2127_v28 = vadd.f32 1.0, %v2558_v21 }
 0xb5d   :  { %v2560_v4 = vpop.eup %2559  ;;  %2561 = vrcp.f32 %v2127_v28  ;;  %v2139_v62 = vand.u32 2147483648, %v2127_v28  ;;  %vm2133_vm14 = vweird.f32 %v2127_v28  ;;  %v2137_v8 = vand.u32 2147483647, %v2127_v28 }
 0xb5e   :  { %v2109_v12 = vmul.f32 %v2560_v4, %v2107_v56  ;;  %vm2114_vm9 = vweird.f32 %v2560_v4 }
 0xb5f   :  { %vm2115_vm11 = vmor %vm2113_vm10, %vm2114_vm9  ;;  %v2140_v6 = vor.u32 1.1754944e-38, %v2139_v62  ;;  %vm2138_vm0 = vcmp.eq.f32.partialorder %v2137_v8, 8.507059e+37 }
 0xb60   :  { %v2110_v22 = vsub.f32 1.0, %v2109_v12 }
 0xb62   :  { %v2111_v16 = vmul.f32 %v2560_v4, %v2110_v22 }
 0xb63   :  { %v2562_v58 = vpop.eup %2561 }
 0xb64   :  { %v2129_v23 = vmul.f32 %v2562_v58, %v2127_v28  ;;  %v2112_v0 = vadd.f32 %v2560_v4, %v2111_v16  ;;  %vm2134_vm13 = vweird.f32 %v2562_v58 }
 0xb65   :  { %vm2135_vm15 = vmor %vm2133_vm14, %vm2134_vm13 }
 0xb66   :  { %v2130_v49 = vsub.f32 1.0, %v2129_v23  ;;  %v2116_v48 = vsel %vm2115_vm11, %v2560_v4, %v2112_v0 }
 0xb67   :  { %v2121_v54 = vsel %vm2118_vm12, %v2120_v2, %v2116_v48 }
 0xb68   :  { %v2144_v59 = vmul.f32 %v2143_v25, %v2121_v54  ;;  %v2131_v61 = vmul.f32 %v2562_v58, %v2130_v49 }
 0xb6a   :  { %v2145_v37 = vadd.f32 %v2144_v59, %v4682_v3  ;;  %v2132_v7 = vadd.f32 %v2562_v58, %v2131_v61 }
 0xb6c   :  { %2563 = vtanh.f32 %v2145_v37  ;;  %v2136_v20 = vsel %vm2135_vm15, %v2562_v58, %v2132_v7 }
 0xb6d   :  { %v2141_v26 = vsel %vm2138_vm0, %v2140_v6, %v2136_v20 }
 0xb72   :  { %v2564_v19 = vpop.eup %2563 }
 0xb73   :  { %v2147_v11 = vsub.f32 %v2042_v10, %v2564_v19 }
 0xb75   :  { %v2148_v30 = vmul.f32 %v2147_v11, %v2141_v26 }
 0xb77   :  { %v2149_v34 = vadd.f32 %v2564_v19, %v2148_v30 }
 0xb79   :  { %v2153_v57 = vpack.c.bf16 %v2149_v34, %v2042_v10 }
 0xb7b   :  { %2245 = vmatmul.bf16.gmra.mxu0 %v2153_v57 }
 0xbf8   :  { %v2246_v9 = vpop.f32.mrf.mxu0 }
 0xbf9   :  { %v2247_v29 = vadd.f32 %v4399_v31, %v2246_v9 }
 0xbfb   :  { %2257 = vst [vmem:[%s4457_s10 + $0x30] sm:$0xff] %v2247_v29 }
 0xc00   :  { %v2248_v32 = vpop.f32.mrf.mxu0 }
 0xc01   :  { %v2249_v35 = vadd.f32 %v4399_v31, %v2248_v32 }
 0xc03   :  { %2258 = vst [vmem:[%s4457_s10 + $0x38] sm:$0xff] %v2249_v35 }
 0xc04   :  { %2267 = vsyncpa [#allocation3], 1 }
 0xc05   :  { %2268 = vsyncpa [#allocation5], 1 }

</bundles_post_ra>
